<compile_context>
chip_gen: v7x
topology: tpu7x:2x2x1
jax: 0.10.0
libtpu: 0.0.40
codegen_flags: <defaults>
</compile_context>

<pallas_src>
import functools

import jax
import jax.numpy as jnp
from jax.experimental import pallas as pl
from jax.experimental.pallas import tpu as pltpu


def _patch_merge_kernel(x_ref, w_ref, b_ref, o_ref, *, C, Wh, eps,
                        matmul_dtype, one_pass_stats):
    """One grid step: tr row-pairs -> tr*Wh merged tokens.

    x_ref: (tr, 2*W*C)  row-pair slab; lanes = [h-even row | h-odd row], each
                        row = Wh groups of (w-even C | w-odd C) channels.
    w_ref: (2, 2C, N)   gamma-folded reduction weight, split by h parity.
    b_ref: (1, N)       beta @ W (LayerNorm shift folded through the Linear).
    o_ref: (tr, Wh*N)   output tokens, lane-dense.
    """
    twoC = 2 * C
    WC = Wh * twoC              # == W * C
    N = twoC
    inv_k = 1.0 / float(4 * C)  # LayerNorm over all 4C merged channels

    w0 = w_ref[0]               # (2C, N)  h-even channels
    w1 = w_ref[1]               # (2C, N)  h-odd channels
    bias = b_ref[...].astype(jnp.float32)

    # Static unroll over the token columns of the row-pair (Wh <= ~32 for all
    # Swin/Focal stages).  Every slice below is a static lane slice -> no
    # sublane relayouts regardless of Wh % 8.
    for w in range(Wh):
        lo = w * twoC
        xe = x_ref[:, lo:lo + twoC].astype(jnp.float32)             # (tr, 2C)
        xo = x_ref[:, WC + lo:WC + lo + twoC].astype(jnp.float32)   # (tr, 2C)

        mean = (jnp.sum(xe, axis=-1, keepdims=True)
                + jnp.sum(xo, axis=-1, keepdims=True)) * inv_k
        de = xe - mean
        do = xo - mean
        if one_pass_stats:
            # E[x^2]-E[x]^2: cheaper latency chain, slightly less accurate.
            ex2 = (jnp.sum(xe * xe, axis=-1, keepdims=True)
                   + jnp.sum(xo * xo, axis=-1, keepdims=True)) * inv_k
            var = jnp.maximum(ex2 - mean * mean, 0.0)
        else:
            var = (jnp.sum(de * de, axis=-1, keepdims=True)
                   + jnp.sum(do * do, axis=-1, keepdims=True)) * inv_k
        rstd = jax.lax.rsqrt(var + eps)

        xen = (de * rstd).astype(matmul_dtype)
        xon = (do * rstd).astype(matmul_dtype)

        acc = jnp.dot(xen, w0, preferred_element_type=jnp.float32)
        acc = acc + jnp.dot(xon, w1, preferred_element_type=jnp.float32)
        acc = acc + bias
        o_ref[:, w * N:(w + 1) * N] = acc.astype(o_ref.dtype)


def _vmem_limit_bytes():
    """3/4 of physical VMEM: ~48 MiB on v7x (64 MiB/TC), ~96 MiB on v5e/v6e."""
    cap = 128 << 20
    try:
        info = pltpu.get_tpu_info()
        cap = int(getattr(info, "vmem_capacity_bytes", cap))
    except Exception:
        pass
    return int(max(min(cap * 3 // 4, 100 << 20), 16 << 20))


def _pick_tile_rows(R, row_in_bytes, row_out_bytes, vmem_limit, const_bytes,
                    x_tile_target_bytes):
    """Row-pairs per grid step (multiple of 8 unless a single full block);
    grid = cdiv(R, tr) may have a ragged last block."""
    # Headroom: weight/bias buffers, per-column temporaries, Mosaic scratch.
    avail = max(vmem_limit - const_bytes - (4 << 20), 2 << 20)
    per_row = 2 * (row_in_bytes + row_out_bytes)          # double-buffered
    tr = int(min(avail // per_row,
                 max(x_tile_target_bytes // row_in_bytes, 8),
                 R))
    if tr >= R:
        if R < 16:
            return R, 1                                    # single full block
        tr = (pl.cdiv(R, 2) + 7) // 8 * 8                  # 2 steps: overlap + even grid
    else:
        tr = max((tr // 8) * 8, 8)
    grid = pl.cdiv(R, tr)
    if grid > 1 and grid % 2 == 1:
        # Prefer an even number of steps (v7x 2-TensorCore split) as long as
        # it does not shrink the tile by more than ~2x.
        for cand in range(tr, max(tr // 2, 8) - 1, -8):
            if pl.cdiv(R, cand) % 2 == 0:
                return cand, pl.cdiv(R, cand)
    return tr, grid


def patch_merging_forward(x, gamma, beta, w_t, input_resolution, *,
                          eps=1e-5, matmul_dtype=jnp.bfloat16,
                          out_dtype=None, one_pass_stats=False,
                          x_tile_target_bytes=12 << 20):
    """Fused PatchMerging forward.

    x:   (B, H*W, C) activations (f32 or bf16 — bf16 halves HBM traffic).
    w_t: (4C, 2C) = transpose of the torch Linear weight (reduction.weight.T).
    Returns (B, (H//2)*(W//2), 2C) in out_dtype (default: x.dtype).
    """
    H, W = input_resolution
    B, L, C = x.shape
    assert L == H * W, "input feature has wrong size"
    assert H % 2 == 0 and W % 2 == 0, f"x size ({H}*{W}) are not even."
    assert gamma.shape == (4 * C,) and beta.shape == (4 * C,)
    assert w_t.shape == (4 * C, 2 * C)

    out_dtype = x.dtype if out_dtype is None else jnp.dtype(out_dtype)
    Wh = W // 2
    R = B * (H // 2)             # row-pairs
    M = R * Wh                   # merged tokens
    N = 2 * C
    twoC = 2 * C
    WC = W * C

    # Free view: one row-pair (image rows 2i, 2i+1) per leading index, all of
    # its 2*W*C values contiguous along the lane dim.
    x2d = x.reshape(R, 2 * WC)

    # Fold the LayerNorm affine into the reduction weight and split it by the
    # h-parity of the source channels.  torch cat order:
    # [x0,x1,x2,x3] = [(h0,w0),(h1,w0),(h0,w1),(h1,w1)].
    c_idx = jnp.arange(C)
    perm_even = jnp.concatenate([0 * C + c_idx, 2 * C + c_idx])  # (h0,w0),(h0,w1)
    perm_odd = jnp.concatenate([1 * C + c_idx, 3 * C + c_idx])   # (h1,w0),(h1,w1)
    w_g = (gamma[:, None] * w_t).astype(matmul_dtype)            # (4C, N)
    w_eff = jnp.stack([w_g[perm_even], w_g[perm_odd]])           # (2, 2C, N)
    bias_eff = (beta @ w_t).astype(jnp.float32).reshape(1, N)

    row_in_bytes = 2 * WC * x.dtype.itemsize
    row_out_bytes = Wh * N * out_dtype.itemsize
    const_bytes = 2 * (w_eff.size * w_eff.dtype.itemsize + bias_eff.size * 4)
    vmem_limit = _vmem_limit_bytes()
    tr, grid_len = _pick_tile_rows(R, row_in_bytes, row_out_bytes, vmem_limit,
                                   const_bytes, x_tile_target_bytes)

    kernel = functools.partial(_patch_merge_kernel, C=C, Wh=Wh, eps=eps,
                               matmul_dtype=matmul_dtype,
                               one_pass_stats=one_pass_stats)

    cost = pl.CostEstimate(
        flops=2 * M * (4 * C) * N + 10 * M * 4 * C,
        transcendentals=M,
        bytes_accessed=(x.size * x.dtype.itemsize
                        + M * N * out_dtype.itemsize
                        + w_eff.size * w_eff.dtype.itemsize),
    )

    def build(single_buffer_consts):
        const_kw = ({"pipeline_mode": pl.Buffered(1)}
                    if single_buffer_consts else {})
        return pl.pallas_call(
            kernel,
            out_shape=jax.ShapeDtypeStruct((R, Wh * N), out_dtype),
            grid=(grid_len,),
            in_specs=[
                pl.BlockSpec((tr, 2 * WC), lambda i: (i, 0)),
                pl.BlockSpec((2, twoC, N), lambda i: (0, 0, 0), **const_kw),
                pl.BlockSpec((1, N), lambda i: (0, 0), **const_kw),
            ],
            out_specs=pl.BlockSpec((tr, Wh * N), lambda i: (i, 0)),
            compiler_params=pltpu.CompilerParams(
                dimension_semantics=("parallel",),
                vmem_limit_bytes=vmem_limit),
            cost_estimate=cost,
        )

    try:
        # Constant-index weight/bias: single-buffered saves one weight copy.
        out2d = build(True)(x2d, w_eff, bias_eff)
    except Exception:
        # Fallback if this JAX version rejects BlockSpec(pipeline_mode=...).
        out2d = build(False)(x2d, w_eff, bias_eff)

    return out2d.reshape(B, (H // 2) * Wh, N)


def reference_forward(x, gamma, beta, w_t, input_resolution, eps=1e-5):
    """Pure-JAX (f32) reference matching the PyTorch module."""
    H, W = input_resolution
    B, L, C = x.shape
    xv = x.reshape(B, H, W, C)
    x0 = xv[:, 0::2, 0::2, :]
    x1 = xv[:, 1::2, 0::2, :]
    x2 = xv[:, 0::2, 1::2, :]
    x3 = xv[:, 1::2, 1::2, :]
    xm = jnp.concatenate([x0, x1, x2, x3], axis=-1).reshape(B, -1, 4 * C)
    mean = jnp.mean(xm, axis=-1, keepdims=True)
    var = jnp.mean((xm - mean) ** 2, axis=-1, keepdims=True)
    xn = (xm - mean) * jax.lax.rsqrt(var + eps)
    xn = xn * gamma + beta
    return xn @ w_t


if __name__ == "__main__":
    # Small shapes consistent with the module: dim=4, input_resolution=(16,16)
    B, C = 2, 4
    H, W = 16, 16
    L = H * W

    key = jax.random.PRNGKey(0)
    kx, kg, kb, kw = jax.random.split(key, 4)

    x = jax.random.normal(kx, (B, L, C), dtype=jnp.float32)

    # Synthetic parameters (shapes from nn.Module __init__):
    #   norm: LayerNorm(4*dim)                    -> gamma, beta (4C,)
    #   reduction: Linear(4*dim, 2*dim, bias=False) -> weight (2C, 4C);
    #   we store its transpose w_t with shape (4C, 2C).
    gamma = 1.0 + 0.1 * jax.random.normal(kg, (4 * C,), dtype=jnp.float32)
    beta = 0.1 * jax.random.normal(kb, (4 * C,), dtype=jnp.float32)
    w_t = 0.05 * jax.random.normal(kw, (4 * C, 2 * C), dtype=jnp.float32)

    out = patch_merging_forward(x, gamma, beta, w_t, (H, W))
    out = jax.block_until_ready(out)

    ref = reference_forward(x, gamma, beta, w_t, (H, W))
    assert out.shape == (B, (H // 2) * (W // 2), 2 * C), out.shape
    # bf16 matmul operands (f32 accumulation) -> slightly loosened tolerance.
    assert jnp.allclose(out, ref, atol=1e-2, rtol=1e-2), "mismatch vs reference"

    print("KERNEL_OK")
</pallas_src>

<mosaic_0001>
module attributes {stable_mosaic.version = 11 : i64} {
  func.func @_patch_merge_kernel(%arg0: i32, %arg1: memref<8x128xf32, #tpu.memory_space<vmem>>, %arg2: memref<2x8x8xbf16, #tpu.memory_space<vmem>>, %arg3: memref<1x8xf32, #tpu.memory_space<vmem>>, %arg4: memref<8x64xf32, #tpu.memory_space<vmem>>) attributes {dimension_semantics = [#tpu.dimension_semantics<parallel>], iteration_bounds = array<i64: 2>, scalar_prefetch = 0 : i64, scratch_operands = 0 : i64, tpu.core_type = #tpu.core_type<tc>, window_params = [{transform_indices = @transform_0, window_bounds = array<i64: 8, 128>}, {pipeline_mode = #tpu.pipeline_mode<synchronous>, transform_indices = @transform_1, window_bounds = array<i64: 2, 8, 8>}, {pipeline_mode = #tpu.pipeline_mode<synchronous>, transform_indices = @transform_2, window_bounds = array<i64: 1, 8>}, {transform_indices = @transform_3, window_bounds = array<i64: 8, 64>}]} {
    %c0 = arith.constant 0 : index
    %c0_0 = arith.constant 0 : index
    %c0_1 = arith.constant 0 : index
    %0 = vector.load %arg2[%c0, %c0_0, %c0_1] : memref<2x8x8xbf16, #tpu.memory_space<vmem>>, vector<1x8x8xbf16>
    %1 = vector.shape_cast %0 : vector<1x8x8xbf16> to vector<8x8xbf16>
    %c1 = arith.constant 1 : index
    %c0_2 = arith.constant 0 : index
    %c0_3 = arith.constant 0 : index
    %2 = vector.load %arg2[%c1, %c0_2, %c0_3] : memref<2x8x8xbf16, #tpu.memory_space<vmem>>, vector<1x8x8xbf16>
    %3 = vector.shape_cast %2 : vector<1x8x8xbf16> to vector<8x8xbf16>
    %c0_4 = arith.constant 0 : index
    %c0_5 = arith.constant 0 : index
    %4 = vector.load %arg3[%c0_4, %c0_5] : memref<1x8xf32, #tpu.memory_space<vmem>>, vector<1x8xf32>
    %c0_6 = arith.constant 0 : index
    %c0_7 = arith.constant 0 : index
    %5 = vector.load %arg1[%c0_6, %c0_7] : memref<8x128xf32, #tpu.memory_space<vmem>>, vector<8x8xf32>
    %c0_8 = arith.constant 0 : index
    %c64 = arith.constant 64 : index
    %6 = vector.load %arg1[%c0_8, %c64] : memref<8x128xf32, #tpu.memory_space<vmem>>, vector<8x8xf32>
    %cst = arith.constant dense<0.000000e+00> : vector<8xf32>
    %7 = vector.multi_reduction <add>, %5, %cst [1] : vector<8x8xf32> to vector<8xf32>
    %8 = vector.shape_cast %7 : vector<8xf32> to vector<8x1xf32>
    %cst_9 = arith.constant dense<0.000000e+00> : vector<8xf32>
    %9 = vector.multi_reduction <add>, %6, %cst_9 [1] : vector<8x8xf32> to vector<8xf32>
    %10 = vector.shape_cast %9 : vector<8xf32> to vector<8x1xf32>
    %11 = arith.addf %8, %10 : vector<8x1xf32>
    %cst_10 = arith.constant 6.250000e-02 : f32
    %12 = vector.broadcast %cst_10 : f32 to vector<8x1xf32>
    %13 = arith.mulf %11, %12 : vector<8x1xf32>
    %14 = vector.broadcast %13 : vector<8x1xf32> to vector<8x8xf32>
    %15 = arith.subf %5, %14 : vector<8x8xf32>
    %16 = vector.broadcast %13 : vector<8x1xf32> to vector<8x8xf32>
    %17 = arith.subf %6, %16 : vector<8x8xf32>
    %18 = arith.mulf %15, %15 : vector<8x8xf32>
    %cst_11 = arith.constant dense<0.000000e+00> : vector<8xf32>
    %19 = vector.multi_reduction <add>, %18, %cst_11 [1] : vector<8x8xf32> to vector<8xf32>
    %20 = vector.shape_cast %19 : vector<8xf32> to vector<8x1xf32>
    %21 = arith.mulf %17, %17 : vector<8x8xf32>
    %cst_12 = arith.constant dense<0.000000e+00> : vector<8xf32>
    %22 = vector.multi_reduction <add>, %21, %cst_12 [1] : vector<8x8xf32> to vector<8xf32>
    %23 = vector.shape_cast %22 : vector<8xf32> to vector<8x1xf32>
    %24 = arith.addf %20, %23 : vector<8x1xf32>
    %cst_13 = arith.constant 6.250000e-02 : f32
    %25 = vector.broadcast %cst_13 : f32 to vector<8x1xf32>
    %26 = arith.mulf %24, %25 : vector<8x1xf32>
    %cst_14 = arith.constant 9.99999974E-6 : f32
    %27 = vector.broadcast %cst_14 : f32 to vector<8x1xf32>
    %28 = arith.addf %26, %27 : vector<8x1xf32>
    %29 = math.rsqrt %28 : vector<8x1xf32>
    %30 = vector.broadcast %29 : vector<8x1xf32> to vector<8x8xf32>
    %31 = arith.mulf %15, %30 : vector<8x8xf32>
    %32 = arith.truncf %31 : vector<8x8xf32> to vector<8x8xbf16>
    %33 = vector.broadcast %29 : vector<8x1xf32> to vector<8x8xf32>
    %34 = arith.mulf %17, %33 : vector<8x8xf32>
    %35 = arith.truncf %34 : vector<8x8xf32> to vector<8x8xbf16>
    %cst_15 = arith.constant dense<0.000000e+00> : vector<8x8xf32>
    %36 = tpu.matmul %32, %1, %cst_15 {dimension_numbers = #tpu.dot_dimension_numbers<[1], [0], [0], [1], [0, 0, 1, 1], [], []>} : vector<8x8xbf16>, vector<8x8xbf16>, vector<8x8xf32> -> vector<8x8xf32>
    %cst_16 = arith.constant dense<0.000000e+00> : vector<8x8xf32>
    %37 = tpu.matmul %35, %3, %cst_16 {dimension_numbers = #tpu.dot_dimension_numbers<[1], [0], [0], [1], [0, 0, 1, 1], [], []>} : vector<8x8xbf16>, vector<8x8xbf16>, vector<8x8xf32> -> vector<8x8xf32>
    %38 = arith.addf %36, %37 : vector<8x8xf32>
    %39 = vector.broadcast %4 : vector<1x8xf32> to vector<8x8xf32>
    %40 = arith.addf %38, %39 : vector<8x8xf32>
    %c0_17 = arith.constant 0 : index
    %c0_18 = arith.constant 0 : index
    %41 = vector.load %arg4[%c0_17, %c0_18] : memref<8x64xf32, #tpu.memory_space<vmem>>, vector<8x8xf32>
    tpu.vector_store %arg4[%c0_17, %c0_18], %40 {strides = array<i32>} : memref<8x64xf32, #tpu.memory_space<vmem>>, vector<8x8xf32>,
    %c0_19 = arith.constant 0 : index
    %c8 = arith.constant 8 : index
    %42 = vector.load %arg1[%c0_19, %c8] : memref<8x128xf32, #tpu.memory_space<vmem>>, vector<8x8xf32>
    %c0_20 = arith.constant 0 : index
    %c72 = arith.constant 72 : index
    %43 = vector.load %arg1[%c0_20, %c72] : memref<8x128xf32, #tpu.memory_space<vmem>>, vector<8x8xf32>
    %cst_21 = arith.constant dense<0.000000e+00> : vector<8xf32>
    %44 = vector.multi_reduction <add>, %42, %cst_21 [1] : vector<8x8xf32> to vector<8xf32>
    %45 = vector.shape_cast %44 : vector<8xf32> to vector<8x1xf32>
    %cst_22 = arith.constant dense<0.000000e+00> : vector<8xf32>
    %46 = vector.multi_reduction <add>, %43, %cst_22 [1] : vector<8x8xf32> to vector<8xf32>
    %47 = vector.shape_cast %46 : vector<8xf32> to vector<8x1xf32>
    %48 = arith.addf %45, %47 : vector<8x1xf32>
    %cst_23 = arith.constant 6.250000e-02 : f32
    %49 = vector.broadcast %cst_23 : f32 to vector<8x1xf32>
    %50 = arith.mulf %48, %49 : vector<8x1xf32>
    %51 = vector.broadcast %50 : vector<8x1xf32> to vector<8x8xf32>
    %52 = arith.subf %42, %51 : vector<8x8xf32>
    %53 = vector.broadcast %50 : vector<8x1xf32> to vector<8x8xf32>
    %54 = arith.subf %43, %53 : vector<8x8xf32>
    %55 = arith.mulf %52, %52 : vector<8x8xf32>
    %cst_24 = arith.constant dense<0.000000e+00> : vector<8xf32>
    %56 = vector.multi_reduction <add>, %55, %cst_24 [1] : vector<8x8xf32> to vector<8xf32>
    %57 = vector.shape_cast %56 : vector<8xf32> to vector<8x1xf32>
    %58 = arith.mulf %54, %54 : vector<8x8xf32>
    %cst_25 = arith.constant dense<0.000000e+00> : vector<8xf32>
    %59 = vector.multi_reduction <add>, %58, %cst_25 [1] : vector<8x8xf32> to vector<8xf32>
    %60 = vector.shape_cast %59 : vector<8xf32> to vector<8x1xf32>
    %61 = arith.addf %57, %60 : vector<8x1xf32>
    %cst_26 = arith.constant 6.250000e-02 : f32
    %62 = vector.broadcast %cst_26 : f32 to vector<8x1xf32>
    %63 = arith.mulf %61, %62 : vector<8x1xf32>
    %cst_27 = arith.constant 9.99999974E-6 : f32
    %64 = vector.broadcast %cst_27 : f32 to vector<8x1xf32>
    %65 = arith.addf %63, %64 : vector<8x1xf32>
    %66 = math.rsqrt %65 : vector<8x1xf32>
    %67 = vector.broadcast %66 : vector<8x1xf32> to vector<8x8xf32>
    %68 = arith.mulf %52, %67 : vector<8x8xf32>
    %69 = arith.truncf %68 : vector<8x8xf32> to vector<8x8xbf16>
    %70 = vector.broadcast %66 : vector<8x1xf32> to vector<8x8xf32>
    %71 = arith.mulf %54, %70 : vector<8x8xf32>
    %72 = arith.truncf %71 : vector<8x8xf32> to vector<8x8xbf16>
    %cst_28 = arith.constant dense<0.000000e+00> : vector<8x8xf32>
    %73 = tpu.matmul %69, %1, %cst_28 {dimension_numbers = #tpu.dot_dimension_numbers<[1], [0], [0], [1], [0, 0, 1, 1], [], []>} : vector<8x8xbf16>, vector<8x8xbf16>, vector<8x8xf32> -> vector<8x8xf32>
    %cst_29 = arith.constant dense<0.000000e+00> : vector<8x8xf32>
    %74 = tpu.matmul %72, %3, %cst_29 {dimension_numbers = #tpu.dot_dimension_numbers<[1], [0], [0], [1], [0, 0, 1, 1], [], []>} : vector<8x8xbf16>, vector<8x8xbf16>, vector<8x8xf32> -> vector<8x8xf32>
    %75 = arith.addf %73, %74 : vector<8x8xf32>
    %76 = vector.broadcast %4 : vector<1x8xf32> to vector<8x8xf32>
    %77 = arith.addf %75, %76 : vector<8x8xf32>
    %c0_30 = arith.constant 0 : index
    %c8_31 = arith.constant 8 : index
    %78 = vector.load %arg4[%c0_30, %c8_31] : memref<8x64xf32, #tpu.memory_space<vmem>>, vector<8x8xf32>
    tpu.vector_store %arg4[%c0_30, %c8_31], %77 {strides = array<i32>} : memref<8x64xf32, #tpu.memory_space<vmem>>, vector<8x8xf32>,
    %c0_32 = arith.constant 0 : index
    %c16 = arith.constant 16 : index
    %79 = vector.load %arg1[%c0_32, %c16] : memref<8x128xf32, #tpu.memory_space<vmem>>, vector<8x8xf32>
    %c0_33 = arith.constant 0 : index
    %c80 = arith.constant 80 : index
    %80 = vector.load %arg1[%c0_33, %c80] : memref<8x128xf32, #tpu.memory_space<vmem>>, vector<8x8xf32>
    %cst_34 = arith.constant dense<0.000000e+00> : vector<8xf32>
    %81 = vector.multi_reduction <add>, %79, %cst_34 [1] : vector<8x8xf32> to vector<8xf32>
    %82 = vector.shape_cast %81 : vector<8xf32> to vector<8x1xf32>
    %cst_35 = arith.constant dense<0.000000e+00> : vector<8xf32>
    %83 = vector.multi_reduction <add>, %80, %cst_35 [1] : vector<8x8xf32> to vector<8xf32>
    %84 = vector.shape_cast %83 : vector<8xf32> to vector<8x1xf32>
    %85 = arith.addf %82, %84 : vector<8x1xf32>
    %cst_36 = arith.constant 6.250000e-02 : f32
    %86 = vector.broadcast %cst_36 : f32 to vector<8x1xf32>
    %87 = arith.mulf %85, %86 : vector<8x1xf32>
    %88 = vector.broadcast %87 : vector<8x1xf32> to vector<8x8xf32>
    %89 = arith.subf %79, %88 : vector<8x8xf32>
    %90 = vector.broadcast %87 : vector<8x1xf32> to vector<8x8xf32>
    %91 = arith.subf %80, %90 : vector<8x8xf32>
    %92 = arith.mulf %89, %89 : vector<8x8xf32>
    %cst_37 = arith.constant dense<0.000000e+00> : vector<8xf32>
    %93 = vector.multi_reduction <add>, %92, %cst_37 [1] : vector<8x8xf32> to vector<8xf32>
    %94 = vector.shape_cast %93 : vector<8xf32> to vector<8x1xf32>
    %95 = arith.mulf %91, %91 : vector<8x8xf32>
    %cst_38 = arith.constant dense<0.000000e+00> : vector<8xf32>
    %96 = vector.multi_reduction <add>, %95, %cst_38 [1] : vector<8x8xf32> to vector<8xf32>
    %97 = vector.shape_cast %96 : vector<8xf32> to vector<8x1xf32>
    %98 = arith.addf %94, %97 : vector<8x1xf32>
    %cst_39 = arith.constant 6.250000e-02 : f32
    %99 = vector.broadcast %cst_39 : f32 to vector<8x1xf32>
    %100 = arith.mulf %98, %99 : vector<8x1xf32>
    %cst_40 = arith.constant 9.99999974E-6 : f32
    %101 = vector.broadcast %cst_40 : f32 to vector<8x1xf32>
    %102 = arith.addf %100, %101 : vector<8x1xf32>
    %103 = math.rsqrt %102 : vector<8x1xf32>
    %104 = vector.broadcast %103 : vector<8x1xf32> to vector<8x8xf32>
    %105 = arith.mulf %89, %104 : vector<8x8xf32>
    %106 = arith.truncf %105 : vector<8x8xf32> to vector<8x8xbf16>
    %107 = vector.broadcast %103 : vector<8x1xf32> to vector<8x8xf32>
    %108 = arith.mulf %91, %107 : vector<8x8xf32>
    %109 = arith.truncf %108 : vector<8x8xf32> to vector<8x8xbf16>
    %cst_41 = arith.constant dense<0.000000e+00> : vector<8x8xf32>
    %110 = tpu.matmul %106, %1, %cst_41 {dimension_numbers = #tpu.dot_dimension_numbers<[1], [0], [0], [1], [0, 0, 1, 1], [], []>} : vector<8x8xbf16>, vector<8x8xbf16>, vector<8x8xf32> -> vector<8x8xf32>
    %cst_42 = arith.constant dense<0.000000e+00> : vector<8x8xf32>
    %111 = tpu.matmul %109, %3, %cst_42 {dimension_numbers = #tpu.dot_dimension_numbers<[1], [0], [0], [1], [0, 0, 1, 1], [], []>} : vector<8x8xbf16>, vector<8x8xbf16>, vector<8x8xf32> -> vector<8x8xf32>
    %112 = arith.addf %110, %111 : vector<8x8xf32>
    %113 = vector.broadcast %4 : vector<1x8xf32> to vector<8x8xf32>
    %114 = arith.addf %112, %113 : vector<8x8xf32>
    %c0_43 = arith.constant 0 : index
    %c16_44 = arith.constant 16 : index
    %115 = vector.load %arg4[%c0_43, %c16_44] : memref<8x64xf32, #tpu.memory_space<vmem>>, vector<8x8xf32>
    tpu.vector_store %arg4[%c0_43, %c16_44], %114 {strides = array<i32>} : memref<8x64xf32, #tpu.memory_space<vmem>>, vector<8x8xf32>,
    %c0_45 = arith.constant 0 : index
    %c24 = arith.constant 24 : index
    %116 = vector.load %arg1[%c0_45, %c24] : memref<8x128xf32, #tpu.memory_space<vmem>>, vector<8x8xf32>
    %c0_46 = arith.constant 0 : index
    %c88 = arith.constant 88 : index
    %117 = vector.load %arg1[%c0_46, %c88] : memref<8x128xf32, #tpu.memory_space<vmem>>, vector<8x8xf32>
    %cst_47 = arith.constant dense<0.000000e+00> : vector<8xf32>
    %118 = vector.multi_reduction <add>, %116, %cst_47 [1] : vector<8x8xf32> to vector<8xf32>
    %119 = vector.shape_cast %118 : vector<8xf32> to vector<8x1xf32>
    %cst_48 = arith.constant dense<0.000000e+00> : vector<8xf32>
    %120 = vector.multi_reduction <add>, %117, %cst_48 [1] : vector<8x8xf32> to vector<8xf32>
    %121 = vector.shape_cast %120 : vector<8xf32> to vector<8x1xf32>
    %122 = arith.addf %119, %121 : vector<8x1xf32>
    %cst_49 = arith.constant 6.250000e-02 : f32
    %123 = vector.broadcast %cst_49 : f32 to vector<8x1xf32>
    %124 = arith.mulf %122, %123 : vector<8x1xf32>
    %125 = vector.broadcast %124 : vector<8x1xf32> to vector<8x8xf32>
    %126 = arith.subf %116, %125 : vector<8x8xf32>
    %127 = vector.broadcast %124 : vector<8x1xf32> to vector<8x8xf32>
    %128 = arith.subf %117, %127 : vector<8x8xf32>
    %129 = arith.mulf %126, %126 : vector<8x8xf32>
    %cst_50 = arith.constant dense<0.000000e+00> : vector<8xf32>
    %130 = vector.multi_reduction <add>, %129, %cst_50 [1] : vector<8x8xf32> to vector<8xf32>
    %131 = vector.shape_cast %130 : vector<8xf32> to vector<8x1xf32>
    %132 = arith.mulf %128, %128 : vector<8x8xf32>
    %cst_51 = arith.constant dense<0.000000e+00> : vector<8xf32>
    %133 = vector.multi_reduction <add>, %132, %cst_51 [1] : vector<8x8xf32> to vector<8xf32>
    %134 = vector.shape_cast %133 : vector<8xf32> to vector<8x1xf32>
    %135 = arith.addf %131, %134 : vector<8x1xf32>
    %cst_52 = arith.constant 6.250000e-02 : f32
    %136 = vector.broadcast %cst_52 : f32 to vector<8x1xf32>
    %137 = arith.mulf %135, %136 : vector<8x1xf32>
    %cst_53 = arith.constant 9.99999974E-6 : f32
    %138 = vector.broadcast %cst_53 : f32 to vector<8x1xf32>
    %139 = arith.addf %137, %138 : vector<8x1xf32>
    %140 = math.rsqrt %139 : vector<8x1xf32>
    %141 = vector.broadcast %140 : vector<8x1xf32> to vector<8x8xf32>
    %142 = arith.mulf %126, %141 : vector<8x8xf32>
    %143 = arith.truncf %142 : vector<8x8xf32> to vector<8x8xbf16>
    %144 = vector.broadcast %140 : vector<8x1xf32> to vector<8x8xf32>
    %145 = arith.mulf %128, %144 : vector<8x8xf32>
    %146 = arith.truncf %145 : vector<8x8xf32> to vector<8x8xbf16>
    %cst_54 = arith.constant dense<0.000000e+00> : vector<8x8xf32>
    %147 = tpu.matmul %143, %1, %cst_54 {dimension_numbers = #tpu.dot_dimension_numbers<[1], [0], [0], [1], [0, 0, 1, 1], [], []>} : vector<8x8xbf16>, vector<8x8xbf16>, vector<8x8xf32> -> vector<8x8xf32>
    %cst_55 = arith.constant dense<0.000000e+00> : vector<8x8xf32>
    %148 = tpu.matmul %146, %3, %cst_55 {dimension_numbers = #tpu.dot_dimension_numbers<[1], [0], [0], [1], [0, 0, 1, 1], [], []>} : vector<8x8xbf16>, vector<8x8xbf16>, vector<8x8xf32> -> vector<8x8xf32>
    %149 = arith.addf %147, %148 : vector<8x8xf32>
    %150 = vector.broadcast %4 : vector<1x8xf32> to vector<8x8xf32>
    %151 = arith.addf %149, %150 : vector<8x8xf32>
    %c0_56 = arith.constant 0 : index
    %c24_57 = arith.constant 24 : index
    %152 = vector.load %arg4[%c0_56, %c24_57] : memref<8x64xf32, #tpu.memory_space<vmem>>, vector<8x8xf32>
    tpu.vector_store %arg4[%c0_56, %c24_57], %151 {strides = array<i32>} : memref<8x64xf32, #tpu.memory_space<vmem>>, vector<8x8xf32>,
    %c0_58 = arith.constant 0 : index
    %c32 = arith.constant 32 : index
    %153 = vector.load %arg1[%c0_58, %c32] : memref<8x128xf32, #tpu.memory_space<vmem>>, vector<8x8xf32>
    %c0_59 = arith.constant 0 : index
    %c96 = arith.constant 96 : index
    %154 = vector.load %arg1[%c0_59, %c96] : memref<8x128xf32, #tpu.memory_space<vmem>>, vector<8x8xf32>
    %cst_60 = arith.constant dense<0.000000e+00> : vector<8xf32>
    %155 = vector.multi_reduction <add>, %153, %cst_60 [1] : vector<8x8xf32> to vector<8xf32>
    %156 = vector.shape_cast %155 : vector<8xf32> to vector<8x1xf32>
    %cst_61 = arith.constant dense<0.000000e+00> : vector<8xf32>
    %157 = vector.multi_reduction <add>, %154, %cst_61 [1] : vector<8x8xf32> to vector<8xf32>
    %158 = vector.shape_cast %157 : vector<8xf32> to vector<8x1xf32>
    %159 = arith.addf %156, %158 : vector<8x1xf32>
    %cst_62 = arith.constant 6.250000e-02 : f32
    %160 = vector.broadcast %cst_62 : f32 to vector<8x1xf32>
    %161 = arith.mulf %159, %160 : vector<8x1xf32>
    %162 = vector.broadcast %161 : vector<8x1xf32> to vector<8x8xf32>
    %163 = arith.subf %153, %162 : vector<8x8xf32>
    %164 = vector.broadcast %161 : vector<8x1xf32> to vector<8x8xf32>
    %165 = arith.subf %154, %164 : vector<8x8xf32>
    %166 = arith.mulf %163, %163 : vector<8x8xf32>
    %cst_63 = arith.constant dense<0.000000e+00> : vector<8xf32>
    %167 = vector.multi_reduction <add>, %166, %cst_63 [1] : vector<8x8xf32> to vector<8xf32>
    %168 = vector.shape_cast %167 : vector<8xf32> to vector<8x1xf32>
    %169 = arith.mulf %165, %165 : vector<8x8xf32>
    %cst_64 = arith.constant dense<0.000000e+00> : vector<8xf32>
    %170 = vector.multi_reduction <add>, %169, %cst_64 [1] : vector<8x8xf32> to vector<8xf32>
    %171 = vector.shape_cast %170 : vector<8xf32> to vector<8x1xf32>
    %172 = arith.addf %168, %171 : vector<8x1xf32>
    %cst_65 = arith.constant 6.250000e-02 : f32
    %173 = vector.broadcast %cst_65 : f32 to vector<8x1xf32>
    %174 = arith.mulf %172, %173 : vector<8x1xf32>
    %cst_66 = arith.constant 9.99999974E-6 : f32
    %175 = vector.broadcast %cst_66 : f32 to vector<8x1xf32>
    %176 = arith.addf %174, %175 : vector<8x1xf32>
    %177 = math.rsqrt %176 : vector<8x1xf32>
    %178 = vector.broadcast %177 : vector<8x1xf32> to vector<8x8xf32>
    %179 = arith.mulf %163, %178 : vector<8x8xf32>
    %180 = arith.truncf %179 : vector<8x8xf32> to vector<8x8xbf16>
    %181 = vector.broadcast %177 : vector<8x1xf32> to vector<8x8xf32>
    %182 = arith.mulf %165, %181 : vector<8x8xf32>
    %183 = arith.truncf %182 : vector<8x8xf32> to vector<8x8xbf16>
    %cst_67 = arith.constant dense<0.000000e+00> : vector<8x8xf32>
    %184 = tpu.matmul %180, %1, %cst_67 {dimension_numbers = #tpu.dot_dimension_numbers<[1], [0], [0], [1], [0, 0, 1, 1], [], []>} : vector<8x8xbf16>, vector<8x8xbf16>, vector<8x8xf32> -> vector<8x8xf32>
    %cst_68 = arith.constant dense<0.000000e+00> : vector<8x8xf32>
    %185 = tpu.matmul %183, %3, %cst_68 {dimension_numbers = #tpu.dot_dimension_numbers<[1], [0], [0], [1], [0, 0, 1, 1], [], []>} : vector<8x8xbf16>, vector<8x8xbf16>, vector<8x8xf32> -> vector<8x8xf32>
    %186 = arith.addf %184, %185 : vector<8x8xf32>
    %187 = vector.broadcast %4 : vector<1x8xf32> to vector<8x8xf32>
    %188 = arith.addf %186, %187 : vector<8x8xf32>
    %c0_69 = arith.constant 0 : index
    %c32_70 = arith.constant 32 : index
    %189 = vector.load %arg4[%c0_69, %c32_70] : memref<8x64xf32, #tpu.memory_space<vmem>>, vector<8x8xf32>
    tpu.vector_store %arg4[%c0_69, %c32_70], %188 {strides = array<i32>} : memref<8x64xf32, #tpu.memory_space<vmem>>, vector<8x8xf32>,
    %c0_71 = arith.constant 0 : index
    %c40 = arith.constant 40 : index
    %190 = vector.load %arg1[%c0_71, %c40] : memref<8x128xf32, #tpu.memory_space<vmem>>, vector<8x8xf32>
    %c0_72 = arith.constant 0 : index
    %c104 = arith.constant 104 : index
    %191 = vector.load %arg1[%c0_72, %c104] : memref<8x128xf32, #tpu.memory_space<vmem>>, vector<8x8xf32>
    %cst_73 = arith.constant dense<0.000000e+00> : vector<8xf32>
    %192 = vector.multi_reduction <add>, %190, %cst_73 [1] : vector<8x8xf32> to vector<8xf32>
    %193 = vector.shape_cast %192 : vector<8xf32> to vector<8x1xf32>
    %cst_74 = arith.constant dense<0.000000e+00> : vector<8xf32>
    %194 = vector.multi_reduction <add>, %191, %cst_74 [1] : vector<8x8xf32> to vector<8xf32>
    %195 = vector.shape_cast %194 : vector<8xf32> to vector<8x1xf32>
    %196 = arith.addf %193, %195 : vector<8x1xf32>
    %cst_75 = arith.constant 6.250000e-02 : f32
    %197 = vector.broadcast %cst_75 : f32 to vector<8x1xf32>
    %198 = arith.mulf %196, %197 : vector<8x1xf32>
    %199 = vector.broadcast %198 : vector<8x1xf32> to vector<8x8xf32>
    %200 = arith.subf %190, %199 : vector<8x8xf32>
    %201 = vector.broadcast %198 : vector<8x1xf32> to vector<8x8xf32>
    %202 = arith.subf %191, %201 : vector<8x8xf32>
    %203 = arith.mulf %200, %200 : vector<8x8xf32>
    %cst_76 = arith.constant dense<0.000000e+00> : vector<8xf32>
    %204 = vector.multi_reduction <add>, %203, %cst_76 [1] : vector<8x8xf32> to vector<8xf32>
    %205 = vector.shape_cast %204 : vector<8xf32> to vector<8x1xf32>
    %206 = arith.mulf %202, %202 : vector<8x8xf32>
    %cst_77 = arith.constant dense<0.000000e+00> : vector<8xf32>
    %207 = vector.multi_reduction <add>, %206, %cst_77 [1] : vector<8x8xf32> to vector<8xf32>
    %208 = vector.shape_cast %207 : vector<8xf32> to vector<8x1xf32>
    %209 = arith.addf %205, %208 : vector<8x1xf32>
    %cst_78 = arith.constant 6.250000e-02 : f32
    %210 = vector.broadcast %cst_78 : f32 to vector<8x1xf32>
    %211 = arith.mulf %209, %210 : vector<8x1xf32>
    %cst_79 = arith.constant 9.99999974E-6 : f32
    %212 = vector.broadcast %cst_79 : f32 to vector<8x1xf32>
    %213 = arith.addf %211, %212 : vector<8x1xf32>
    %214 = math.rsqrt %213 : vector<8x1xf32>
    %215 = vector.broadcast %214 : vector<8x1xf32> to vector<8x8xf32>
    %216 = arith.mulf %200, %215 : vector<8x8xf32>
    %217 = arith.truncf %216 : vector<8x8xf32> to vector<8x8xbf16>
    %218 = vector.broadcast %214 : vector<8x1xf32> to vector<8x8xf32>
    %219 = arith.mulf %202, %218 : vector<8x8xf32>
    %220 = arith.truncf %219 : vector<8x8xf32> to vector<8x8xbf16>
    %cst_80 = arith.constant dense<0.000000e+00> : vector<8x8xf32>
    %221 = tpu.matmul %217, %1, %cst_80 {dimension_numbers = #tpu.dot_dimension_numbers<[1], [0], [0], [1], [0, 0, 1, 1], [], []>} : vector<8x8xbf16>, vector<8x8xbf16>, vector<8x8xf32> -> vector<8x8xf32>
    %cst_81 = arith.constant dense<0.000000e+00> : vector<8x8xf32>
    %222 = tpu.matmul %220, %3, %cst_81 {dimension_numbers = #tpu.dot_dimension_numbers<[1], [0], [0], [1], [0, 0, 1, 1], [], []>} : vector<8x8xbf16>, vector<8x8xbf16>, vector<8x8xf32> -> vector<8x8xf32>
    %223 = arith.addf %221, %222 : vector<8x8xf32>
    %224 = vector.broadcast %4 : vector<1x8xf32> to vector<8x8xf32>
    %225 = arith.addf %223, %224 : vector<8x8xf32>
    %c0_82 = arith.constant 0 : index
    %c40_83 = arith.constant 40 : index
    %226 = vector.load %arg4[%c0_82, %c40_83] : memref<8x64xf32, #tpu.memory_space<vmem>>, vector<8x8xf32>
    tpu.vector_store %arg4[%c0_82, %c40_83], %225 {strides = array<i32>} : memref<8x64xf32, #tpu.memory_space<vmem>>, vector<8x8xf32>,
    %c0_84 = arith.constant 0 : index
    %c48 = arith.constant 48 : index
    %227 = vector.load %arg1[%c0_84, %c48] : memref<8x128xf32, #tpu.memory_space<vmem>>, vector<8x8xf32>
    %c0_85 = arith.constant 0 : index
    %c112 = arith.constant 112 : index
    %228 = vector.load %arg1[%c0_85, %c112] : memref<8x128xf32, #tpu.memory_space<vmem>>, vector<8x8xf32>
    %cst_86 = arith.constant dense<0.000000e+00> : vector<8xf32>
    %229 = vector.multi_reduction <add>, %227, %cst_86 [1] : vector<8x8xf32> to vector<8xf32>
    %230 = vector.shape_cast %229 : vector<8xf32> to vector<8x1xf32>
    %cst_87 = arith.constant dense<0.000000e+00> : vector<8xf32>
    %231 = vector.multi_reduction <add>, %228, %cst_87 [1] : vector<8x8xf32> to vector<8xf32>
    %232 = vector.shape_cast %231 : vector<8xf32> to vector<8x1xf32>
    %233 = arith.addf %230, %232 : vector<8x1xf32>
    %cst_88 = arith.constant 6.250000e-02 : f32
    %234 = vector.broadcast %cst_88 : f32 to vector<8x1xf32>
    %235 = arith.mulf %233, %234 : vector<8x1xf32>
    %236 = vector.broadcast %235 : vector<8x1xf32> to vector<8x8xf32>
    %237 = arith.subf %227, %236 : vector<8x8xf32>
    %238 = vector.broadcast %235 : vector<8x1xf32> to vector<8x8xf32>
    %239 = arith.subf %228, %238 : vector<8x8xf32>
    %240 = arith.mulf %237, %237 : vector<8x8xf32>
    %cst_89 = arith.constant dense<0.000000e+00> : vector<8xf32>
    %241 = vector.multi_reduction <add>, %240, %cst_89 [1] : vector<8x8xf32> to vector<8xf32>
    %242 = vector.shape_cast %241 : vector<8xf32> to vector<8x1xf32>
    %243 = arith.mulf %239, %239 : vector<8x8xf32>
    %cst_90 = arith.constant dense<0.000000e+00> : vector<8xf32>
    %244 = vector.multi_reduction <add>, %243, %cst_90 [1] : vector<8x8xf32> to vector<8xf32>
    %245 = vector.shape_cast %244 : vector<8xf32> to vector<8x1xf32>
    %246 = arith.addf %242, %245 : vector<8x1xf32>
    %cst_91 = arith.constant 6.250000e-02 : f32
    %247 = vector.broadcast %cst_91 : f32 to vector<8x1xf32>
    %248 = arith.mulf %246, %247 : vector<8x1xf32>
    %cst_92 = arith.constant 9.99999974E-6 : f32
    %249 = vector.broadcast %cst_92 : f32 to vector<8x1xf32>
    %250 = arith.addf %248, %249 : vector<8x1xf32>
    %251 = math.rsqrt %250 : vector<8x1xf32>
    %252 = vector.broadcast %251 : vector<8x1xf32> to vector<8x8xf32>
    %253 = arith.mulf %237, %252 : vector<8x8xf32>
    %254 = arith.truncf %253 : vector<8x8xf32> to vector<8x8xbf16>
    %255 = vector.broadcast %251 : vector<8x1xf32> to vector<8x8xf32>
    %256 = arith.mulf %239, %255 : vector<8x8xf32>
    %257 = arith.truncf %256 : vector<8x8xf32> to vector<8x8xbf16>
    %cst_93 = arith.constant dense<0.000000e+00> : vector<8x8xf32>
    %258 = tpu.matmul %254, %1, %cst_93 {dimension_numbers = #tpu.dot_dimension_numbers<[1], [0], [0], [1], [0, 0, 1, 1], [], []>} : vector<8x8xbf16>, vector<8x8xbf16>, vector<8x8xf32> -> vector<8x8xf32>
    %cst_94 = arith.constant dense<0.000000e+00> : vector<8x8xf32>
    %259 = tpu.matmul %257, %3, %cst_94 {dimension_numbers = #tpu.dot_dimension_numbers<[1], [0], [0], [1], [0, 0, 1, 1], [], []>} : vector<8x8xbf16>, vector<8x8xbf16>, vector<8x8xf32> -> vector<8x8xf32>
    %260 = arith.addf %258, %259 : vector<8x8xf32>
    %261 = vector.broadcast %4 : vector<1x8xf32> to vector<8x8xf32>
    %262 = arith.addf %260, %261 : vector<8x8xf32>
    %c0_95 = arith.constant 0 : index
    %c48_96 = arith.constant 48 : index
    %263 = vector.load %arg4[%c0_95, %c48_96] : memref<8x64xf32, #tpu.memory_space<vmem>>, vector<8x8xf32>
    tpu.vector_store %arg4[%c0_95, %c48_96], %262 {strides = array<i32>} : memref<8x64xf32, #tpu.memory_space<vmem>>, vector<8x8xf32>,
    %c0_97 = arith.constant 0 : index
    %c56 = arith.constant 56 : index
    %264 = vector.load %arg1[%c0_97, %c56] : memref<8x128xf32, #tpu.memory_space<vmem>>, vector<8x8xf32>
    %c0_98 = arith.constant 0 : index
    %c120 = arith.constant 120 : index
    %265 = vector.load %arg1[%c0_98, %c120] : memref<8x128xf32, #tpu.memory_space<vmem>>, vector<8x8xf32>
    %cst_99 = arith.constant dense<0.000000e+00> : vector<8xf32>
    %266 = vector.multi_reduction <add>, %264, %cst_99 [1] : vector<8x8xf32> to vector<8xf32>
    %267 = vector.shape_cast %266 : vector<8xf32> to vector<8x1xf32>
    %cst_100 = arith.constant dense<0.000000e+00> : vector<8xf32>
    %268 = vector.multi_reduction <add>, %265, %cst_100 [1] : vector<8x8xf32> to vector<8xf32>
    %269 = vector.shape_cast %268 : vector<8xf32> to vector<8x1xf32>
    %270 = arith.addf %267, %269 : vector<8x1xf32>
    %cst_101 = arith.constant 6.250000e-02 : f32
    %271 = vector.broadcast %cst_101 : f32 to vector<8x1xf32>
    %272 = arith.mulf %270, %271 : vector<8x1xf32>
    %273 = vector.broadcast %272 : vector<8x1xf32> to vector<8x8xf32>
    %274 = arith.subf %264, %273 : vector<8x8xf32>
    %275 = vector.broadcast %272 : vector<8x1xf32> to vector<8x8xf32>
    %276 = arith.subf %265, %275 : vector<8x8xf32>
    %277 = arith.mulf %274, %274 : vector<8x8xf32>
    %cst_102 = arith.constant dense<0.000000e+00> : vector<8xf32>
    %278 = vector.multi_reduction <add>, %277, %cst_102 [1] : vector<8x8xf32> to vector<8xf32>
    %279 = vector.shape_cast %278 : vector<8xf32> to vector<8x1xf32>
    %280 = arith.mulf %276, %276 : vector<8x8xf32>
    %cst_103 = arith.constant dense<0.000000e+00> : vector<8xf32>
    %281 = vector.multi_reduction <add>, %280, %cst_103 [1] : vector<8x8xf32> to vector<8xf32>
    %282 = vector.shape_cast %281 : vector<8xf32> to vector<8x1xf32>
    %283 = arith.addf %279, %282 : vector<8x1xf32>
    %cst_104 = arith.constant 6.250000e-02 : f32
    %284 = vector.broadcast %cst_104 : f32 to vector<8x1xf32>
    %285 = arith.mulf %283, %284 : vector<8x1xf32>
    %cst_105 = arith.constant 9.99999974E-6 : f32
    %286 = vector.broadcast %cst_105 : f32 to vector<8x1xf32>
    %287 = arith.addf %285, %286 : vector<8x1xf32>
    %288 = math.rsqrt %287 : vector<8x1xf32>
    %289 = vector.broadcast %288 : vector<8x1xf32> to vector<8x8xf32>
    %290 = arith.mulf %274, %289 : vector<8x8xf32>
    %291 = arith.truncf %290 : vector<8x8xf32> to vector<8x8xbf16>
    %292 = vector.broadcast %288 : vector<8x1xf32> to vector<8x8xf32>
    %293 = arith.mulf %276, %292 : vector<8x8xf32>
    %294 = arith.truncf %293 : vector<8x8xf32> to vector<8x8xbf16>
    %cst_106 = arith.constant dense<0.000000e+00> : vector<8x8xf32>
    %295 = tpu.matmul %291, %1, %cst_106 {dimension_numbers = #tpu.dot_dimension_numbers<[1], [0], [0], [1], [0, 0, 1, 1], [], []>} : vector<8x8xbf16>, vector<8x8xbf16>, vector<8x8xf32> -> vector<8x8xf32>
    %cst_107 = arith.constant dense<0.000000e+00> : vector<8x8xf32>
    %296 = tpu.matmul %294, %3, %cst_107 {dimension_numbers = #tpu.dot_dimension_numbers<[1], [0], [0], [1], [0, 0, 1, 1], [], []>} : vector<8x8xbf16>, vector<8x8xbf16>, vector<8x8xf32> -> vector<8x8xf32>
    %297 = arith.addf %295, %296 : vector<8x8xf32>
    %298 = vector.broadcast %4 : vector<1x8xf32> to vector<8x8xf32>
    %299 = arith.addf %297, %298 : vector<8x8xf32>
    %c0_108 = arith.constant 0 : index
    %c56_109 = arith.constant 56 : index
    %300 = vector.load %arg4[%c0_108, %c56_109] : memref<8x64xf32, #tpu.memory_space<vmem>>, vector<8x8xf32>
    tpu.vector_store %arg4[%c0_108, %c56_109], %299 {strides = array<i32>} : memref<8x64xf32, #tpu.memory_space<vmem>>, vector<8x8xf32>,
    return
  }
  func.func @transform_0(%arg0: i32) -> (i32, i32) {
    %c0_i32 = arith.constant 0 : i32
    %c0_i32_0 = arith.constant 0 : i32
    return %arg0, %c0_i32 : i32, i32
  }
  func.func @transform_1(%arg0: i32) -> (i32, i32, i32) {
    %c0_i32 = arith.constant 0 : i32
    %c0_i32_0 = arith.constant 0 : i32
    %c0_i32_1 = arith.constant 0 : i32
    %c0_i32_2 = arith.constant 0 : i32
    return %c0_i32, %c0_i32_0, %c0_i32_1 : i32, i32, i32
  }
  func.func @transform_2(%arg0: i32) -> (i32, i32) {
    %c0_i32 = arith.constant 0 : i32
    %c0_i32_0 = arith.constant 0 : i32
    %c0_i32_1 = arith.constant 0 : i32
    return %c0_i32, %c0_i32_0 : i32, i32
  }
  func.func @transform_3(%arg0: i32) -> (i32, i32) {
    %c0_i32 = arith.constant 0 : i32
    %c0_i32_0 = arith.constant 0 : i32
    return %arg0, %c0_i32 : i32, i32
  }
}

module attributes {stable_mosaic.version = 11 : i64} {
  func.func @_patch_merge_kernel(%arg0: i32, %arg1: memref<8x128xf32, #tpu.memory_space<vmem>>, %arg2: memref<2x8x8xbf16, #tpu.memory_space<vmem>>, %arg3: memref<1x8xf32, #tpu.memory_space<vmem>>, %arg4: memref<8x64xf32, #tpu.memory_space<vmem>>) attributes {dimension_semantics = [#tpu.dimension_semantics<parallel>], iteration_bounds = array<i64: 2>, scalar_prefetch = 0 : i64, scratch_operands = 0 : i64, tpu.core_type = #tpu.core_type<tc>, window_params = [{transform_indices = @transform_0, window_bounds = array<i64: 8, 128>}, {pipeline_mode = #tpu.pipeline_mode<synchronous>, transform_indices = @transform_1, window_bounds = array<i64: 2, 8, 8>}, {pipeline_mode = #tpu.pipeline_mode<synchronous>, transform_indices = @transform_2, window_bounds = array<i64: 1, 8>}, {transform_indices = @transform_3, window_bounds = array<i64: 8, 64>}]} {
    %c0 = arith.constant 0 : index
    %c0_0 = arith.constant 0 : index
    %c0_1 = arith.constant 0 : index
    %0 = vector.load %arg2[%c0, %c0_0, %c0_1] : memref<2x8x8xbf16, #tpu.memory_space<vmem>>, vector<1x8x8xbf16>
    %1 = vector.shape_cast %0 : vector<1x8x8xbf16> to vector<8x8xbf16>
    %c1 = arith.constant 1 : index
    %c0_2 = arith.constant 0 : index
    %c0_3 = arith.constant 0 : index
    %2 = vector.load %arg2[%c1, %c0_2, %c0_3] : memref<2x8x8xbf16, #tpu.memory_space<vmem>>, vector<1x8x8xbf16>
    %3 = vector.shape_cast %2 : vector<1x8x8xbf16> to vector<8x8xbf16>
    %c0_4 = arith.constant 0 : index
    %c0_5 = arith.constant 0 : index
    %4 = vector.load %arg3[%c0_4, %c0_5] : memref<1x8xf32, #tpu.memory_space<vmem>>, vector<1x8xf32>
    %c0_6 = arith.constant 0 : index
    %c0_7 = arith.constant 0 : index
    %5 = vector.load %arg1[%c0_6, %c0_7] : memref<8x128xf32, #tpu.memory_space<vmem>>, vector<8x8xf32>
    %c0_8 = arith.constant 0 : index
    %c64 = arith.constant 64 : index
    %6 = vector.load %arg1[%c0_8, %c64] : memref<8x128xf32, #tpu.memory_space<vmem>>, vector<8x8xf32>
    %cst = arith.constant dense<0.000000e+00> : vector<8xf32>
    %7 = vector.multi_reduction <add>, %5, %cst [1] : vector<8x8xf32> to vector<8xf32>
    %8 = vector.shape_cast %7 : vector<8xf32> to vector<8x1xf32>
    %cst_9 = arith.constant dense<0.000000e+00> : vector<8xf32>
    %9 = vector.multi_reduction <add>, %6, %cst_9 [1] : vector<8x8xf32> to vector<8xf32>
    %10 = vector.shape_cast %9 : vector<8xf32> to vector<8x1xf32>
    %11 = arith.addf %8, %10 : vector<8x1xf32>
    %cst_10 = arith.constant 6.250000e-02 : f32
    %12 = vector.broadcast %cst_10 : f32 to vector<8x1xf32>
    %13 = arith.mulf %11, %12 : vector<8x1xf32>
    %14 = vector.broadcast %13 : vector<8x1xf32> to vector<8x8xf32>
    %15 = arith.subf %5, %14 : vector<8x8xf32>
    %16 = vector.broadcast %13 : vector<8x1xf32> to vector<8x8xf32>
    %17 = arith.subf %6, %16 : vector<8x8xf32>
    %18 = arith.mulf %15, %15 : vector<8x8xf32>
    %cst_11 = arith.constant dense<0.000000e+00> : vector<8xf32>
    %19 = vector.multi_reduction <add>, %18, %cst_11 [1] : vector<8x8xf32> to vector<8xf32>
    %20 = vector.shape_cast %19 : vector<8xf32> to vector<8x1xf32>
    %21 = arith.mulf %17, %17 : vector<8x8xf32>
    %cst_12 = arith.constant dense<0.000000e+00> : vector<8xf32>
    %22 = vector.multi_reduction <add>, %21, %cst_12 [1] : vector<8x8xf32> to vector<8xf32>
    %23 = vector.shape_cast %22 : vector<8xf32> to vector<8x1xf32>
    %24 = arith.addf %20, %23 : vector<8x1xf32>
    %cst_13 = arith.constant 6.250000e-02 : f32
    %25 = vector.broadcast %cst_13 : f32 to vector<8x1xf32>
    %26 = arith.mulf %24, %25 : vector<8x1xf32>
    %cst_14 = arith.constant 9.99999974E-6 : f32
    %27 = vector.broadcast %cst_14 : f32 to vector<8x1xf32>
    %28 = arith.addf %26, %27 : vector<8x1xf32>
    %29 = math.rsqrt %28 : vector<8x1xf32>
    %30 = vector.broadcast %29 : vector<8x1xf32> to vector<8x8xf32>
    %31 = arith.mulf %15, %30 : vector<8x8xf32>
    %32 = arith.truncf %31 : vector<8x8xf32> to vector<8x8xbf16>
    %33 = vector.broadcast %29 : vector<8x1xf32> to vector<8x8xf32>
    %34 = arith.mulf %17, %33 : vector<8x8xf32>
    %35 = arith.truncf %34 : vector<8x8xf32> to vector<8x8xbf16>
    %cst_15 = arith.constant dense<0.000000e+00> : vector<8x8xf32>
    %36 = tpu.matmul %32, %1, %cst_15 {dimension_numbers = #tpu.dot_dimension_numbers<[1], [0], [0], [1], [0, 0, 1, 1], [], []>} : vector<8x8xbf16>, vector<8x8xbf16>, vector<8x8xf32> -> vector<8x8xf32>
    %cst_16 = arith.constant dense<0.000000e+00> : vector<8x8xf32>
    %37 = tpu.matmul %35, %3, %cst_16 {dimension_numbers = #tpu.dot_dimension_numbers<[1], [0], [0], [1], [0, 0, 1, 1], [], []>} : vector<8x8xbf16>, vector<8x8xbf16>, vector<8x8xf32> -> vector<8x8xf32>
    %38 = arith.addf %36, %37 : vector<8x8xf32>
    %39 = vector.broadcast %4 : vector<1x8xf32> to vector<8x8xf32>
    %40 = arith.addf %38, %39 : vector<8x8xf32>
    %c0_17 = arith.constant 0 : index
    %c0_18 = arith.constant 0 : index
    %41 = vector.load %arg4[%c0_17, %c0_18] : memref<8x64xf32, #tpu.memory_space<vmem>>, vector<8x8xf32>
    tpu.vector_store %arg4[%c0_17, %c0_18], %40 {strides = array<i32>} : memref<8x64xf32, #tpu.memory_space<vmem>>, vector<8x8xf32>,
    %c0_19 = arith.constant 0 : index
    %c8 = arith.constant 8 : index
    %42 = vector.load %arg1[%c0_19, %c8] : memref<8x128xf32, #tpu.memory_space<vmem>>, vector<8x8xf32>
    %c0_20 = arith.constant 0 : index
    %c72 = arith.constant 72 : index
    %43 = vector.load %arg1[%c0_20, %c72] : memref<8x128xf32, #tpu.memory_space<vmem>>, vector<8x8xf32>
    %cst_21 = arith.constant dense<0.000000e+00> : vector<8xf32>
    %44 = vector.multi_reduction <add>, %42, %cst_21 [1] : vector<8x8xf32> to vector<8xf32>
    %45 = vector.shape_cast %44 : vector<8xf32> to vector<8x1xf32>
    %cst_22 = arith.constant dense<0.000000e+00> : vector<8xf32>
    %46 = vector.multi_reduction <add>, %43, %cst_22 [1] : vector<8x8xf32> to vector<8xf32>
    %47 = vector.shape_cast %46 : vector<8xf32> to vector<8x1xf32>
    %48 = arith.addf %45, %47 : vector<8x1xf32>
    %cst_23 = arith.constant 6.250000e-02 : f32
    %49 = vector.broadcast %cst_23 : f32 to vector<8x1xf32>
    %50 = arith.mulf %48, %49 : vector<8x1xf32>
    %51 = vector.broadcast %50 : vector<8x1xf32> to vector<8x8xf32>
    %52 = arith.subf %42, %51 : vector<8x8xf32>
    %53 = vector.broadcast %50 : vector<8x1xf32> to vector<8x8xf32>
    %54 = arith.subf %43, %53 : vector<8x8xf32>
    %55 = arith.mulf %52, %52 : vector<8x8xf32>
    %cst_24 = arith.constant dense<0.000000e+00> : vector<8xf32>
    %56 = vector.multi_reduction <add>, %55, %cst_24 [1] : vector<8x8xf32> to vector<8xf32>
    %57 = vector.shape_cast %56 : vector<8xf32> to vector<8x1xf32>
    %58 = arith.mulf %54, %54 : vector<8x8xf32>
    %cst_25 = arith.constant dense<0.000000e+00> : vector<8xf32>
    %59 = vector.multi_reduction <add>, %58, %cst_25 [1] : vector<8x8xf32> to vector<8xf32>
    %60 = vector.shape_cast %59 : vector<8xf32> to vector<8x1xf32>
    %61 = arith.addf %57, %60 : vector<8x1xf32>
    %cst_26 = arith.constant 6.250000e-02 : f32
    %62 = vector.broadcast %cst_26 : f32 to vector<8x1xf32>
    %63 = arith.mulf %61, %62 : vector<8x1xf32>
    %cst_27 = arith.constant 9.99999974E-6 : f32
    %64 = vector.broadcast %cst_27 : f32 to vector<8x1xf32>
    %65 = arith.addf %63, %64 : vector<8x1xf32>
    %66 = math.rsqrt %65 : vector<8x1xf32>
    %67 = vector.broadcast %66 : vector<8x1xf32> to vector<8x8xf32>
    %68 = arith.mulf %52, %67 : vector<8x8xf32>
    %69 = arith.truncf %68 : vector<8x8xf32> to vector<8x8xbf16>
    %70 = vector.broadcast %66 : vector<8x1xf32> to vector<8x8xf32>
    %71 = arith.mulf %54, %70 : vector<8x8xf32>
    %72 = arith.truncf %71 : vector<8x8xf32> to vector<8x8xbf16>
    %cst_28 = arith.constant dense<0.000000e+00> : vector<8x8xf32>
    %73 = tpu.matmul %69, %1, %cst_28 {dimension_numbers = #tpu.dot_dimension_numbers<[1], [0], [0], [1], [0, 0, 1, 1], [], []>} : vector<8x8xbf16>, vector<8x8xbf16>, vector<8x8xf32> -> vector<8x8xf32>
    %cst_29 = arith.constant dense<0.000000e+00> : vector<8x8xf32>
    %74 = tpu.matmul %72, %3, %cst_29 {dimension_numbers = #tpu.dot_dimension_numbers<[1], [0], [0], [1], [0, 0, 1, 1], [], []>} : vector<8x8xbf16>, vector<8x8xbf16>, vector<8x8xf32> -> vector<8x8xf32>
    %75 = arith.addf %73, %74 : vector<8x8xf32>
    %76 = vector.broadcast %4 : vector<1x8xf32> to vector<8x8xf32>
    %77 = arith.addf %75, %76 : vector<8x8xf32>
    %c0_30 = arith.constant 0 : index
    %c8_31 = arith.constant 8 : index
    %78 = vector.load %arg4[%c0_30, %c8_31] : memref<8x64xf32, #tpu.memory_space<vmem>>, vector<8x8xf32>
    tpu.vector_store %arg4[%c0_30, %c8_31], %77 {strides = array<i32>} : memref<8x64xf32, #tpu.memory_space<vmem>>, vector<8x8xf32>,
    %c0_32 = arith.constant 0 : index
    %c16 = arith.constant 16 : index
    %79 = vector.load %arg1[%c0_32, %c16] : memref<8x128xf32, #tpu.memory_space<vmem>>, vector<8x8xf32>
    %c0_33 = arith.constant 0 : index
    %c80 = arith.constant 80 : index
    %80 = vector.load %arg1[%c0_33, %c80] : memref<8x128xf32, #tpu.memory_space<vmem>>, vector<8x8xf32>
    %cst_34 = arith.constant dense<0.000000e+00> : vector<8xf32>
    %81 = vector.multi_reduction <add>, %79, %cst_34 [1] : vector<8x8xf32> to vector<8xf32>
    %82 = vector.shape_cast %81 : vector<8xf32> to vector<8x1xf32>
    %cst_35 = arith.constant dense<0.000000e+00> : vector<8xf32>
    %83 = vector.multi_reduction <add>, %80, %cst_35 [1] : vector<8x8xf32> to vector<8xf32>
    %84 = vector.shape_cast %83 : vector<8xf32> to vector<8x1xf32>
    %85 = arith.addf %82, %84 : vector<8x1xf32>
    %cst_36 = arith.constant 6.250000e-02 : f32
    %86 = vector.broadcast %cst_36 : f32 to vector<8x1xf32>
    %87 = arith.mulf %85, %86 : vector<8x1xf32>
    %88 = vector.broadcast %87 : vector<8x1xf32> to vector<8x8xf32>
    %89 = arith.subf %79, %88 : vector<8x8xf32>
    %90 = vector.broadcast %87 : vector<8x1xf32> to vector<8x8xf32>
    %91 = arith.subf %80, %90 : vector<8x8xf32>
    %92 = arith.mulf %89, %89 : vector<8x8xf32>
    %cst_37 = arith.constant dense<0.000000e+00> : vector<8xf32>
    %93 = vector.multi_reduction <add>, %92, %cst_37 [1] : vector<8x8xf32> to vector<8xf32>
    %94 = vector.shape_cast %93 : vector<8xf32> to vector<8x1xf32>
    %95 = arith.mulf %91, %91 : vector<8x8xf32>
    %cst_38 = arith.constant dense<0.000000e+00> : vector<8xf32>
    %96 = vector.multi_reduction <add>, %95, %cst_38 [1] : vector<8x8xf32> to vector<8xf32>
    %97 = vector.shape_cast %96 : vector<8xf32> to vector<8x1xf32>
    %98 = arith.addf %94, %97 : vector<8x1xf32>
    %cst_39 = arith.constant 6.250000e-02 : f32
    %99 = vector.broadcast %cst_39 : f32 to vector<8x1xf32>
    %100 = arith.mulf %98, %99 : vector<8x1xf32>
    %cst_40 = arith.constant 9.99999974E-6 : f32
    %101 = vector.broadcast %cst_40 : f32 to vector<8x1xf32>
    %102 = arith.addf %100, %101 : vector<8x1xf32>
    %103 = math.rsqrt %102 : vector<8x1xf32>
    %104 = vector.broadcast %103 : vector<8x1xf32> to vector<8x8xf32>
    %105 = arith.mulf %89, %104 : vector<8x8xf32>
    %106 = arith.truncf %105 : vector<8x8xf32> to vector<8x8xbf16>
    %107 = vector.broadcast %103 : vector<8x1xf32> to vector<8x8xf32>
    %108 = arith.mulf %91, %107 : vector<8x8xf32>
    %109 = arith.truncf %108 : vector<8x8xf32> to vector<8x8xbf16>
    %cst_41 = arith.constant dense<0.000000e+00> : vector<8x8xf32>
    %110 = tpu.matmul %106, %1, %cst_41 {dimension_numbers = #tpu.dot_dimension_numbers<[1], [0], [0], [1], [0, 0, 1, 1], [], []>} : vector<8x8xbf16>, vector<8x8xbf16>, vector<8x8xf32> -> vector<8x8xf32>
    %cst_42 = arith.constant dense<0.000000e+00> : vector<8x8xf32>
    %111 = tpu.matmul %109, %3, %cst_42 {dimension_numbers = #tpu.dot_dimension_numbers<[1], [0], [0], [1], [0, 0, 1, 1], [], []>} : vector<8x8xbf16>, vector<8x8xbf16>, vector<8x8xf32> -> vector<8x8xf32>
    %112 = arith.addf %110, %111 : vector<8x8xf32>
    %113 = vector.broadcast %4 : vector<1x8xf32> to vector<8x8xf32>
    %114 = arith.addf %112, %113 : vector<8x8xf32>
    %c0_43 = arith.constant 0 : index
    %c16_44 = arith.constant 16 : index
    %115 = vector.load %arg4[%c0_43, %c16_44] : memref<8x64xf32, #tpu.memory_space<vmem>>, vector<8x8xf32>
    tpu.vector_store %arg4[%c0_43, %c16_44], %114 {strides = array<i32>} : memref<8x64xf32, #tpu.memory_space<vmem>>, vector<8x8xf32>,
    %c0_45 = arith.constant 0 : index
    %c24 = arith.constant 24 : index
    %116 = vector.load %arg1[%c0_45, %c24] : memref<8x128xf32, #tpu.memory_space<vmem>>, vector<8x8xf32>
    %c0_46 = arith.constant 0 : index
    %c88 = arith.constant 88 : index
    %117 = vector.load %arg1[%c0_46, %c88] : memref<8x128xf32, #tpu.memory_space<vmem>>, vector<8x8xf32>
    %cst_47 = arith.constant dense<0.000000e+00> : vector<8xf32>
    %118 = vector.multi_reduction <add>, %116, %cst_47 [1] : vector<8x8xf32> to vector<8xf32>
    %119 = vector.shape_cast %118 : vector<8xf32> to vector<8x1xf32>
    %cst_48 = arith.constant dense<0.000000e+00> : vector<8xf32>
    %120 = vector.multi_reduction <add>, %117, %cst_48 [1] : vector<8x8xf32> to vector<8xf32>
    %121 = vector.shape_cast %120 : vector<8xf32> to vector<8x1xf32>
    %122 = arith.addf %119, %121 : vector<8x1xf32>
    %cst_49 = arith.constant 6.250000e-02 : f32
    %123 = vector.broadcast %cst_49 : f32 to vector<8x1xf32>
    %124 = arith.mulf %122, %123 : vector<8x1xf32>
    %125 = vector.broadcast %124 : vector<8x1xf32> to vector<8x8xf32>
    %126 = arith.subf %116, %125 : vector<8x8xf32>
    %127 = vector.broadcast %124 : vector<8x1xf32> to vector<8x8xf32>
    %128 = arith.subf %117, %127 : vector<8x8xf32>
    %129 = arith.mulf %126, %126 : vector<8x8xf32>
    %cst_50 = arith.constant dense<0.000000e+00> : vector<8xf32>
    %130 = vector.multi_reduction <add>, %129, %cst_50 [1] : vector<8x8xf32> to vector<8xf32>
    %131 = vector.shape_cast %130 : vector<8xf32> to vector<8x1xf32>
    %132 = arith.mulf %128, %128 : vector<8x8xf32>
    %cst_51 = arith.constant dense<0.000000e+00> : vector<8xf32>
    %133 = vector.multi_reduction <add>, %132, %cst_51 [1] : vector<8x8xf32> to vector<8xf32>
    %134 = vector.shape_cast %133 : vector<8xf32> to vector<8x1xf32>
    %135 = arith.addf %131, %134 : vector<8x1xf32>
    %cst_52 = arith.constant 6.250000e-02 : f32
    %136 = vector.broadcast %cst_52 : f32 to vector<8x1xf32>
    %137 = arith.mulf %135, %136 : vector<8x1xf32>
    %cst_53 = arith.constant 9.99999974E-6 : f32
    %138 = vector.broadcast %cst_53 : f32 to vector<8x1xf32>
    %139 = arith.addf %137, %138 : vector<8x1xf32>
    %140 = math.rsqrt %139 : vector<8x1xf32>
    %141 = vector.broadcast %140 : vector<8x1xf32> to vector<8x8xf32>
    %142 = arith.mulf %126, %141 : vector<8x8xf32>
    %143 = arith.truncf %142 : vector<8x8xf32> to vector<8x8xbf16>
    %144 = vector.broadcast %140 : vector<8x1xf32> to vector<8x8xf32>
    %145 = arith.mulf %128, %144 : vector<8x8xf32>
    %146 = arith.truncf %145 : vector<8x8xf32> to vector<8x8xbf16>
    %cst_54 = arith.constant dense<0.000000e+00> : vector<8x8xf32>
    %147 = tpu.matmul %143, %1, %cst_54 {dimension_numbers = #tpu.dot_dimension_numbers<[1], [0], [0], [1], [0, 0, 1, 1], [], []>} : vector<8x8xbf16>, vector<8x8xbf16>, vector<8x8xf32> -> vector<8x8xf32>
    %cst_55 = arith.constant dense<0.000000e+00> : vector<8x8xf32>
    %148 = tpu.matmul %146, %3, %cst_55 {dimension_numbers = #tpu.dot_dimension_numbers<[1], [0], [0], [1], [0, 0, 1, 1], [], []>} : vector<8x8xbf16>, vector<8x8xbf16>, vector<8x8xf32> -> vector<8x8xf32>
    %149 = arith.addf %147, %148 : vector<8x8xf32>
    %150 = vector.broadcast %4 : vector<1x8xf32> to vector<8x8xf32>
    %151 = arith.addf %149, %150 : vector<8x8xf32>
    %c0_56 = arith.constant 0 : index
    %c24_57 = arith.constant 24 : index
    %152 = vector.load %arg4[%c0_56, %c24_57] : memref<8x64xf32, #tpu.memory_space<vmem>>, vector<8x8xf32>
    tpu.vector_store %arg4[%c0_56, %c24_57], %151 {strides = array<i32>} : memref<8x64xf32, #tpu.memory_space<vmem>>, vector<8x8xf32>,
    %c0_58 = arith.constant 0 : index
    %c32 = arith.constant 32 : index
    %153 = vector.load %arg1[%c0_58, %c32] : memref<8x128xf32, #tpu.memory_space<vmem>>, vector<8x8xf32>
    %c0_59 = arith.constant 0 : index
    %c96 = arith.constant 96 : index
    %154 = vector.load %arg1[%c0_59, %c96] : memref<8x128xf32, #tpu.memory_space<vmem>>, vector<8x8xf32>
    %cst_60 = arith.constant dense<0.000000e+00> : vector<8xf32>
    %155 = vector.multi_reduction <add>, %153, %cst_60 [1] : vector<8x8xf32> to vector<8xf32>
    %156 = vector.shape_cast %155 : vector<8xf32> to vector<8x1xf32>
    %cst_61 = arith.constant dense<0.000000e+00> : vector<8xf32>
    %157 = vector.multi_reduction <add>, %154, %cst_61 [1] : vector<8x8xf32> to vector<8xf32>
    %158 = vector.shape_cast %157 : vector<8xf32> to vector<8x1xf32>
    %159 = arith.addf %156, %158 : vector<8x1xf32>
    %cst_62 = arith.constant 6.250000e-02 : f32
    %160 = vector.broadcast %cst_62 : f32 to vector<8x1xf32>
    %161 = arith.mulf %159, %160 : vector<8x1xf32>
    %162 = vector.broadcast %161 : vector<8x1xf32> to vector<8x8xf32>
    %163 = arith.subf %153, %162 : vector<8x8xf32>
    %164 = vector.broadcast %161 : vector<8x1xf32> to vector<8x8xf32>
    %165 = arith.subf %154, %164 : vector<8x8xf32>
    %166 = arith.mulf %163, %163 : vector<8x8xf32>
    %cst_63 = arith.constant dense<0.000000e+00> : vector<8xf32>
    %167 = vector.multi_reduction <add>, %166, %cst_63 [1] : vector<8x8xf32> to vector<8xf32>
    %168 = vector.shape_cast %167 : vector<8xf32> to vector<8x1xf32>
    %169 = arith.mulf %165, %165 : vector<8x8xf32>
    %cst_64 = arith.constant dense<0.000000e+00> : vector<8xf32>
    %170 = vector.multi_reduction <add>, %169, %cst_64 [1] : vector<8x8xf32> to vector<8xf32>
    %171 = vector.shape_cast %170 : vector<8xf32> to vector<8x1xf32>
    %172 = arith.addf %168, %171 : vector<8x1xf32>
    %cst_65 = arith.constant 6.250000e-02 : f32
    %173 = vector.broadcast %cst_65 : f32 to vector<8x1xf32>
    %174 = arith.mulf %172, %173 : vector<8x1xf32>
    %cst_66 = arith.constant 9.99999974E-6 : f32
    %175 = vector.broadcast %cst_66 : f32 to vector<8x1xf32>
    %176 = arith.addf %174, %175 : vector<8x1xf32>
    %177 = math.rsqrt %176 : vector<8x1xf32>
    %178 = vector.broadcast %177 : vector<8x1xf32> to vector<8x8xf32>
    %179 = arith.mulf %163, %178 : vector<8x8xf32>
    %180 = arith.truncf %179 : vector<8x8xf32> to vector<8x8xbf16>
    %181 = vector.broadcast %177 : vector<8x1xf32> to vector<8x8xf32>
    %182 = arith.mulf %165, %181 : vector<8x8xf32>
    %183 = arith.truncf %182 : vector<8x8xf32> to vector<8x8xbf16>
    %cst_67 = arith.constant dense<0.000000e+00> : vector<8x8xf32>
    %184 = tpu.matmul %180, %1, %cst_67 {dimension_numbers = #tpu.dot_dimension_numbers<[1], [0], [0], [1], [0, 0, 1, 1], [], []>} : vector<8x8xbf16>, vector<8x8xbf16>, vector<8x8xf32> -> vector<8x8xf32>
    %cst_68 = arith.constant dense<0.000000e+00> : vector<8x8xf32>
    %185 = tpu.matmul %183, %3, %cst_68 {dimension_numbers = #tpu.dot_dimension_numbers<[1], [0], [0], [1], [0, 0, 1, 1], [], []>} : vector<8x8xbf16>, vector<8x8xbf16>, vector<8x8xf32> -> vector<8x8xf32>
    %186 = arith.addf %184, %185 : vector<8x8xf32>
    %187 = vector.broadcast %4 : vector<1x8xf32> to vector<8x8xf32>
    %188 = arith.addf %186, %187 : vector<8x8xf32>
    %c0_69 = arith.constant 0 : index
    %c32_70 = arith.constant 32 : index
    %189 = vector.load %arg4[%c0_69, %c32_70] : memref<8x64xf32, #tpu.memory_space<vmem>>, vector<8x8xf32>
    tpu.vector_store %arg4[%c0_69, %c32_70], %188 {strides = array<i32>} : memref<8x64xf32, #tpu.memory_space<vmem>>, vector<8x8xf32>,
    %c0_71 = arith.constant 0 : index
    %c40 = arith.constant 40 : index
    %190 = vector.load %arg1[%c0_71, %c40] : memref<8x128xf32, #tpu.memory_space<vmem>>, vector<8x8xf32>
    %c0_72 = arith.constant 0 : index
    %c104 = arith.constant 104 : index
    %191 = vector.load %arg1[%c0_72, %c104] : memref<8x128xf32, #tpu.memory_space<vmem>>, vector<8x8xf32>
    %cst_73 = arith.constant dense<0.000000e+00> : vector<8xf32>
    %192 = vector.multi_reduction <add>, %190, %cst_73 [1] : vector<8x8xf32> to vector<8xf32>
    %193 = vector.shape_cast %192 : vector<8xf32> to vector<8x1xf32>
    %cst_74 = arith.constant dense<0.000000e+00> : vector<8xf32>
    %194 = vector.multi_reduction <add>, %191, %cst_74 [1] : vector<8x8xf32> to vector<8xf32>
    %195 = vector.shape_cast %194 : vector<8xf32> to vector<8x1xf32>
    %196 = arith.addf %193, %195 : vector<8x1xf32>
    %cst_75 = arith.constant 6.250000e-02 : f32
    %197 = vector.broadcast %cst_75 : f32 to vector<8x1xf32>
    %198 = arith.mulf %196, %197 : vector<8x1xf32>
    %199 = vector.broadcast %198 : vector<8x1xf32> to vector<8x8xf32>
    %200 = arith.subf %190, %199 : vector<8x8xf32>
    %201 = vector.broadcast %198 : vector<8x1xf32> to vector<8x8xf32>
    %202 = arith.subf %191, %201 : vector<8x8xf32>
    %203 = arith.mulf %200, %200 : vector<8x8xf32>
    %cst_76 = arith.constant dense<0.000000e+00> : vector<8xf32>
    %204 = vector.multi_reduction <add>, %203, %cst_76 [1] : vector<8x8xf32> to vector<8xf32>
    %205 = vector.shape_cast %204 : vector<8xf32> to vector<8x1xf32>
    %206 = arith.mulf %202, %202 : vector<8x8xf32>
    %cst_77 = arith.constant dense<0.000000e+00> : vector<8xf32>
    %207 = vector.multi_reduction <add>, %206, %cst_77 [1] : vector<8x8xf32> to vector<8xf32>
    %208 = vector.shape_cast %207 : vector<8xf32> to vector<8x1xf32>
    %209 = arith.addf %205, %208 : vector<8x1xf32>
    %cst_78 = arith.constant 6.250000e-02 : f32
    %210 = vector.broadcast %cst_78 : f32 to vector<8x1xf32>
    %211 = arith.mulf %209, %210 : vector<8x1xf32>
    %cst_79 = arith.constant 9.99999974E-6 : f32
    %212 = vector.broadcast %cst_79 : f32 to vector<8x1xf32>
    %213 = arith.addf %211, %212 : vector<8x1xf32>
    %214 = math.rsqrt %213 : vector<8x1xf32>
    %215 = vector.broadcast %214 : vector<8x1xf32> to vector<8x8xf32>
    %216 = arith.mulf %200, %215 : vector<8x8xf32>
    %217 = arith.truncf %216 : vector<8x8xf32> to vector<8x8xbf16>
    %218 = vector.broadcast %214 : vector<8x1xf32> to vector<8x8xf32>
    %219 = arith.mulf %202, %218 : vector<8x8xf32>
    %220 = arith.truncf %219 : vector<8x8xf32> to vector<8x8xbf16>
    %cst_80 = arith.constant dense<0.000000e+00> : vector<8x8xf32>
    %221 = tpu.matmul %217, %1, %cst_80 {dimension_numbers = #tpu.dot_dimension_numbers<[1], [0], [0], [1], [0, 0, 1, 1], [], []>} : vector<8x8xbf16>, vector<8x8xbf16>, vector<8x8xf32> -> vector<8x8xf32>
    %cst_81 = arith.constant dense<0.000000e+00> : vector<8x8xf32>
    %222 = tpu.matmul %220, %3, %cst_81 {dimension_numbers = #tpu.dot_dimension_numbers<[1], [0], [0], [1], [0, 0, 1, 1], [], []>} : vector<8x8xbf16>, vector<8x8xbf16>, vector<8x8xf32> -> vector<8x8xf32>
    %223 = arith.addf %221, %222 : vector<8x8xf32>
    %224 = vector.broadcast %4 : vector<1x8xf32> to vector<8x8xf32>
    %225 = arith.addf %223, %224 : vector<8x8xf32>
    %c0_82 = arith.constant 0 : index
    %c40_83 = arith.constant 40 : index
    %226 = vector.load %arg4[%c0_82, %c40_83] : memref<8x64xf32, #tpu.memory_space<vmem>>, vector<8x8xf32>
    tpu.vector_store %arg4[%c0_82, %c40_83], %225 {strides = array<i32>} : memref<8x64xf32, #tpu.memory_space<vmem>>, vector<8x8xf32>,
    %c0_84 = arith.constant 0 : index
    %c48 = arith.constant 48 : index
    %227 = vector.load %arg1[%c0_84, %c48] : memref<8x128xf32, #tpu.memory_space<vmem>>, vector<8x8xf32>
    %c0_85 = arith.constant 0 : index
    %c112 = arith.constant 112 : index
    %228 = vector.load %arg1[%c0_85, %c112] : memref<8x128xf32, #tpu.memory_space<vmem>>, vector<8x8xf32>
    %cst_86 = arith.constant dense<0.000000e+00> : vector<8xf32>
    %229 = vector.multi_reduction <add>, %227, %cst_86 [1] : vector<8x8xf32> to vector<8xf32>
    %230 = vector.shape_cast %229 : vector<8xf32> to vector<8x1xf32>
    %cst_87 = arith.constant dense<0.000000e+00> : vector<8xf32>
    %231 = vector.multi_reduction <add>, %228, %cst_87 [1] : vector<8x8xf32> to vector<8xf32>
    %232 = vector.shape_cast %231 : vector<8xf32> to vector<8x1xf32>
    %233 = arith.addf %230, %232 : vector<8x1xf32>
    %cst_88 = arith.constant 6.250000e-02 : f32
    %234 = vector.broadcast %cst_88 : f32 to vector<8x1xf32>
    %235 = arith.mulf %233, %234 : vector<8x1xf32>
    %236 = vector.broadcast %235 : vector<8x1xf32> to vector<8x8xf32>
    %237 = arith.subf %227, %236 : vector<8x8xf32>
    %238 = vector.broadcast %235 : vector<8x1xf32> to vector<8x8xf32>
    %239 = arith.subf %228, %238 : vector<8x8xf32>
    %240 = arith.mulf %237, %237 : vector<8x8xf32>
    %cst_89 = arith.constant dense<0.000000e+00> : vector<8xf32>
    %241 = vector.multi_reduction <add>, %240, %cst_89 [1] : vector<8x8xf32> to vector<8xf32>
    %242 = vector.shape_cast %241 : vector<8xf32> to vector<8x1xf32>
    %243 = arith.mulf %239, %239 : vector<8x8xf32>
    %cst_90 = arith.constant dense<0.000000e+00> : vector<8xf32>
    %244 = vector.multi_reduction <add>, %243, %cst_90 [1] : vector<8x8xf32> to vector<8xf32>
    %245 = vector.shape_cast %244 : vector<8xf32> to vector<8x1xf32>
    %246 = arith.addf %242, %245 : vector<8x1xf32>
    %cst_91 = arith.constant 6.250000e-02 : f32
    %247 = vector.broadcast %cst_91 : f32 to vector<8x1xf32>
    %248 = arith.mulf %246, %247 : vector<8x1xf32>
    %cst_92 = arith.constant 9.99999974E-6 : f32
    %249 = vector.broadcast %cst_92 : f32 to vector<8x1xf32>
    %250 = arith.addf %248, %249 : vector<8x1xf32>
    %251 = math.rsqrt %250 : vector<8x1xf32>
    %252 = vector.broadcast %251 : vector<8x1xf32> to vector<8x8xf32>
    %253 = arith.mulf %237, %252 : vector<8x8xf32>
    %254 = arith.truncf %253 : vector<8x8xf32> to vector<8x8xbf16>
    %255 = vector.broadcast %251 : vector<8x1xf32> to vector<8x8xf32>
    %256 = arith.mulf %239, %255 : vector<8x8xf32>
    %257 = arith.truncf %256 : vector<8x8xf32> to vector<8x8xbf16>
    %cst_93 = arith.constant dense<0.000000e+00> : vector<8x8xf32>
    %258 = tpu.matmul %254, %1, %cst_93 {dimension_numbers = #tpu.dot_dimension_numbers<[1], [0], [0], [1], [0, 0, 1, 1], [], []>} : vector<8x8xbf16>, vector<8x8xbf16>, vector<8x8xf32> -> vector<8x8xf32>
    %cst_94 = arith.constant dense<0.000000e+00> : vector<8x8xf32>
    %259 = tpu.matmul %257, %3, %cst_94 {dimension_numbers = #tpu.dot_dimension_numbers<[1], [0], [0], [1], [0, 0, 1, 1], [], []>} : vector<8x8xbf16>, vector<8x8xbf16>, vector<8x8xf32> -> vector<8x8xf32>
    %260 = arith.addf %258, %259 : vector<8x8xf32>
    %261 = vector.broadcast %4 : vector<1x8xf32> to vector<8x8xf32>
    %262 = arith.addf %260, %261 : vector<8x8xf32>
    %c0_95 = arith.constant 0 : index
    %c48_96 = arith.constant 48 : index
    %263 = vector.load %arg4[%c0_95, %c48_96] : memref<8x64xf32, #tpu.memory_space<vmem>>, vector<8x8xf32>
    tpu.vector_store %arg4[%c0_95, %c48_96], %262 {strides = array<i32>} : memref<8x64xf32, #tpu.memory_space<vmem>>, vector<8x8xf32>,
    %c0_97 = arith.constant 0 : index
    %c56 = arith.constant 56 : index
    %264 = vector.load %arg1[%c0_97, %c56] : memref<8x128xf32, #tpu.memory_space<vmem>>, vector<8x8xf32>
    %c0_98 = arith.constant 0 : index
    %c120 = arith.constant 120 : index
    %265 = vector.load %arg1[%c0_98, %c120] : memref<8x128xf32, #tpu.memory_space<vmem>>, vector<8x8xf32>
    %cst_99 = arith.constant dense<0.000000e+00> : vector<8xf32>
    %266 = vector.multi_reduction <add>, %264, %cst_99 [1] : vector<8x8xf32> to vector<8xf32>
    %267 = vector.shape_cast %266 : vector<8xf32> to vector<8x1xf32>
    %cst_100 = arith.constant dense<0.000000e+00> : vector<8xf32>
    %268 = vector.multi_reduction <add>, %265, %cst_100 [1] : vector<8x8xf32> to vector<8xf32>
    %269 = vector.shape_cast %268 : vector<8xf32> to vector<8x1xf32>
    %270 = arith.addf %267, %269 : vector<8x1xf32>
    %cst_101 = arith.constant 6.250000e-02 : f32
    %271 = vector.broadcast %cst_101 : f32 to vector<8x1xf32>
    %272 = arith.mulf %270, %271 : vector<8x1xf32>
    %273 = vector.broadcast %272 : vector<8x1xf32> to vector<8x8xf32>
    %274 = arith.subf %264, %273 : vector<8x8xf32>
    %275 = vector.broadcast %272 : vector<8x1xf32> to vector<8x8xf32>
    %276 = arith.subf %265, %275 : vector<8x8xf32>
    %277 = arith.mulf %274, %274 : vector<8x8xf32>
    %cst_102 = arith.constant dense<0.000000e+00> : vector<8xf32>
    %278 = vector.multi_reduction <add>, %277, %cst_102 [1] : vector<8x8xf32> to vector<8xf32>
    %279 = vector.shape_cast %278 : vector<8xf32> to vector<8x1xf32>
    %280 = arith.mulf %276, %276 : vector<8x8xf32>
    %cst_103 = arith.constant dense<0.000000e+00> : vector<8xf32>
    %281 = vector.multi_reduction <add>, %280, %cst_103 [1] : vector<8x8xf32> to vector<8xf32>
    %282 = vector.shape_cast %281 : vector<8xf32> to vector<8x1xf32>
    %283 = arith.addf %279, %282 : vector<8x1xf32>
    %cst_104 = arith.constant 6.250000e-02 : f32
    %284 = vector.broadcast %cst_104 : f32 to vector<8x1xf32>
    %285 = arith.mulf %283, %284 : vector<8x1xf32>
    %cst_105 = arith.constant 9.99999974E-6 : f32
    %286 = vector.broadcast %cst_105 : f32 to vector<8x1xf32>
    %287 = arith.addf %285, %286 : vector<8x1xf32>
    %288 = math.rsqrt %287 : vector<8x1xf32>
    %289 = vector.broadcast %288 : vector<8x1xf32> to vector<8x8xf32>
    %290 = arith.mulf %274, %289 : vector<8x8xf32>
    %291 = arith.truncf %290 : vector<8x8xf32> to vector<8x8xbf16>
    %292 = vector.broadcast %288 : vector<8x1xf32> to vector<8x8xf32>
    %293 = arith.mulf %276, %292 : vector<8x8xf32>
    %294 = arith.truncf %293 : vector<8x8xf32> to vector<8x8xbf16>
    %cst_106 = arith.constant dense<0.000000e+00> : vector<8x8xf32>
    %295 = tpu.matmul %291, %1, %cst_106 {dimension_numbers = #tpu.dot_dimension_numbers<[1], [0], [0], [1], [0, 0, 1, 1], [], []>} : vector<8x8xbf16>, vector<8x8xbf16>, vector<8x8xf32> -> vector<8x8xf32>
    %cst_107 = arith.constant dense<0.000000e+00> : vector<8x8xf32>
    %296 = tpu.matmul %294, %3, %cst_107 {dimension_numbers = #tpu.dot_dimension_numbers<[1], [0], [0], [1], [0, 0, 1, 1], [], []>} : vector<8x8xbf16>, vector<8x8xbf16>, vector<8x8xf32> -> vector<8x8xf32>
    %297 = arith.addf %295, %296 : vector<8x8xf32>
    %298 = vector.broadcast %4 : vector<1x8xf32> to vector<8x8xf32>
    %299 = arith.addf %297, %298 : vector<8x8xf32>
    %c0_108 = arith.constant 0 : index
    %c56_109 = arith.constant 56 : index
    %300 = vector.load %arg4[%c0_108, %c56_109] : memref<8x64xf32, #tpu.memory_space<vmem>>, vector<8x8xf32>
    tpu.vector_store %arg4[%c0_108, %c56_109], %299 {strides = array<i32>} : memref<8x64xf32, #tpu.memory_space<vmem>>, vector<8x8xf32>,
    return
  }
  func.func @transform_0(%arg0: i32) -> (i32, i32) {
    %c0_i32 = arith.constant 0 : i32
    %c0_i32_0 = arith.constant 0 : i32
    return %arg0, %c0_i32 : i32, i32
  }
  func.func @transform_1(%arg0: i32) -> (i32, i32, i32) {
    %c0_i32 = arith.constant 0 : i32
    %c0_i32_0 = arith.constant 0 : i32
    %c0_i32_1 = arith.constant 0 : i32
    %c0_i32_2 = arith.constant 0 : i32
    return %c0_i32, %c0_i32_0, %c0_i32_1 : i32, i32, i32
  }
  func.func @transform_2(%arg0: i32) -> (i32, i32) {
    %c0_i32 = arith.constant 0 : i32
    %c0_i32_0 = arith.constant 0 : i32
    %c0_i32_1 = arith.constant 0 : i32
    return %c0_i32, %c0_i32_0 : i32, i32
  }
  func.func @transform_3(%arg0: i32) -> (i32, i32) {
    %c0_i32 = arith.constant 0 : i32
    %c0_i32_0 = arith.constant 0 : i32
    return %arg0, %c0_i32 : i32, i32
  }
}

</mosaic_0001>

<bundles_post_ra>
// kernel: tpu_custom_call.1
= control target key start
LH: loop header
LB: loop body
LE: loop exit
PB: predicated region body
PF: predicated region fallthrough
CT: control target
= control target key end

     0   :  { %8 = vsyncpa [#allocation3], 0  ;;  %s2363_s0 = inlined_call_operand.hbm [shape: f32[16,128], index: 0, kind: input, shape index: {}]   ;;  %s2364_s1 = inlined_call_operand.hbm [shape: bf16[2,8,8], index: 1, kind: input, shape index: {}]   ;;  %s2365_s2 = inlined_call_operand.hbm [shape: f32[1,8], index: 2, kind: input, shape index: {}]   ;;  %s2366_s3 = inlined_call_operand.hbm [shape: f32[16,64], index: 3, kind: output, shape index: {}]  }
   0x1   :  { %10 = vsyncpa [#allocation3 + $0x1], 0 }
   0x2   :  { %11 = vsyncpa [#allocation6], 0 }
   0x3   :  { %12 = vsyncpa [#allocation4], 0 }
   0x4   :  { %14 = vsyncpa [#allocation4 + $0x1], 0  ;;  %s1866_s12 = smov 0   ;;  %s1868_s13 = smov 0  }
   0x5   :  { %s1870_s14 = smov 0   ;;  %s1872_s15 = smov 0  }
   0x6 LB: > { %s1887_s16 = sadd.s32 4294967295, %s1821_s15   ;;  %s1402_s17 = sadd.s32 4294967294, %s1821_s15   ;;  %s1821_s15 = sphi %s1872_s15, %s2386_s15   ;;  %s1817_s14 = sphi %s1870_s14, %s2385_s14   ;;  %s1813_s13 = sphi %s1868_s13, %s2384_s13   ;;  %s1809_s12 = sphi %s1866_s12, %s2383_s12  }
   0x7   : > { %p40_p0 = scmp.ne.s32.totalorder %s1813_s13, %s1809_s12  ;;  %p2367_p1 = scmp.eq.s32.totalorder %s1887_s16, 0 }
   0x8   : > { %p112_p3 = scmp.eq.s32.totalorder %s1402_s17, 1  ;;  %p1403_p5 = scmp.ge.s32.totalorder %s1821_s15, 1 }
   0x9   : > { %p1896_p4 = por %p2367_p1, %p40_p0  ;;  %p119_p7 = scmp.lt.s32.totalorder %s1821_s15, 3 }
   0xa   : > { %p1901_p6 = por %p112_p3, %p40_p0  ;;  %s1823_s21 = smov [#allocation5]  }
   0xb   : > { %s2370_s18 = scalar_select %p1896_p4, 1, 0 }
   0xc   : > { %s2371_s19 = scalar_select %p1901_p6, 1, 0 }
   0xd   : > { %p1906_p8 = pnand %p1403_p5, %p119_p7  ;;  %s131_s22 = sshll.u32 %s1823_s21, 4  ;;  %s1910_s22 = int_to_ptr.vmem [resolvable:$true] %s131_s22 }
   0xe   : > { %s1824_s24 = smov [#allocation7]   ;;  %s1665_s28 = scalar_lea.hbm %s2364_s1, 128 }
   0xf   : > { %p1575_p9 = pneg %p1906_p8  ;;  %s145_s25 = sshll.u32 %s1824_s24, 4  ;;  %s1921_s25 = int_to_ptr.vmem [resolvable:$true] %s145_s25 }
  0x10   : > { %p1666_p12 = scmp.ne.s32.totalorder %s2364_s1, %s1665_s28  ;;  %p1672_p5 = scmp.lt.u32.totalorder %s1665_s28, %s2364_s1 }
  0x11   : > { %p1917_p11 = pnand %p1575_p9, %p2367_p1 }
  0x13   : > { %p1667_p13 = pneg %p1917_p11 }
  0x15   : > { %p1668_p0 = pnand %p1667_p13, %p1666_p12 }
  0x17   : > { %p1669_p3 = pneg %p1668_p0 }
  0x19   : > { %p1674_p7 = pnand %p1672_p5, %p1669_p3 }
  0x1b   : > { %1677 = shalt.err (!%p1674_p7)
}
  0x1c   : > { %s1678_s6 = scalar_lea.vmem %s1910_s22, 128  ;;  %p1686_p2 = scmp.lt.s32.totalorder %s1910_s22, %s1910_s22 }
  0x1d   : > { %p1679_p9 = scmp.ne.s32.totalorder %s1910_s22, %s1678_s6  ;;  %p1687_p12 = scmp.lt.s32.totalorder %s1678_s6, %s1678_s6 }
  0x1f   : > { %p1681_p10 = pnand %p1679_p9, %p1667_p13  ;;  %p1688_p0 = por %p1687_p12, %p1686_p2 }
  0x21   : > { %p1682_p1 = pneg %p1681_p10 }
  0x23   : > { %p1689_p6 = pnand %p1688_p0, %p1682_p1 }
  0x25   : > { %1692 = shalt.err (!%p1689_p6)
}
  0x26   : > { %s1825_s7 = smov 64   ;;  %s1826_s8 = smov 4  }
  0x27   : > { %1578 = dma.hbm_to_vmem [thread:$0]  (!%p1917_p11), %s2364_s1, 128, %s1910_s22, [#allocation6], %s1825_s7, %s1825_s7, %s1826_s8  }
  0x28   : > { %s1693_s21 = scalar_lea.hbm %s2365_s2, 16 }
  0x29   : > { %p1694_p2 = scmp.ne.s32.totalorder %s2365_s2, %s1693_s21  ;;  %p1700_p10 = scmp.lt.u32.totalorder %s1693_s21, %s2365_s2 }
  0x2b   : > { %p1696_p1 = pnand %p1694_p2, %p1667_p13 }
  0x2d   : > { %p1697_p6 = pneg %p1696_p1 }
  0x2f   : > { %p1702_p3 = pnand %p1700_p10, %p1697_p6 }
  0x31   : > { %1705 = shalt.err (!%p1702_p3)
}
  0x32   : > { %s1706_s22 = scalar_lea.vmem %s1921_s25, 16  ;;  %s1713_s29 = scalar_lea.vmem %s1921_s25, 32 }
  0x33   : > { %p1707_p5 = scmp.ne.s32.totalorder %s1921_s25, %s1706_s22  ;;  %p1714_p12 = scmp.lt.s32.totalorder %s1921_s25, %s1921_s25 }
  0x34   : > { %p1715_p0 = scmp.lt.s32.totalorder %s1713_s29, %s1706_s22 }
  0x35   : > { %p1709_p7 = pnand %p1707_p5, %p1667_p13 }
  0x36   : > { %p1716_p2 = por %p1715_p0, %p1714_p12 }
  0x37   : > { %p1710_p9 = pneg %p1709_p7 }
  0x39   : > { %p1717_p1 = pnand %p1716_p2, %p1710_p9 }
  0x3b   : > { %1720 = shalt.err (!%p1717_p1)
}
  0x3c   : > { %1581 = dma.hbm_to_vmem [thread:$0]  (!%p1917_p11), %s2365_s2, 16, %s1921_s25, [#allocation6]  }
  0x3d   : > { %s1977_s5 = sadd.s32 1, %s1821_s15   ;;  %s27_s23 = sadd.s32 1, %s1817_s14 }
  0x3e   : > { %s24_s6 = ssub.s32 %s1821_s15, %s1977_s5  ;;  %p34_p13 = scmp.ne.s32.totalorder %s1817_s14, %s1813_s13 }
  0x3f   : > { %p25_p6 = scmp.eq.s32.totalorder %s24_s6, 0  ;;  %p35_p10 = scmp.eq.s32.totalorder %s1821_s15, 0 }
  0x40   : > { %p2374_p3 = scmp.eq.s32.totalorder %s1887_s16, 1  ;;  %p1592_p7 = scmp.lt.s32.totalorder %s1821_s15, 2 }
  0x41   : > { %s1993_s8 = scalar_select %p25_p6, %s1817_s14, %s27_s23  }
  0x42   : > { %p1987_p5 = por %p2374_p3, %p34_p13  ;;  %p36_p9 = por %p35_p10, %p34_p13 }
  0x43   : > { %s156_s9 = sand.u32 1, %s1817_s14   ;;  %s1408_s25 = sshll.u32 %s1821_s15, 7 }
  0x44   : > { %s2375_s7 = scalar_select %p1987_p5, 1, 0 }
  0x45   : > { %s1407_s10 = sshll.u32 %s156_s9, 3  ;;  %s2000_s21 = scalar_lea.hbm %s2363_s0, %s1408_s25 }
  0x46   : > { %s160_s24 = scalar_lea.vmem [#allocation2], %s1407_s10  ;;  %p2004_p11 = pnand %p1592_p7, %p36_p9 }
  0x47   : > { %s167_s26 = sshll.u32 %s160_s24, 4  ;;  %s157_s28 = scalar_lea.sflag [#allocation3], %s156_s9  ;;  %s2002_s26 = int_to_ptr.vmem [resolvable:$true] %s167_s26 }
  0x48   : > { %s1721_s22 = scalar_lea.hbm %s2000_s21, 128  ;;  %p1723_p0 = pneg %p2004_p11 }
  0x49   : > { %p1722_p12 = scmp.ne.s32.totalorder %s2000_s21, %s1721_s22  ;;  %s1726_s4 = scalar_lea.hbm %s2363_s0, 256 }
  0x4a   : > { %p1727_p13 = scmp.lt.u32.totalorder %s2000_s21, %s2363_s0  ;;  %p1728_p6 = scmp.lt.u32.totalorder %s1726_s4, %s1721_s22 }
  0x4b   : > { %p1724_p2 = pnand %p1723_p0, %p1722_p12  ;;  %p1730_p3 = scmp.lt.u32.totalorder %s1721_s22, %s2000_s21 }
  0x4c   : > { %p1729_p10 = por %p1728_p6, %p1727_p13 }
  0x4d   : > { %p1725_p1 = pneg %p1724_p2 }
  0x4e   : > { %p1731_p7 = por %p1730_p3, %p1729_p10 }
  0x50   : > { %p1732_p9 = pnand %p1731_p7, %p1725_p1 }
  0x52   : > { %1735 = shalt.err (!%p1732_p9)
}
  0x53   : > { %s1736_s9 = scalar_lea.vmem %s2002_s26, 128  ;;  %s1827_s10 = smov [#allocation2]  }
  0x54   : > { %p1737_p12 = scmp.ne.s32.totalorder %s2002_s26, %s1736_s9  ;;  %s1741_s25 = sshll.u32 %s1827_s10, 4  ;;  %s1742_s25 = int_to_ptr.vmem [resolvable:$false] %s1741_s25 }
  0x55   : > { %s1743_s11 = scalar_lea.vmem %s1742_s25, 256  ;;  %p1744_p4 = scmp.lt.s32.totalorder %s2002_s26, %s1742_s25 }
  0x56   : > { %p1739_p2 = pnand %p1737_p12, %p1723_p0  ;;  %p1745_p13 = scmp.lt.s32.totalorder %s1743_s11, %s1736_s9 }
  0x58   : > { %p1740_p5 = pneg %p1739_p2  ;;  %p1746_p6 = por %p1745_p13, %p1744_p4 }
  0x5a   : > { %p1747_p10 = pnand %p1746_p6, %p1740_p5 }
  0x5c   : > { %1750 = shalt.err (!%p1747_p10)
}
  0x5d   : > { %1585 = dma.hbm_to_vmem [thread:$0]  (!%p2004_p11), %s2000_s21, 128, %s2002_s26, %s157_s28  }
  0x5e   : > { %176 = sbr.rel (%p1906_p8) target bundleno = 1808 (0x710), region = 32  ;;  %s2036_s17 = sand.u32 (!%p1906_p8), 1, %s1813_s13  }
  0x5f   : > { %s1410_s24 = sshll.u32 (!%p1906_p8), %s2036_s17, 3  ;;  %s179_s22 = scalar_lea.sflag (!%p1906_p8), [#allocation3], %s2036_s17 }
  0x60   : > { %s182_s29 = scalar_lea.vmem (!%p1906_p8), [#allocation2], %s1410_s24  ;;  %p2377_p4 = scmp.ne.s32.totalorder (!%p1906_p8), %s2370_s18, 0 }
  0x65   : > { %1796 = dma.done.wait (%p2377_p4), %s179_s22, 128  }
  0x66   : > { %1798 = vsyncadd (%p2377_p4), %s179_s22, 4294967168  ;;  %p2378_p5 = scmp.eq.s32.totalorder %s1887_s16, 0 }
  0x68   : > { %1800 = dma.done.wait (%p2378_p5), [#allocation6], 144   ;;  %p2379_p8 = pmov %p2378_p5 }
  0x69   : > { %vm219_vm0 = vcmask 64512   ;;  %v2050_v0 = vld [vmem:[%s182_s29] sm:$0xff]  ;;  %s1828_s20 = smov 56   ;;  %s1829_s21 = smov 112   ;;  %vm256_vm1 = vcmask 1043456   ;;  %vm1844_vm2 = vmmov 0  }
  0x6a   : > { %1802 = vsyncadd (%p2379_p8), [#allocation6], 4294967152  ;;  %v220_v1 = vsel %vm219_vm0, %v2050_v0, 0.0  ;;  %362 = vrot.lane.b32.xlu1 %v2050_v0, %s1828_s20  ;;  %s1830_s18 = smov 96   ;;  %s1831_s26 = smov 64   ;;  %vm487_vm3 = vcmask 130112  }
  0x6b   : > { %221 = vadd.xlane.f32.xlu0 %v220_v1  ;;  %s1832_s27 = smov 120   ;;  %s1833_s28 = smov 48   ;;  %vm622_vm4 = vcmask 195712   ;;  %vm757_vm5 = vcmask 261312   ;;  %vm892_vm6 = vcmask 326912   ;;  %vm1027_vm7 = vcmask 392512  }
  0x6c   : > { %s1834_s30 = smov 104   ;;  %s1835_s4 = smov 40   ;;  %vm1162_vm8 = vcmask 458112   ;;  %vm1297_vm9 = vcmask 523712  }
  0x6d   : > { %s1836_s23 = smov 88   ;;  %s1837_s6 = smov 24  }
  0x6e   : > { %491 = vrot.lane.b32.xlu1 %v2050_v0, %s1829_s21  ;;  %s1838_s9 = smov 80   ;;  %s1839_s10 = smov 16  }
  0x6f   : > { %s1840_s25 = smov 32   ;;  %s1841_s11 = smov 72  }
  0x70   : > { %s1842_s22 = smov 8   ;;  %s2267_s29 = scalar_lea.vmem [#allocation8], %s1410_s24 }
  0x71   : > { %s1432_s24 = sshll.u32 %s1887_s16, 7  ;;  %p2380_p0 = scmp.ne.s32.totalorder %s2375_s7, 0 }
  0x72   : > { %761 = vrot.lane.b32.xlu1 %v2050_v0, %s1830_s18  ;;  %s1845_s16 = smov [#allocation8]  }
  0x81   : > { %224 = vrot.lane.b32.xlu0 %v2050_v0, %s1831_s26 }
  0x85   : > { %356 = vrot.lane.b32.xlu0 %v2050_v0, %s1832_s27 }
  0x89   : > { %497 = vrot.lane.b32.xlu0 %v2050_v0, %s1833_s28 }
  0x8d   : > { %626 = vrot.lane.b32.xlu0 %v2050_v0, %s1834_s30 }
  0x91   : > { %632 = vrot.lane.b32.xlu0 %v2050_v0, %s1835_s4 }
  0xdc   : > { %v363_v2 = vpop.permute.xlu1 %362 }
  0xdd   : > { %v365_v10 = vsel %vm219_vm0, %v363_v2, 0.0 }
  0xe0   : > { %v492_v5 = vpop.permute.xlu1 %491 }
  0xe1   : > { %v494_v7 = vsel %vm219_vm0, %v492_v5, 0.0 }
  0xe4   : > { %v762_v17 = vpop.permute.xlu1 %761 }
  0xe5   : > { %v764_v18 = vsel %vm219_vm0, %v762_v17, 0.0 }
  0xf8   : > { %v2070_v3 = vpop.xlane.xlu0 %221 }
  0xfc   : > { %v225_v4 = vpop.permute.xlu0 %224 }
  0xfd   : > { %v227_v6 = vsel %vm219_vm0, %v225_v4, 0.0 }
  0xfe   : > { %228 = vadd.xlane.f32.xlu1 %v227_v6 }
 0x100   : > { %v357_v8 = vpop.permute.xlu0 %356 }
 0x101   : > { %v359_v9 = vsel %vm219_vm0, %v357_v8, 0.0 }
 0x102   : > { %360 = vadd.xlane.f32.xlu0 %v359_v9  ;;  %495 = vadd.xlane.f32.xlu1 %v494_v7 }
 0x104   : > { %v498_v11 = vpop.permute.xlu0 %497 }
 0x105   : > { %v500_v12 = vsel %vm219_vm0, %v498_v11, 0.0 }
 0x106   : > { %366 = vadd.xlane.f32.xlu0 %v365_v10 }
 0x108   : > { %v627_v13 = vpop.permute.xlu0 %626 }
 0x109   : > { %v629_v14 = vsel %vm219_vm0, %v627_v13, 0.0 }
 0x10a   : > { %501 = vadd.xlane.f32.xlu0 %v500_v12 }
 0x10c   : > { %v633_v15 = vpop.permute.xlu0 %632 }
 0x10d   : > { %v635_v16 = vsel %vm219_vm0, %v633_v15, 0.0 }
 0x113   : > { %896 = vrot.lane.b32.xlu1 %v2050_v0, %s1836_s23 }
 0x117   : > { %902 = vrot.lane.b32.xlu1 %v2050_v0, %s1837_s6 }
 0x11b   : > { %1031 = vrot.lane.b32.xlu1 %v2050_v0, %s1838_s9 }
 0x11f   : > { %1037 = vrot.lane.b32.xlu1 %v2050_v0, %s1839_s10 }
 0x120   : > { %767 = vrot.lane.b32.xlu0 %v2050_v0, %s1840_s25 }
 0x123   : > { %1166 = vrot.lane.b32.xlu1 %v2050_v0, %s1841_s11 }
 0x127   : > { %1172 = vrot.lane.b32.xlu1 %v2050_v0, %s1842_s22 }
 0x13f   : > { %630 = vadd.xlane.f32.xlu0 %v629_v14 }
 0x143   : > { %636 = vadd.xlane.f32.xlu0 %v635_v16 }
 0x147   : > { %765 = vadd.xlane.f32.xlu0 %v764_v18 }
 0x18b   : > { %v229_v19 = vpop.xlane.xlu1 %228 }
 0x18c   : > { %v230_v46 = vadd.f32 %v229_v19, %v2070_v3 }
 0x18e   : > { %v231_v47 = vmul.f32 0.0625, %v230_v46 }
 0x18f   : > { %v361_v20 = vpop.xlane.xlu0 %360  ;;  %v496_v21 = vpop.xlane.xlu1 %495 }
 0x190   : > { %v2117_v48 = vsub.f32 %v2050_v0, %v231_v47 }
 0x192   : > { %v233_v49 = vmul.f32 %v2117_v48, %v2117_v48 }
 0x193   : > { %v367_v22 = vpop.xlane.xlu0 %366  ;;  %v897_v23 = vpop.permute.xlu1 %896 }
 0x194   : > { %v368_v24 = vadd.f32 %v367_v22, %v361_v20  ;;  %v899_v36 = vsel %vm219_vm0, %v897_v23, 0.0  ;;  %v234_v20 = vsel %vm219_vm0, %v233_v49, 0.0 }
 0x196   : > { %v369_v25 = vmul.f32 0.0625, %v368_v24 }
 0x197   : > { %v502_v26 = vpop.xlane.xlu0 %501  ;;  %v903_v27 = vpop.permute.xlu1 %902 }
 0x198   : > { %v2095_v28 = vsub.f32 %v2050_v0, %v369_v25  ;;  %v503_v29 = vadd.f32 %v502_v26, %v496_v21  ;;  %v905_v38 = vsel %vm219_vm0, %v903_v27, 0.0 }
 0x19a   : > { %v504_v30 = vmul.f32 0.0625, %v503_v29  ;;  %v371_v31 = vmul.f32 %v2095_v28, %v2095_v28 }
 0x19b   : > { %v768_v32 = vpop.permute.xlu0 %767  ;;  %v1032_v34 = vpop.permute.xlu1 %1031 }
 0x19c   : > { %373 = vrot.lane.b32.xlu0 %v371_v31, %s1832_s27  ;;  %v770_v33 = vsel %vm219_vm0, %v768_v32, 0.0  ;;  %v2102_v35 = vsub.f32 %v2050_v0, %v504_v30  ;;  %v1034_v40 = vsel %vm219_vm0, %v1032_v34, 0.0  ;;  %v214_v32 = vld [vmem:[#allocation5] sm:$0xf] }
 0x19d   : > { %771 = vadd.xlane.f32.xlu1 %v770_v33  ;;  %v1843_v33 = vmov 0.0   ;;  %v2166_v34 = vsel %vm256_vm1, %v214_v32, 0 }
 0x19e   : > { %v506_v37 = vmul.f32 %v2102_v35, %v2102_v35  ;;  %1473 = vmatprep.subr.bf16.mxu1 %v1843_v33  ;;  %1467 = vmatprep.subr.bf16.mxu0 %v1843_v33 }
 0x19f   : > { %v1038_v39 = vpop.permute.xlu1 %1037  ;;  %1474 = vmatpush3.bf16.msra.mxu1 %v2166_v34  ;;  %1475 = vmatprep.mubr.msk.bf16.mxu1 %vm1844_vm2, %v1843_v33 }
 0x1a0   : > { %379 = vrot.lane.b32.xlu0 %v371_v31, %s1828_s20  ;;  %v1040_v42 = vsel %vm219_vm0, %v1038_v39, 0.0  ;;  %1469 = vmatprep.mubr.msk.bf16.mxu0 %vm1844_vm2, %v1843_v33 }
 0x1a1   : > { %900 = vadd.xlane.f32.xlu1 %v899_v36  ;;  %1485 = vmatprep.subr.bf16.mxu1 %v1843_v33  ;;  %v216_v36 = vld [vmem:[#allocation5 + $0x4] sm:$0xf] }
 0x1a3   : > { %v1167_v41 = vpop.permute.xlu1 %1166 }
 0x1a4   : > { %508 = vrot.lane.b32.xlu0 %v506_v37, %s1829_s21  ;;  %v1169_v43 = vsel %vm219_vm0, %v1167_v41, 0.0 }
 0x1a5   : > { %906 = vadd.xlane.f32.xlu1 %v905_v38 }
 0x1a7   : > { %v1173_v44 = vpop.permute.xlu1 %1172 }
 0x1a8   : > { %514 = vrot.lane.b32.xlu0 %v506_v37, %s1833_s28  ;;  %v1175_v45 = vsel %vm219_vm0, %v1173_v44, 0.0  ;;  %v2175_v37 = vsel %vm256_vm1, %v216_v36, 0 }
 0x1a9   : > { %1035 = vadd.xlane.f32.xlu1 %v1034_v40  ;;  %1468 = vmatpush3.bf16.msra.mxu0 %v2175_v37 }
 0x1aa   : > { %1479 = vmatprep.subr.bf16.mxu0 %v1843_v33 }
 0x1ad   : > { %1041 = vadd.xlane.f32.xlu1 %v1040_v42 }
 0x1b1   : > { %1170 = vadd.xlane.f32.xlu1 %v1169_v43 }
 0x1b5   : > { %1176 = vadd.xlane.f32.xlu1 %v1175_v45 }
 0x1c6   : > { %238 = vrot.lane.b32.xlu1 %v233_v49, %s1831_s26 }
 0x1cc   : > { %v631_v50 = vpop.xlane.xlu0 %630 }
 0x1d0   : > { %v637_v51 = vpop.xlane.xlu0 %636 }
 0x1d1   : > { %v638_v52 = vadd.f32 %v637_v51, %v631_v50 }
 0x1d3   : > { %v639_v53 = vmul.f32 0.0625, %v638_v52 }
 0x1d4   : > { %v766_v56 = vpop.xlane.xlu0 %765 }
 0x1d5   : > { %v2123_v54 = vsub.f32 %v2050_v0, %v639_v53 }
 0x1d7   : > { %v641_v55 = vmul.f32 %v2123_v54, %v2123_v54 }
 0x1d9   : > { %643 = vrot.lane.b32.xlu1 %v641_v55, %s1834_s30 }
 0x1dd   : > { %649 = vrot.lane.b32.xlu1 %v641_v55, %s1835_s4 }
 0x20e   : > { %v374_v17 = vpop.permute.xlu0 %373 }
 0x20f   : > { %v376_v26 = vsel %vm219_vm0, %v374_v17, 0.0 }
 0x212   : > { %v380_v18 = vpop.permute.xlu0 %379 }
 0x213   : > { %v382_v22 = vsel %vm219_vm0, %v380_v18, 0.0 }
 0x216   : > { %v509_v19 = vpop.permute.xlu0 %508 }
 0x217   : > { %v511_v29 = vsel %vm219_vm0, %v509_v19, 0.0 }
 0x22a   : > { %v772_v57 = vpop.xlane.xlu1 %771 }
 0x22b   : > { %v773_v58 = vadd.f32 %v772_v57, %v766_v56 }
 0x22d   : > { %v774_v59 = vmul.f32 0.0625, %v773_v58 }
 0x22e   : > { %v901_v60 = vpop.xlane.xlu1 %900 }
 0x22f   : > { %v2130_v61 = vsub.f32 %v2050_v0, %v774_v59 }
 0x231   : > { %v776_v62 = vmul.f32 %v2130_v61, %v2130_v61 }
 0x232   : > { %v907_v63 = vpop.xlane.xlu1 %906 }
 0x233   : > { %v908_v1 = vadd.f32 %v907_v63, %v901_v60  ;;  %784 = vrot.lane.b32.xlu1 %v776_v62, %s1840_s25  ;;  %778 = vrot.lane.b32.xlu0 %v776_v62, %s1830_s18 }
 0x235   : > { %v909_v2 = vmul.f32 0.0625, %v908_v1 }
 0x236   : > { %v1036_v3 = vpop.xlane.xlu1 %1035 }
 0x237   : > { %v2137_v4 = vsub.f32 %v2050_v0, %v909_v2 }
 0x239   : > { %v911_v5 = vmul.f32 %v2137_v4, %v2137_v4 }
 0x23a   : > { %v1042_v6 = vpop.xlane.xlu1 %1041 }
 0x23b   : > { %v1043_v7 = vadd.f32 %v1042_v6, %v1036_v3  ;;  %913 = vrot.lane.b32.xlu1 %v911_v5, %s1836_s23 }
 0x23d   : > { %v1044_v8 = vmul.f32 0.0625, %v1043_v7 }
 0x23e   : > { %v1171_v9 = vpop.xlane.xlu1 %1170 }
 0x23f   : > { %v2143_v10 = vsub.f32 %v2050_v0, %v1044_v8  ;;  %919 = vrot.lane.b32.xlu1 %v911_v5, %s1837_s6 }
 0x241   : > { %v1046_v11 = vmul.f32 %v2143_v10, %v2143_v10 }
 0x242   : > { %v1177_v12 = vpop.xlane.xlu1 %1176 }
 0x243   : > { %v1178_v13 = vadd.f32 %v1177_v12, %v1171_v9  ;;  %1048 = vrot.lane.b32.xlu1 %v1046_v11, %s1838_s9 }
 0x245   : > { %v1179_v14 = vmul.f32 0.0625, %v1178_v13 }
 0x246   : > { %v239_v21 = vpop.permute.xlu1 %238 }
 0x247   : > { %v2150_v15 = vsub.f32 %v2050_v0, %v1179_v14  ;;  %1054 = vrot.lane.b32.xlu1 %v1046_v11, %s1839_s10  ;;  %v515_v0 = vpop.permute.xlu0 %514  ;;  %v241_v23 = vsel %vm219_vm0, %v239_v21, 0.0 }
 0x248   : > { %v517_v25 = vsel %vm219_vm0, %v515_v0, 0.0 }
 0x249   : > { %v1181_v16 = vmul.f32 %v2150_v15, %v2150_v15 }
 0x24b   : > { %1183 = vrot.lane.b32.xlu0 %v1181_v16, %s1841_s11  ;;  %v644_v24 = vpop.permute.xlu1 %643 }
 0x24c   : > { %v646_v27 = vsel %vm219_vm0, %v644_v24, 0.0 }
 0x24f   : > { %1189 = vrot.lane.b32.xlu0 %v1181_v16, %s1842_s22  ;;  %v650_v30 = vpop.permute.xlu1 %649 }
 0x250   : > { %v652_v31 = vsel %vm219_vm0, %v650_v30, 0.0 }
 0x26b   : > { %235 = vadd.xlane.f32.xlu1 %v234_v20 }
 0x26e   : > { %383 = vadd.xlane.f32.xlu0 %v382_v22 }
 0x26f   : > { %242 = vadd.xlane.f32.xlu1 %v241_v23 }
 0x272   : > { %518 = vadd.xlane.f32.xlu0 %v517_v25 }
 0x273   : > { %377 = vadd.xlane.f32.xlu1 %v376_v26 }
 0x276   : > { %647 = vadd.xlane.f32.xlu0 %v646_v27 }
 0x277   : > { %512 = vadd.xlane.f32.xlu1 %v511_v29 }
 0x27b   : > { %653 = vadd.xlane.f32.xlu1 %v652_v31 }
 0x2a5   : > { %v785_v38 = vpop.permute.xlu1 %784  ;;  %v779_v41 = vpop.permute.xlu0 %778 }
 0x2a6   : > { %v781_v19 = vsel %vm219_vm0, %v779_v41, 0.0  ;;  %v787_v20 = vsel %vm219_vm0, %v785_v38, 0.0 }
 0x2ad   : > { %v914_v39 = vpop.permute.xlu1 %913 }
 0x2b1   : > { %v920_v40 = vpop.permute.xlu1 %919 }
 0x2b2   : > { %v922_v21 = vsel %vm219_vm0, %v920_v40, 0.0 }
 0x2b5   : > { %v1049_v42 = vpop.permute.xlu1 %1048 }
 0x2b9   : > { %v1055_v44 = vpop.permute.xlu1 %1054 }
 0x2ba   : > { %v1057_v22 = vsel %vm219_vm0, %v1055_v44, 0.0 }
 0x2bd   : > { %v1184_v43 = vpop.permute.xlu0 %1183 }
 0x2be   : > { %v1186_v0 = vsel %vm219_vm0, %v1184_v43, 0.0 }
 0x2c1   : > { %v1190_v45 = vpop.permute.xlu0 %1189 }
 0x2c2   : > { %v1192_v23 = vsel %vm219_vm0, %v1190_v45, 0.0 }
 0x2f8   : > { %v236_v46 = vpop.xlane.xlu1 %235 }
 0x2fb   : > { %v384_v47 = vpop.xlane.xlu0 %383 }
 0x2fc   : > { %v243_v49 = vpop.xlane.xlu1 %242 }
 0x2fd   : > { %v244_v50 = vadd.f32 %v243_v49, %v236_v46 }
 0x2ff   : > { %v245_v51 = vmul.f32 0.0625, %v244_v50  ;;  %v519_v56 = vpop.xlane.xlu0 %518 }
 0x300   : > { %v378_v52 = vpop.xlane.xlu1 %377 }
 0x301   : > { %v246_v53 = vadd.f32 1e-05, %v245_v51  ;;  %v385_v55 = vadd.f32 %v384_v47, %v378_v52 }
 0x303   : > { %1649 = vrsqrt.f32 %v246_v53  ;;  %v386_v57 = vmul.f32 0.0625, %v385_v55  ;;  %v648_v63 = vpop.xlane.xlu0 %647 }
 0x304   : > { %v513_v58 = vpop.xlane.xlu1 %512 }
 0x305   : > { %v387_v59 = vadd.f32 1e-05, %v386_v57  ;;  %v520_v60 = vadd.f32 %v519_v56, %v513_v58 }
 0x307   : > { %1651 = vrsqrt.f32 %v387_v59  ;;  %v521_v62 = vmul.f32 0.0625, %v520_v60 }
 0x308   : > { %v654_v1 = vpop.xlane.xlu1 %653 }
 0x309   : > { %v522_v2 = vadd.f32 1e-05, %v521_v62  ;;  %v655_v3 = vadd.f32 %v654_v1, %v648_v63 }
 0x30b   : > { %1653 = vrsqrt.f32 %v522_v2  ;;  %v656_v5 = vmul.f32 0.0625, %v655_v3 }
 0x30d   : > { %v1650_v6 = vpop.eup %1649  ;;  %v657_v7 = vadd.f32 1e-05, %v656_v5 }
 0x30e   : > { %v248_v8 = vmul.f32 %v1650_v6, %v2117_v48 }
 0x30f   : > { %1655 = vrsqrt.f32 %v657_v7 }
 0x310   : > { %v249_v9 = vpack.c.bf16 %v248_v8, %v248_v8 }
 0x311   : > { %v1652_v11 = vpop.eup %1651 }
 0x312   : > { %251 = vrot.lane.b32.xlu0 %v249_v9, %s1831_s26  ;;  %1476 = vmatmul.mubr.msk.bf16.vlgmr.msra.gmra.mrb[0].mxu1 %vm219_vm0, %v249_v9  ;;  %v389_v12 = vmul.f32 %v1652_v11, %v2095_v28 }
 0x313   : > { %1486 = vmatpush3.bf16.msra.mxu1 %v2166_v34  ;;  %1487 = vmatprep.mubr.msk.bf16.mxu1 %vm1844_vm2, %v1843_v33 }
 0x314   : > { %v390_v13 = vpack.c.bf16 %v389_v12, %v389_v12  ;;  %1497 = vmatprep.subr.bf16.mxu1 %v1843_v33 }
 0x315   : > { %v1654_v14 = vpop.eup %1653 }
 0x316   : > { %437 = vrot.lane.b32.xlu0 %v390_v13, %s1832_s27  ;;  %392 = vrot.lane.b32.xlu1 %v390_v13, %s1828_s20  ;;  %v524_v48 = vmul.f32 %v1654_v14, %v2102_v35  ;;  %v916_v35 = vsel %vm219_vm0, %v914_v39, 0.0  ;;  %v2252_v14 = vld [vmem:[#allocation7] ss:$0 sm:$0xff]  ;;  %s2318_s27 = scalar_lea.hbm %s2366_s3, %s1432_s24 }
 0x318   : > { %v525_v16 = vpack.c.bf16 %v524_v48, %v524_v48 }
 0x319   : > { %v1656_v17 = vpop.eup %1655 }
 0x31a   : > { %527 = vrot.lane.b32.xlu1 %v525_v16, %s1833_s28  ;;  %v659_v28 = vmul.f32 %v1656_v17, %v2123_v54  ;;  %v1051_v54 = vsel %vm219_vm0, %v1049_v42, 0.0 }
 0x31c   : > { %v660_v18 = vpack.c.bf16 %v659_v28, %v659_v28 }
 0x31e   : > { %572 = vrot.lane.b32.xlu1 %v525_v16, %s1829_s21  ;;  %662 = vrot.lane.b32.xlu0 %v660_v18, %s1835_s4  ;;  %s1313_s21 = sshll.u32 %s2267_s29, 4  ;;  %s2320_s21 = int_to_ptr.vmem [resolvable:$true] %s1313_s21 }
 0x322   : > { %707 = vrot.lane.b32.xlu0 %v660_v18, %s1834_s30  ;;  %s1751_s30 = scalar_lea.vmem %s2320_s21, 128 }
 0x323   : > { %p1752_p11 = scmp.ne.s32.totalorder %s2320_s21, %s1751_s30 }
 0x325   : > { %p1753_p1 = pnand %p1752_p11, %p2380_p0 }
 0x327   : > { %p1754_p3 = pneg %p1753_p1 }
 0x341   : > { %782 = vadd.xlane.f32.xlu0 %v781_v19 }
 0x342   : > { %788 = vadd.xlane.f32.xlu1 %v787_v20 }
 0x346   : > { %917 = vadd.xlane.f32.xlu1 %v916_v35 }
 0x34a   : > { %923 = vadd.xlane.f32.xlu1 %v922_v21 }
 0x34e   : > { %1052 = vadd.xlane.f32.xlu1 %v1051_v54 }
 0x352   : > { %1058 = vadd.xlane.f32.xlu1 %v1057_v22 }
 0x356   : > { %1187 = vadd.xlane.f32.xlu1 %v1186_v0 }
 0x35a   : > { %1193 = vadd.xlane.f32.xlu1 %v1192_v23 }
 0x384   : > { %v252_v24 = vpop.permute.xlu0 %251 }
 0x385   : > { %1470 = vmatmul.mubr.msk.bf16.vlgmr.msra.gmra.mrb[0].mxu0 %vm219_vm0, %v252_v24 }
 0x386   : > { %1480 = vmatpush3.bf16.msra.mxu0 %v2175_v37  ;;  %1481 = vmatprep.mubr.msk.bf16.mxu0 %vm1844_vm2, %v1843_v33 }
 0x387   : > { %1491 = vmatprep.subr.bf16.mxu0 %v1843_v33 }
 0x388   : > { %v393_v25 = vpop.permute.xlu1 %392  ;;  %v438_v26 = vpop.permute.xlu0 %437 }
 0x389   : > { %1488 = vmatmul.mubr.msk.bf16.vlgmr.msra.gmra.mrb[4].mxu1 %vm219_vm0, %v438_v26 }
 0x38a   : > { %1498 = vmatpush3.bf16.msra.mxu1 %v2166_v34  ;;  %1499 = vmatprep.mubr.msk.bf16.mxu1 %vm1844_vm2, %v1843_v33 }
 0x38b   : > { %1509 = vmatprep.subr.bf16.mxu1 %v1843_v33 }
 0x38c   : > { %v528_v27 = vpop.permute.xlu1 %527 }
 0x38d   : > { %1482 = vmatmul.mubr.msk.bf16.vlgmr.msra.gmra.mrb[4].mxu0 %vm219_vm0, %v393_v25 }
 0x38e   : > { %1492 = vmatpush3.bf16.msra.mxu0 %v2175_v37  ;;  %1493 = vmatprep.mubr.msk.bf16.mxu0 %vm1844_vm2, %v1843_v33 }
 0x38f   : > { %1503 = vmatprep.subr.bf16.mxu0 %v1843_v33 }
 0x390   : > { %v573_v29 = vpop.permute.xlu1 %572  ;;  %v663_v30 = vpop.permute.xlu0 %662 }
 0x391   : > { %1500 = vmatmul.mubr.msk.bf16.vlgmr.msra.gmra.mrb[8].mxu1 %vm219_vm0, %v573_v29 }
 0x392   : > { %1510 = vmatpush3.bf16.msra.mxu1 %v2166_v34  ;;  %1511 = vmatprep.mubr.msk.bf16.mxu1 %vm1844_vm2, %v1843_v33 }
 0x393   : > { %1521 = vmatprep.subr.bf16.mxu1 %v1843_v33 }
 0x394   : > { %v708_v31 = vpop.permute.xlu0 %707 }
 0x395   : > { %1494 = vmatmul.mubr.msk.bf16.vlgmr.msra.gmra.mrb[8].mxu0 %vm219_vm0, %v528_v27 }
 0x396   : > { %1504 = vmatpush3.bf16.msra.mxu0 %v2175_v37  ;;  %1505 = vmatprep.mubr.msk.bf16.mxu0 %vm1844_vm2, %v1843_v33 }
 0x397   : > { %1515 = vmatprep.subr.bf16.mxu0 %v1843_v33 }
 0x399   : > { %1512 = vmatmul.mubr.msk.bf16.vlgmr.msra.gmra.mrb[12].mxu1 %vm219_vm0, %v708_v31 }
 0x39a   : > { %1522 = vmatpush3.bf16.msra.mxu1 %v2166_v34  ;;  %1523 = vmatprep.mubr.msk.bf16.mxu1 %vm1844_vm2, %v1843_v33 }
 0x39b   : > { %1533 = vmatprep.subr.bf16.mxu1 %v1843_v33 }
 0x39d   : > { %1506 = vmatmul.mubr.msk.bf16.vlgmr.msra.gmra.mrb[12].mxu0 %vm219_vm0, %v663_v30 }
 0x39e   : > { %1516 = vmatpush3.bf16.msra.mxu0 %v2175_v37  ;;  %1517 = vmatprep.mubr.msk.bf16.mxu0 %vm1844_vm2, %v1843_v33 }
 0x39f   : > { %1527 = vmatprep.subr.bf16.mxu0 %v1843_v33 }
 0x3ce   : > { %v783_v32 = vpop.xlane.xlu0 %782 }
 0x3cf   : > { %v789_v36 = vpop.xlane.xlu1 %788 }
 0x3d0   : > { %v790_v38 = vadd.f32 %v789_v36, %v783_v32 }
 0x3d2   : > { %v791_v39 = vmul.f32 0.0625, %v790_v38 }
 0x3d3   : > { %v918_v40 = vpop.xlane.xlu1 %917 }
 0x3d4   : > { %v792_v41 = vadd.f32 1e-05, %v791_v39 }
 0x3d6   : > { %1657 = vrsqrt.f32 %v792_v41 }
 0x3d7   : > { %v924_v42 = vpop.xlane.xlu1 %923 }
 0x3d8   : > { %v925_v43 = vadd.f32 %v924_v42, %v918_v40 }
 0x3da   : > { %v926_v44 = vmul.f32 0.0625, %v925_v43 }
 0x3db   : > { %v1053_v45 = vpop.xlane.xlu1 %1052 }
 0x3dc   : > { %v927_v46 = vadd.f32 1e-05, %v926_v44 }
 0x3de   : > { %1659 = vrsqrt.f32 %v927_v46 }
 0x3df   : > { %v1059_v47 = vpop.xlane.xlu1 %1058 }
 0x3e0   : > { %v1658_v49 = vpop.eup %1657  ;;  %v1060_v50 = vadd.f32 %v1059_v47, %v1053_v45 }
 0x3e1   : > { %v794_v51 = vmul.f32 %v1658_v49, %v2130_v61 }
 0x3e2   : > { %v1061_v52 = vmul.f32 0.0625, %v1060_v50 }
 0x3e3   : > { %v1188_v53 = vpop.xlane.xlu1 %1187  ;;  %v795_v55 = vpack.c.bf16 %v794_v51, %v794_v51 }
 0x3e4   : > { %v1062_v56 = vadd.f32 1e-05, %v1061_v52 }
 0x3e5   : > { %842 = vrot.lane.b32.xlu1 %v795_v55, %s1830_s18  ;;  %797 = vrot.lane.b32.xlu0 %v795_v55, %s1840_s25  ;;  %v340_v57 = vpop.f32.mrb[0].mxu1 }
 0x3e6   : > { %1661 = vrsqrt.f32 %v1062_v56  ;;  %v1477_v58 = vpop.f32.mrb[1].mxu1 }
 0x3e7   : > { %v1194_v59 = vpop.xlane.xlu1 %1193  ;;  %v343_v60 = vpop.f32.mrb[2].mxu1 }
 0x3e8   : > { %v1660_v62 = vpop.eup %1659  ;;  %v1195_v63 = vadd.f32 %v1194_v59, %v1188_v53  ;;  %v1478_v1 = vpop.f32.mrb[3].mxu1 }
 0x3e9   : > { %v929_v2 = vmul.f32 %v1660_v62, %v2137_v4 }
 0x3ea   : > { %v1196_v3 = vmul.f32 0.0625, %v1195_v63 }
 0x3eb   : > { %v930_v61 = vpack.c.bf16 %v929_v2, %v929_v2 }
 0x3ec   : > { %v1197_v5 = vadd.f32 1e-05, %v1196_v3 }
 0x3ed   : > { %977 = vrot.lane.b32.xlu1 %v930_v61, %s1836_s23  ;;  %932 = vrot.lane.b32.xlu0 %v930_v61, %s1837_s6 }
 0x3ee   : > { %1663 = vrsqrt.f32 %v1197_v5 }
 0x3f0   : > { %v1662_v6 = vpop.eup %1661 }
 0x3f1   : > { %v1064_v7 = vmul.f32 %v1662_v6, %v2143_v10 }
 0x3f3   : > { %v1065_v8 = vpack.c.bf16 %v1064_v7, %v1064_v7 }
 0x3f5   : > { %1067 = vrot.lane.b32.xlu1 %v1065_v8, %s1839_s10  ;;  %1112 = vrot.lane.b32.xlu0 %v1065_v8, %s1838_s9 }
 0x3f8   : > { %v1664_v9 = vpop.eup %1663 }
 0x3f9   : > { %v1199_v11 = vmul.f32 %v1664_v9, %v2150_v15 }
 0x3fb   : > { %v2248_v4 = vpack.c.bf16 %v1199_v11, %v1199_v11 }
 0x3fd   : > { %1202 = vrot.lane.b32.xlu0 %v2248_v4, %s1842_s22 }
 0x457   : > { %v843_v12 = vpop.permute.xlu1 %842  ;;  %v798_v13 = vpop.permute.xlu0 %797 }
 0x458   : > { %v294_v48 = vpop.f32.mrb[0].mxu0  ;;  %1518 = vmatmul.mubr.msk.bf16.vlgmr.msra.gmra.mrb[16].mxu0 %vm219_vm0, %v798_v13  ;;  %1524 = vmatmul.mubr.msk.bf16.vlgmr.msra.gmra.mrb[16].mxu1 %vm219_vm0, %v843_v12 }
 0x459   : > { %v341_v10 = vadd.f32 %v340_v57, %v294_v48  ;;  %1528 = vmatpush3.bf16.msra.mxu0 %v2175_v37  ;;  %1534 = vmatpush3.bf16.msra.mxu1 %v2166_v34  ;;  %v1471_v15 = vpop.f32.mrb[1].mxu0 }
 0x45a   : > { %v297_v16 = vpop.f32.mrb[2].mxu0  ;;  %1529 = vmatprep.mubr.msk.bf16.mxu0 %vm1844_vm2, %v1843_v33  ;;  %1535 = vmatprep.mubr.msk.bf16.mxu1 %vm1844_vm2, %v1843_v33 }
 0x45b   : > { %v352_v17 = vadd.f32 %v2252_v14, %v341_v10  ;;  %v1472_v28 = vpop.f32.mrb[3].mxu0  ;;  %1539 = vmatprep.subr.bf16.mxu0 %v1843_v33  ;;  %1545 = vmatprep.subr.bf16.mxu1 %v1843_v33 }
 0x45c   : > { %v476_v18 = vpop.f32.mrb[4].mxu1 }
 0x45d   : > { %353 = vst.msk [vmem:[%s2267_s29] sm:$0xff] %vm219_vm0, %v352_v17  ;;  %v1489_v19 = vpop.f32.mrb[5].mxu1 }
 0x45e   : > { %v479_v20 = vpop.f32.mrb[6].mxu1 }
 0x45f   : > { %v978_v35 = vpop.permute.xlu1 %977  ;;  %v933_v21 = vpop.permute.xlu0 %932 }
 0x460   : > { %v1490_v54 = vpop.f32.mrb[7].mxu1  ;;  %v431_v22 = vpop.f32.mrb[4].mxu0  ;;  %1530 = vmatmul.mubr.msk.bf16.vlgmr.msra.gmra.mrb[20].mxu0 %vm219_vm0, %v933_v21  ;;  %1536 = vmatmul.mubr.msk.bf16.vlgmr.msra.gmra.mrb[20].mxu1 %vm219_vm0, %v978_v35 }
 0x461   : > { %v477_v0 = vadd.f32 %v476_v18, %v431_v22  ;;  %1540 = vmatpush3.bf16.msra.mxu0 %v2175_v37  ;;  %1546 = vmatpush3.bf16.msra.mxu1 %v2166_v34  ;;  %v1483_v23 = vpop.f32.mrb[5].mxu0 }
 0x462   : > { %v434_v24 = vpop.f32.mrb[6].mxu0  ;;  %1541 = vmatprep.mubr.msk.bf16.mxu0 %vm1844_vm2, %v1843_v33  ;;  %1547 = vmatprep.mubr.msk.bf16.mxu1 %vm1844_vm2, %v1843_v33 }
 0x463   : > { %v482_v25 = vadd.f32 %v2252_v14, %v477_v0  ;;  %v1484_v26 = vpop.f32.mrb[7].mxu0  ;;  %1551 = vmatprep.subr.bf16.mxu0 %v1843_v33  ;;  %1557 = vmatprep.subr.bf16.mxu1 %v1843_v33 }
 0x464   : > { %v611_v27 = vpop.f32.mrb[8].mxu1 }
 0x465   : > { %484 = vrot.lane.b32.xlu1 %v482_v25, %s1842_s22  ;;  %v1501_v29 = vpop.f32.mrb[9].mxu1 }
 0x466   : > { %v614_v30 = vpop.f32.mrb[10].mxu1 }
 0x467   : > { %v1068_v31 = vpop.permute.xlu1 %1067  ;;  %v1113_v32 = vpop.permute.xlu0 %1112 }
 0x468   : > { %v1502_v36 = vpop.f32.mrb[11].mxu1  ;;  %v566_v38 = vpop.f32.mrb[8].mxu0  ;;  %1542 = vmatmul.mubr.msk.bf16.vlgmr.msra.gmra.mrb[24].mxu0 %vm219_vm0, %v1068_v31  ;;  %1548 = vmatmul.mubr.msk.bf16.vlgmr.msra.gmra.mrb[24].mxu1 %vm219_vm0, %v1113_v32 }
 0x469   : > { %v612_v39 = vadd.f32 %v611_v27, %v566_v38  ;;  %v1495_v40 = vpop.f32.mrb[9].mxu0  ;;  %1552 = vmatpush3.bf16.msra.mxu0 %v2175_v37  ;;  %1553 = vmatprep.mubr.msk.bf16.mxu0 %vm1844_vm2, %v1843_v33 }
 0x46a   : > { %v569_v41 = vpop.f32.mrb[10].mxu0  ;;  %1558 = vmatpush3.bf16.msra.mxu1 %v2166_v34  ;;  %1559 = vmatprep.mubr.msk.bf16.mxu1 %vm1844_vm2, %v1843_v33 }
 0x46b   : > { %v617_v42 = vadd.f32 %v2252_v14, %v612_v39  ;;  %v1496_v43 = vpop.f32.mrb[11].mxu0 }
 0x46c   : > { %v746_v44 = vpop.f32.mrb[12].mxu1 }
 0x46d   : > { %619 = vrot.lane.b32.xlu1 %v617_v42, %s1839_s10  ;;  %v1513_v45 = vpop.f32.mrb[13].mxu1 }
 0x46e   : > { %v749_v46 = vpop.f32.mrb[14].mxu1 }
 0x46f   : > { %v1203_v37 = vpop.permute.xlu0 %1202  ;;  %v1514_v47 = vpop.f32.mrb[15].mxu1 }
 0x470   : > { %v701_v49 = vpop.f32.mrb[12].mxu0  ;;  %1554 = vmatmul.mubr.msk.bf16.vlgmr.msra.gmra.mrb[28].mxu0 %vm219_vm0, %v1203_v37 }
 0x471   : > { %v747_v34 = vadd.f32 %v746_v44, %v701_v49  ;;  %v1507_v50 = vpop.f32.mrb[13].mxu0 }
 0x472   : > { %v704_v51 = vpop.f32.mrb[14].mxu0 }
 0x473   : > { %v752_v33 = vadd.f32 %v2252_v14, %v747_v34  ;;  %v1508_v52 = vpop.f32.mrb[15].mxu0 }
 0x475   : > { %754 = vrot.lane.b32.xlu0 %v752_v33, %s1837_s6 }
 0x4d7   : > { %v485_v53 = vpop.permute.xlu1 %484 }
 0x4d8   : > { %488 = vst.msk [vmem:[%s2267_s29] sm:$0xff] %vm487_vm3, %v485_v53 }
 0x4df   : > { %v620_v55 = vpop.permute.xlu1 %619 }
 0x4e0   : > { %623 = vst.msk [vmem:[%s2267_s29] sm:$0xff] %vm622_vm4, %v620_v55 }
 0x4e7   : > { %v755_v56 = vpop.permute.xlu0 %754 }
 0x4e8   : > { %758 = vst.msk [vmem:[%s2267_s29] sm:$0xff] %vm757_vm5, %v755_v56 }
 0x52b   : > { %v836_v57 = vpop.f32.mrb[16].mxu0  ;;  %v881_v58 = vpop.f32.mrb[16].mxu1 }
 0x52c   : > { %v882_v59 = vadd.f32 %v881_v58, %v836_v57  ;;  %v1519_v60 = vpop.f32.mrb[17].mxu0  ;;  %v1525_v62 = vpop.f32.mrb[17].mxu1 }
 0x52d   : > { %v839_v63 = vpop.f32.mrb[18].mxu0  ;;  %v884_v1 = vpop.f32.mrb[18].mxu1 }
 0x52e   : > { %v887_v2 = vadd.f32 %v2252_v14, %v882_v59  ;;  %v1520_v3 = vpop.f32.mrb[19].mxu0  ;;  %v1526_v61 = vpop.f32.mrb[19].mxu1 }
 0x530   : > { %889 = vrot.lane.b32.xlu0 %v887_v2, %s1840_s25 }
 0x533   : > { %v971_v5 = vpop.f32.mrb[20].mxu0  ;;  %v1016_v6 = vpop.f32.mrb[20].mxu1 }
 0x534   : > { %v1017_v7 = vadd.f32 %v1016_v6, %v971_v5  ;;  %v1531_v8 = vpop.f32.mrb[21].mxu0  ;;  %v1537_v9 = vpop.f32.mrb[21].mxu1 }
 0x535   : > { %v974_v11 = vpop.f32.mrb[22].mxu0  ;;  %v1019_v12 = vpop.f32.mrb[22].mxu1 }
 0x536   : > { %v1022_v13 = vadd.f32 %v2252_v14, %v1017_v7  ;;  %v1532_v48 = vpop.f32.mrb[23].mxu0  ;;  %v1538_v10 = vpop.f32.mrb[23].mxu1 }
 0x538   : > { %1024 = vrot.lane.b32.xlu0 %v1022_v13, %s1835_s4 }
 0x53b   : > { %v1106_v15 = vpop.f32.mrb[24].mxu0  ;;  %v1151_v16 = vpop.f32.mrb[24].mxu1 }
 0x53c   : > { %v1152_v17 = vadd.f32 %v1151_v16, %v1106_v15  ;;  %v1543_v28 = vpop.f32.mrb[25].mxu0  ;;  %v1549_v18 = vpop.f32.mrb[25].mxu1 }
 0x53d   : > { %v1109_v19 = vpop.f32.mrb[26].mxu0  ;;  %v1154_v20 = vpop.f32.mrb[26].mxu1 }
 0x53e   : > { %v1157_v35 = vadd.f32 %v2252_v14, %v1152_v17  ;;  %v1544_v21 = vpop.f32.mrb[27].mxu0  ;;  %v1550_v54 = vpop.f32.mrb[27].mxu1 }
 0x540   : > { %1159 = vrot.lane.b32.xlu1 %v1157_v35, %s1833_s28  ;;  %s1300_s28 = scalar_lea.sflag [#allocation4], %s2036_s17 }
 0x543   : > { %v1241_v22 = vpop.f32.mrb[28].mxu0 }
 0x544   : > { %v1555_v0 = vpop.f32.mrb[29].mxu0  ;;  %1247 = vrot.lane.b32.xlu1 %v2248_v4, %s1841_s11 }
 0x545   : > { %v1244_v23 = vpop.f32.mrb[30].mxu0 }
 0x546   : > { %v1556_v24 = vpop.f32.mrb[31].mxu0 }
 0x5a2   : > { %v890_v25 = vpop.permute.xlu0 %889 }
 0x5a3   : > { %893 = vst.msk [vmem:[%s2267_s29] sm:$0xff] %vm892_vm6, %v890_v25 }
 0x5aa   : > { %v1025_v26 = vpop.permute.xlu0 %1024 }
 0x5ab   : > { %1028 = vst.msk [vmem:[%s2267_s29] sm:$0xff] %vm1027_vm7, %v1025_v26 }
 0x5b2   : > { %v1160_v27 = vpop.permute.xlu1 %1159 }
 0x5b3   : > { %1163 = vst.msk [vmem:[%s2267_s29] sm:$0xff] %vm1162_vm8, %v1160_v27 }
 0x5b6   : > { %v1248_v29 = vpop.permute.xlu1 %1247 }
 0x5b7   : > { %1560 = vmatmul.mubr.msk.bf16.vlgmr.msra.gmra.mrb[28].mxu1 %vm219_vm0, %v1248_v29 }
 0x68a   : > { %v1286_v30 = vpop.f32.mrb[28].mxu1 }
 0x68b   : > { %v1287_v4 = vadd.f32 %v1286_v30, %v1241_v22  ;;  %v1561_v31 = vpop.f32.mrb[29].mxu1 }
 0x68c   : > { %v1289_v32 = vpop.f32.mrb[30].mxu1 }
 0x68d   : > { %v1292_v36 = vadd.f32 %v2252_v14, %v1287_v4  ;;  %v1562_v38 = vpop.f32.mrb[31].mxu1 }
 0x68f   : > { %1294 = vrot.lane.b32.xlu0 %v1292_v36, %s1828_s20  ;;  %s1755_s20 = sshll.u32 %s1845_s16, 4  ;;  %s1756_s20 = int_to_ptr.vmem [resolvable:$false] %s1755_s20 }
 0x690   : > { %s1757_s4 = scalar_lea.vmem %s1756_s20, 256  ;;  %p1758_p7 = scmp.lt.s32.totalorder %s2320_s21, %s1756_s20 }
 0x691   : > { %p1759_p9 = scmp.lt.s32.totalorder %s1757_s4, %s1751_s30 }
 0x693   : > { %p1760_p12 = por %p1759_p9, %p1758_p7 }
 0x695   : > { %p1761_p2 = pnand %p1760_p12, %p1754_p3 }
 0x701   : > { %v1295_v39 = vpop.permute.xlu0 %1294 }
 0x702   : > { %1298 = vst.msk [vmem:[%s2267_s29] sm:$0xff] %vm1297_vm9, %v1295_v39 }
 0x703   : > { %1764 = shalt.err (!%p1761_p2)
}
 0x704   : > { %s1765_s17 = scalar_lea.hbm %s2318_s27, 128  ;;  %s1769_s9 = scalar_lea.hbm %s2366_s3, 256 }
 0x705   : > { %p1766_p13 = scmp.ne.s32.totalorder %s2318_s27, %s1765_s17  ;;  %p1770_p4 = scmp.lt.u32.totalorder %s2318_s27, %s2366_s3 }
 0x706   : > { %p1771_p5 = scmp.lt.u32.totalorder %s1769_s9, %s1765_s17  ;;  %p1773_p11 = scmp.lt.u32.totalorder %s1765_s17, %s2318_s27 }
 0x707   : > { %p1767_p6 = pnand %p1766_p13, %p2380_p0 }
 0x708   : > { %p1772_p8 = por %p1771_p5, %p1770_p4 }
 0x709   : > { %p1768_p10 = pneg %p1767_p6 }
 0x70a   : > { %p1774_p1 = por %p1773_p11, %p1772_p8 }
 0x70c   : > { %p1775_p3 = pnand %p1774_p1, %p1768_p10 }
 0x70e   : > { %1778 = shalt.err (!%p1775_p3)
}
 0x70f   : > { %1573 = dma.vmem_to_hbm [thread:$0]  (%p2380_p0), %s2320_s21, 128, %s2318_s27, %s1300_s28  }
 0x710 PF: > { %s1325_s11 = sand.u32 1, %s1809_s12   ;;  %p2381_p7 = scmp.ne.s32.totalorder %s2371_s19, 0 }
 0x711   : > { %p2382_p9 = scmp.ge.s32.totalorder %s1821_s15, 2  ;;  %s1326_s22 = scalar_lea.sflag [#allocation4], %s1325_s11 }
 0x713   : > { %p1587_p12 = pnand %p2382_p9, %p2381_p7 }
 0x715   : > { %1804 = dma.done.wait (!%p1587_p12), %s1326_s22, 128  }
 0x716   : > { %1806 = vsyncadd (!%p1587_p12), %s1326_s22, 4294967168  ;;  %p17_p2 = scmp.ge.s32.totalorder %s1977_s5, 4   ;;  %s2383_s12 = smov %s1813_s13 }
 0x717   : > { %s2384_s13 = smov %s1817_s14  ;;  %s2385_s14 = smov %s1993_s8 }
 0x718   : > { %s2386_s15 = smov %s1977_s5  ;;  %19 = sbr.rel (!%p17_p2) target bundleno = 6 (0x6), region = 86 }
 0x71f   :  { %1331 = vsyncpa [#allocation3], 1 }
 0x720   :  { %1333 = vsyncpa [#allocation3 + $0x1], 1 }
 0x721   :  { %1334 = vsyncpa [#allocation6], 1 }
 0x722   :  { %1335 = vsyncpa [#allocation4], 1 }
 0x723   :  { %1337 = vsyncpa [#allocation4 + $0x1], 1 }

// kernel: tpu_custom_call.1
= control target key start
LH: loop header
LB: loop body
LE: loop exit
PB: predicated region body
PF: predicated region fallthrough
CT: control target
= control target key end

     0   :  { %8 = vsyncpa [#allocation3], 0  ;;  %s2363_s0 = inlined_call_operand.hbm [shape: f32[16,128], index: 0, kind: input, shape index: {}]   ;;  %s2364_s1 = inlined_call_operand.hbm [shape: bf16[2,8,8], index: 1, kind: input, shape index: {}]   ;;  %s2365_s2 = inlined_call_operand.hbm [shape: f32[1,8], index: 2, kind: input, shape index: {}]   ;;  %s2366_s3 = inlined_call_operand.hbm [shape: f32[16,64], index: 3, kind: output, shape index: {}]  }
   0x1   :  { %10 = vsyncpa [#allocation3 + $0x1], 0 }
   0x2   :  { %11 = vsyncpa [#allocation6], 0 }
   0x3   :  { %12 = vsyncpa [#allocation4], 0 }
   0x4   :  { %14 = vsyncpa [#allocation4 + $0x1], 0  ;;  %s1866_s12 = smov 0   ;;  %s1868_s13 = smov 0  }
   0x5   :  { %s1870_s14 = smov 0   ;;  %s1872_s15 = smov 0  }
   0x6 LB: > { %s1887_s16 = sadd.s32 4294967295, %s1821_s15   ;;  %s1402_s17 = sadd.s32 4294967294, %s1821_s15   ;;  %s1821_s15 = sphi %s1872_s15, %s2386_s15   ;;  %s1817_s14 = sphi %s1870_s14, %s2385_s14   ;;  %s1813_s13 = sphi %s1868_s13, %s2384_s13   ;;  %s1809_s12 = sphi %s1866_s12, %s2383_s12  }
   0x7   : > { %p40_p0 = scmp.ne.s32.totalorder %s1813_s13, %s1809_s12  ;;  %p2367_p1 = scmp.eq.s32.totalorder %s1887_s16, 0 }
   0x8   : > { %p112_p3 = scmp.eq.s32.totalorder %s1402_s17, 1  ;;  %p1403_p5 = scmp.ge.s32.totalorder %s1821_s15, 1 }
   0x9   : > { %p1896_p4 = por %p2367_p1, %p40_p0  ;;  %p119_p7 = scmp.lt.s32.totalorder %s1821_s15, 3 }
   0xa   : > { %p1901_p6 = por %p112_p3, %p40_p0  ;;  %s1823_s21 = smov [#allocation5]  }
   0xb   : > { %s2370_s18 = scalar_select %p1896_p4, 1, 0 }
   0xc   : > { %s2371_s19 = scalar_select %p1901_p6, 1, 0 }
   0xd   : > { %p1906_p8 = pnand %p1403_p5, %p119_p7  ;;  %s131_s22 = sshll.u32 %s1823_s21, 4  ;;  %s1910_s22 = int_to_ptr.vmem [resolvable:$true] %s131_s22 }
   0xe   : > { %s1824_s24 = smov [#allocation7]   ;;  %s1665_s28 = scalar_lea.hbm %s2364_s1, 128 }
   0xf   : > { %p1575_p9 = pneg %p1906_p8  ;;  %s145_s25 = sshll.u32 %s1824_s24, 4  ;;  %s1921_s25 = int_to_ptr.vmem [resolvable:$true] %s145_s25 }
  0x10   : > { %p1666_p12 = scmp.ne.s32.totalorder %s2364_s1, %s1665_s28  ;;  %p1672_p5 = scmp.lt.u32.totalorder %s1665_s28, %s2364_s1 }
  0x11   : > { %p1917_p11 = pnand %p1575_p9, %p2367_p1 }
  0x13   : > { %p1667_p13 = pneg %p1917_p11 }
  0x15   : > { %p1668_p0 = pnand %p1667_p13, %p1666_p12 }
  0x17   : > { %p1669_p3 = pneg %p1668_p0 }
  0x19   : > { %p1674_p7 = pnand %p1672_p5, %p1669_p3 }
  0x1b   : > { %1677 = shalt.err (!%p1674_p7)
}
  0x1c   : > { %s1678_s6 = scalar_lea.vmem %s1910_s22, 128  ;;  %p1686_p2 = scmp.lt.s32.totalorder %s1910_s22, %s1910_s22 }
  0x1d   : > { %p1679_p9 = scmp.ne.s32.totalorder %s1910_s22, %s1678_s6  ;;  %p1687_p12 = scmp.lt.s32.totalorder %s1678_s6, %s1678_s6 }
  0x1f   : > { %p1681_p10 = pnand %p1679_p9, %p1667_p13  ;;  %p1688_p0 = por %p1687_p12, %p1686_p2 }
  0x21   : > { %p1682_p1 = pneg %p1681_p10 }
  0x23   : > { %p1689_p6 = pnand %p1688_p0, %p1682_p1 }
  0x25   : > { %1692 = shalt.err (!%p1689_p6)
}
  0x26   : > { %s1825_s7 = smov 64   ;;  %s1826_s8 = smov 4  }
  0x27   : > { %1578 = dma.hbm_to_vmem [thread:$0]  (!%p1917_p11), %s2364_s1, 128, %s1910_s22, [#allocation6], %s1825_s7, %s1825_s7, %s1826_s8  }
  0x28   : > { %s1693_s21 = scalar_lea.hbm %s2365_s2, 16 }
  0x29   : > { %p1694_p2 = scmp.ne.s32.totalorder %s2365_s2, %s1693_s21  ;;  %p1700_p10 = scmp.lt.u32.totalorder %s1693_s21, %s2365_s2 }
  0x2b   : > { %p1696_p1 = pnand %p1694_p2, %p1667_p13 }
  0x2d   : > { %p1697_p6 = pneg %p1696_p1 }
  0x2f   : > { %p1702_p3 = pnand %p1700_p10, %p1697_p6 }
  0x31   : > { %1705 = shalt.err (!%p1702_p3)
}
  0x32   : > { %s1706_s22 = scalar_lea.vmem %s1921_s25, 16  ;;  %s1713_s29 = scalar_lea.vmem %s1921_s25, 32 }
  0x33   : > { %p1707_p5 = scmp.ne.s32.totalorder %s1921_s25, %s1706_s22  ;;  %p1714_p12 = scmp.lt.s32.totalorder %s1921_s25, %s1921_s25 }
  0x34   : > { %p1715_p0 = scmp.lt.s32.totalorder %s1713_s29, %s1706_s22 }
  0x35   : > { %p1709_p7 = pnand %p1707_p5, %p1667_p13 }
  0x36   : > { %p1716_p2 = por %p1715_p0, %p1714_p12 }
  0x37   : > { %p1710_p9 = pneg %p1709_p7 }
  0x39   : > { %p1717_p1 = pnand %p1716_p2, %p1710_p9 }
  0x3b   : > { %1720 = shalt.err (!%p1717_p1)
}
  0x3c   : > { %1581 = dma.hbm_to_vmem [thread:$0]  (!%p1917_p11), %s2365_s2, 16, %s1921_s25, [#allocation6]  }
  0x3d   : > { %s1977_s5 = sadd.s32 1, %s1821_s15   ;;  %s27_s23 = sadd.s32 1, %s1817_s14 }
  0x3e   : > { %s24_s6 = ssub.s32 %s1821_s15, %s1977_s5  ;;  %p34_p13 = scmp.ne.s32.totalorder %s1817_s14, %s1813_s13 }
  0x3f   : > { %p25_p6 = scmp.eq.s32.totalorder %s24_s6, 0  ;;  %p35_p10 = scmp.eq.s32.totalorder %s1821_s15, 0 }
  0x40   : > { %p2374_p3 = scmp.eq.s32.totalorder %s1887_s16, 1  ;;  %p1592_p7 = scmp.lt.s32.totalorder %s1821_s15, 2 }
  0x41   : > { %s1993_s8 = scalar_select %p25_p6, %s1817_s14, %s27_s23  }
  0x42   : > { %p1987_p5 = por %p2374_p3, %p34_p13  ;;  %p36_p9 = por %p35_p10, %p34_p13 }
  0x43   : > { %s156_s9 = sand.u32 1, %s1817_s14   ;;  %s1408_s25 = sshll.u32 %s1821_s15, 7 }
  0x44   : > { %s2375_s7 = scalar_select %p1987_p5, 1, 0 }
  0x45   : > { %s1407_s10 = sshll.u32 %s156_s9, 3  ;;  %s2000_s21 = scalar_lea.hbm %s2363_s0, %s1408_s25 }
  0x46   : > { %s160_s24 = scalar_lea.vmem [#allocation2], %s1407_s10  ;;  %p2004_p11 = pnand %p1592_p7, %p36_p9 }
  0x47   : > { %s167_s26 = sshll.u32 %s160_s24, 4  ;;  %s157_s28 = scalar_lea.sflag [#allocation3], %s156_s9  ;;  %s2002_s26 = int_to_ptr.vmem [resolvable:$true] %s167_s26 }
  0x48   : > { %s1721_s22 = scalar_lea.hbm %s2000_s21, 128  ;;  %p1723_p0 = pneg %p2004_p11 }
  0x49   : > { %p1722_p12 = scmp.ne.s32.totalorder %s2000_s21, %s1721_s22  ;;  %s1726_s4 = scalar_lea.hbm %s2363_s0, 256 }
  0x4a   : > { %p1727_p13 = scmp.lt.u32.totalorder %s2000_s21, %s2363_s0  ;;  %p1728_p6 = scmp.lt.u32.totalorder %s1726_s4, %s1721_s22 }
  0x4b   : > { %p1724_p2 = pnand %p1723_p0, %p1722_p12  ;;  %p1730_p3 = scmp.lt.u32.totalorder %s1721_s22, %s2000_s21 }
  0x4c   : > { %p1729_p10 = por %p1728_p6, %p1727_p13 }
  0x4d   : > { %p1725_p1 = pneg %p1724_p2 }
  0x4e   : > { %p1731_p7 = por %p1730_p3, %p1729_p10 }
  0x50   : > { %p1732_p9 = pnand %p1731_p7, %p1725_p1 }
  0x52   : > { %1735 = shalt.err (!%p1732_p9)
}
  0x53   : > { %s1736_s9 = scalar_lea.vmem %s2002_s26, 128  ;;  %s1827_s10 = smov [#allocation2]  }
  0x54   : > { %p1737_p12 = scmp.ne.s32.totalorder %s2002_s26, %s1736_s9  ;;  %s1741_s25 = sshll.u32 %s1827_s10, 4  ;;  %s1742_s25 = int_to_ptr.vmem [resolvable:$false] %s1741_s25 }
  0x55   : > { %s1743_s11 = scalar_lea.vmem %s1742_s25, 256  ;;  %p1744_p4 = scmp.lt.s32.totalorder %s2002_s26, %s1742_s25 }
  0x56   : > { %p1739_p2 = pnand %p1737_p12, %p1723_p0  ;;  %p1745_p13 = scmp.lt.s32.totalorder %s1743_s11, %s1736_s9 }
  0x58   : > { %p1740_p5 = pneg %p1739_p2  ;;  %p1746_p6 = por %p1745_p13, %p1744_p4 }
  0x5a   : > { %p1747_p10 = pnand %p1746_p6, %p1740_p5 }
  0x5c   : > { %1750 = shalt.err (!%p1747_p10)
}
  0x5d   : > { %1585 = dma.hbm_to_vmem [thread:$0]  (!%p2004_p11), %s2000_s21, 128, %s2002_s26, %s157_s28  }
  0x5e   : > { %176 = sbr.rel (%p1906_p8) target bundleno = 1808 (0x710), region = 32  ;;  %s2036_s17 = sand.u32 (!%p1906_p8), 1, %s1813_s13  }
  0x5f   : > { %s1410_s24 = sshll.u32 (!%p1906_p8), %s2036_s17, 3  ;;  %s179_s22 = scalar_lea.sflag (!%p1906_p8), [#allocation3], %s2036_s17 }
  0x60   : > { %s182_s29 = scalar_lea.vmem (!%p1906_p8), [#allocation2], %s1410_s24  ;;  %p2377_p4 = scmp.ne.s32.totalorder (!%p1906_p8), %s2370_s18, 0 }
  0x65   : > { %1796 = dma.done.wait (%p2377_p4), %s179_s22, 128  }
  0x66   : > { %1798 = vsyncadd (%p2377_p4), %s179_s22, 4294967168  ;;  %p2378_p5 = scmp.eq.s32.totalorder %s1887_s16, 0 }
  0x68   : > { %1800 = dma.done.wait (%p2378_p5), [#allocation6], 144   ;;  %p2379_p8 = pmov %p2378_p5 }
  0x69   : > { %vm219_vm0 = vcmask 64512   ;;  %v2050_v0 = vld [vmem:[%s182_s29] sm:$0xff]  ;;  %s1828_s20 = smov 56   ;;  %s1829_s21 = smov 112   ;;  %vm256_vm1 = vcmask 1043456   ;;  %vm1844_vm2 = vmmov 0  }
  0x6a   : > { %1802 = vsyncadd (%p2379_p8), [#allocation6], 4294967152  ;;  %v220_v1 = vsel %vm219_vm0, %v2050_v0, 0.0  ;;  %362 = vrot.lane.b32.xlu1 %v2050_v0, %s1828_s20  ;;  %s1830_s18 = smov 96   ;;  %s1831_s26 = smov 64   ;;  %vm487_vm3 = vcmask 130112  }
  0x6b   : > { %221 = vadd.xlane.f32.xlu0 %v220_v1  ;;  %s1832_s27 = smov 120   ;;  %s1833_s28 = smov 48   ;;  %vm622_vm4 = vcmask 195712   ;;  %vm757_vm5 = vcmask 261312   ;;  %vm892_vm6 = vcmask 326912   ;;  %vm1027_vm7 = vcmask 392512  }
  0x6c   : > { %s1834_s30 = smov 104   ;;  %s1835_s4 = smov 40   ;;  %vm1162_vm8 = vcmask 458112   ;;  %vm1297_vm9 = vcmask 523712  }
  0x6d   : > { %s1836_s23 = smov 88   ;;  %s1837_s6 = smov 24  }
  0x6e   : > { %491 = vrot.lane.b32.xlu1 %v2050_v0, %s1829_s21  ;;  %s1838_s9 = smov 80   ;;  %s1839_s10 = smov 16  }
  0x6f   : > { %s1840_s25 = smov 32   ;;  %s1841_s11 = smov 72  }
  0x70   : > { %s1842_s22 = smov 8   ;;  %s2267_s29 = scalar_lea.vmem [#allocation8], %s1410_s24 }
  0x71   : > { %s1432_s24 = sshll.u32 %s1887_s16, 7  ;;  %p2380_p0 = scmp.ne.s32.totalorder %s2375_s7, 0 }
  0x72   : > { %761 = vrot.lane.b32.xlu1 %v2050_v0, %s1830_s18  ;;  %s1845_s16 = smov [#allocation8]  }
  0x81   : > { %224 = vrot.lane.b32.xlu0 %v2050_v0, %s1831_s26 }
  0x85   : > { %356 = vrot.lane.b32.xlu0 %v2050_v0, %s1832_s27 }
  0x89   : > { %497 = vrot.lane.b32.xlu0 %v2050_v0, %s1833_s28 }
  0x8d   : > { %626 = vrot.lane.b32.xlu0 %v2050_v0, %s1834_s30 }
  0x91   : > { %632 = vrot.lane.b32.xlu0 %v2050_v0, %s1835_s4 }
  0xdc   : > { %v363_v2 = vpop.permute.xlu1 %362 }
  0xdd   : > { %v365_v10 = vsel %vm219_vm0, %v363_v2, 0.0 }
  0xe0   : > { %v492_v5 = vpop.permute.xlu1 %491 }
  0xe1   : > { %v494_v7 = vsel %vm219_vm0, %v492_v5, 0.0 }
  0xe4   : > { %v762_v17 = vpop.permute.xlu1 %761 }
  0xe5   : > { %v764_v18 = vsel %vm219_vm0, %v762_v17, 0.0 }
  0xf8   : > { %v2070_v3 = vpop.xlane.xlu0 %221 }
  0xfc   : > { %v225_v4 = vpop.permute.xlu0 %224 }
  0xfd   : > { %v227_v6 = vsel %vm219_vm0, %v225_v4, 0.0 }
  0xfe   : > { %228 = vadd.xlane.f32.xlu1 %v227_v6 }
 0x100   : > { %v357_v8 = vpop.permute.xlu0 %356 }
 0x101   : > { %v359_v9 = vsel %vm219_vm0, %v357_v8, 0.0 }
 0x102   : > { %360 = vadd.xlane.f32.xlu0 %v359_v9  ;;  %495 = vadd.xlane.f32.xlu1 %v494_v7 }
 0x104   : > { %v498_v11 = vpop.permute.xlu0 %497 }
 0x105   : > { %v500_v12 = vsel %vm219_vm0, %v498_v11, 0.0 }
 0x106   : > { %366 = vadd.xlane.f32.xlu0 %v365_v10 }
 0x108   : > { %v627_v13 = vpop.permute.xlu0 %626 }
 0x109   : > { %v629_v14 = vsel %vm219_vm0, %v627_v13, 0.0 }
 0x10a   : > { %501 = vadd.xlane.f32.xlu0 %v500_v12 }
 0x10c   : > { %v633_v15 = vpop.permute.xlu0 %632 }
 0x10d   : > { %v635_v16 = vsel %vm219_vm0, %v633_v15, 0.0 }
 0x113   : > { %896 = vrot.lane.b32.xlu1 %v2050_v0, %s1836_s23 }
 0x117   : > { %902 = vrot.lane.b32.xlu1 %v2050_v0, %s1837_s6 }
 0x11b   : > { %1031 = vrot.lane.b32.xlu1 %v2050_v0, %s1838_s9 }
 0x11f   : > { %1037 = vrot.lane.b32.xlu1 %v2050_v0, %s1839_s10 }
 0x120   : > { %767 = vrot.lane.b32.xlu0 %v2050_v0, %s1840_s25 }
 0x123   : > { %1166 = vrot.lane.b32.xlu1 %v2050_v0, %s1841_s11 }
 0x127   : > { %1172 = vrot.lane.b32.xlu1 %v2050_v0, %s1842_s22 }
 0x13f   : > { %630 = vadd.xlane.f32.xlu0 %v629_v14 }
 0x143   : > { %636 = vadd.xlane.f32.xlu0 %v635_v16 }
 0x147   : > { %765 = vadd.xlane.f32.xlu0 %v764_v18 }
 0x18b   : > { %v229_v19 = vpop.xlane.xlu1 %228 }
 0x18c   : > { %v230_v46 = vadd.f32 %v229_v19, %v2070_v3 }
 0x18e   : > { %v231_v47 = vmul.f32 0.0625, %v230_v46 }
 0x18f   : > { %v361_v20 = vpop.xlane.xlu0 %360  ;;  %v496_v21 = vpop.xlane.xlu1 %495 }
 0x190   : > { %v2117_v48 = vsub.f32 %v2050_v0, %v231_v47 }
 0x192   : > { %v233_v49 = vmul.f32 %v2117_v48, %v2117_v48 }
 0x193   : > { %v367_v22 = vpop.xlane.xlu0 %366  ;;  %v897_v23 = vpop.permute.xlu1 %896 }
 0x194   : > { %v368_v24 = vadd.f32 %v367_v22, %v361_v20  ;;  %v899_v36 = vsel %vm219_vm0, %v897_v23, 0.0  ;;  %v234_v20 = vsel %vm219_vm0, %v233_v49, 0.0 }
 0x196   : > { %v369_v25 = vmul.f32 0.0625, %v368_v24 }
 0x197   : > { %v502_v26 = vpop.xlane.xlu0 %501  ;;  %v903_v27 = vpop.permute.xlu1 %902 }
 0x198   : > { %v2095_v28 = vsub.f32 %v2050_v0, %v369_v25  ;;  %v503_v29 = vadd.f32 %v502_v26, %v496_v21  ;;  %v905_v38 = vsel %vm219_vm0, %v903_v27, 0.0 }
 0x19a   : > { %v504_v30 = vmul.f32 0.0625, %v503_v29  ;;  %v371_v31 = vmul.f32 %v2095_v28, %v2095_v28 }
 0x19b   : > { %v768_v32 = vpop.permute.xlu0 %767  ;;  %v1032_v34 = vpop.permute.xlu1 %1031 }
 0x19c   : > { %373 = vrot.lane.b32.xlu0 %v371_v31, %s1832_s27  ;;  %v770_v33 = vsel %vm219_vm0, %v768_v32, 0.0  ;;  %v2102_v35 = vsub.f32 %v2050_v0, %v504_v30  ;;  %v1034_v40 = vsel %vm219_vm0, %v1032_v34, 0.0  ;;  %v214_v32 = vld [vmem:[#allocation5] sm:$0xf] }
 0x19d   : > { %771 = vadd.xlane.f32.xlu1 %v770_v33  ;;  %v1843_v33 = vmov 0.0   ;;  %v2166_v34 = vsel %vm256_vm1, %v214_v32, 0 }
 0x19e   : > { %v506_v37 = vmul.f32 %v2102_v35, %v2102_v35  ;;  %1473 = vmatprep.subr.bf16.mxu1 %v1843_v33  ;;  %1467 = vmatprep.subr.bf16.mxu0 %v1843_v33 }
 0x19f   : > { %v1038_v39 = vpop.permute.xlu1 %1037  ;;  %1474 = vmatpush3.bf16.msra.mxu1 %v2166_v34  ;;  %1475 = vmatprep.mubr.msk.bf16.mxu1 %vm1844_vm2, %v1843_v33 }
 0x1a0   : > { %379 = vrot.lane.b32.xlu0 %v371_v31, %s1828_s20  ;;  %v1040_v42 = vsel %vm219_vm0, %v1038_v39, 0.0  ;;  %1469 = vmatprep.mubr.msk.bf16.mxu0 %vm1844_vm2, %v1843_v33 }
 0x1a1   : > { %900 = vadd.xlane.f32.xlu1 %v899_v36  ;;  %1485 = vmatprep.subr.bf16.mxu1 %v1843_v33  ;;  %v216_v36 = vld [vmem:[#allocation5 + $0x4] sm:$0xf] }
 0x1a3   : > { %v1167_v41 = vpop.permute.xlu1 %1166 }
 0x1a4   : > { %508 = vrot.lane.b32.xlu0 %v506_v37, %s1829_s21  ;;  %v1169_v43 = vsel %vm219_vm0, %v1167_v41, 0.0 }
 0x1a5   : > { %906 = vadd.xlane.f32.xlu1 %v905_v38 }
 0x1a7   : > { %v1173_v44 = vpop.permute.xlu1 %1172 }
 0x1a8   : > { %514 = vrot.lane.b32.xlu0 %v506_v37, %s1833_s28  ;;  %v1175_v45 = vsel %vm219_vm0, %v1173_v44, 0.0  ;;  %v2175_v37 = vsel %vm256_vm1, %v216_v36, 0 }
 0x1a9   : > { %1035 = vadd.xlane.f32.xlu1 %v1034_v40  ;;  %1468 = vmatpush3.bf16.msra.mxu0 %v2175_v37 }
 0x1aa   : > { %1479 = vmatprep.subr.bf16.mxu0 %v1843_v33 }
 0x1ad   : > { %1041 = vadd.xlane.f32.xlu1 %v1040_v42 }
 0x1b1   : > { %1170 = vadd.xlane.f32.xlu1 %v1169_v43 }
 0x1b5   : > { %1176 = vadd.xlane.f32.xlu1 %v1175_v45 }
 0x1c6   : > { %238 = vrot.lane.b32.xlu1 %v233_v49, %s1831_s26 }
 0x1cc   : > { %v631_v50 = vpop.xlane.xlu0 %630 }
 0x1d0   : > { %v637_v51 = vpop.xlane.xlu0 %636 }
 0x1d1   : > { %v638_v52 = vadd.f32 %v637_v51, %v631_v50 }
 0x1d3   : > { %v639_v53 = vmul.f32 0.0625, %v638_v52 }
 0x1d4   : > { %v766_v56 = vpop.xlane.xlu0 %765 }
 0x1d5   : > { %v2123_v54 = vsub.f32 %v2050_v0, %v639_v53 }
 0x1d7   : > { %v641_v55 = vmul.f32 %v2123_v54, %v2123_v54 }
 0x1d9   : > { %643 = vrot.lane.b32.xlu1 %v641_v55, %s1834_s30 }
 0x1dd   : > { %649 = vrot.lane.b32.xlu1 %v641_v55, %s1835_s4 }
 0x20e   : > { %v374_v17 = vpop.permute.xlu0 %373 }
 0x20f   : > { %v376_v26 = vsel %vm219_vm0, %v374_v17, 0.0 }
 0x212   : > { %v380_v18 = vpop.permute.xlu0 %379 }
 0x213   : > { %v382_v22 = vsel %vm219_vm0, %v380_v18, 0.0 }
 0x216   : > { %v509_v19 = vpop.permute.xlu0 %508 }
 0x217   : > { %v511_v29 = vsel %vm219_vm0, %v509_v19, 0.0 }
 0x22a   : > { %v772_v57 = vpop.xlane.xlu1 %771 }
 0x22b   : > { %v773_v58 = vadd.f32 %v772_v57, %v766_v56 }
 0x22d   : > { %v774_v59 = vmul.f32 0.0625, %v773_v58 }
 0x22e   : > { %v901_v60 = vpop.xlane.xlu1 %900 }
 0x22f   : > { %v2130_v61 = vsub.f32 %v2050_v0, %v774_v59 }
 0x231   : > { %v776_v62 = vmul.f32 %v2130_v61, %v2130_v61 }
 0x232   : > { %v907_v63 = vpop.xlane.xlu1 %906 }
 0x233   : > { %v908_v1 = vadd.f32 %v907_v63, %v901_v60  ;;  %784 = vrot.lane.b32.xlu1 %v776_v62, %s1840_s25  ;;  %778 = vrot.lane.b32.xlu0 %v776_v62, %s1830_s18 }
 0x235   : > { %v909_v2 = vmul.f32 0.0625, %v908_v1 }
 0x236   : > { %v1036_v3 = vpop.xlane.xlu1 %1035 }
 0x237   : > { %v2137_v4 = vsub.f32 %v2050_v0, %v909_v2 }
 0x239   : > { %v911_v5 = vmul.f32 %v2137_v4, %v2137_v4 }
 0x23a   : > { %v1042_v6 = vpop.xlane.xlu1 %1041 }
 0x23b   : > { %v1043_v7 = vadd.f32 %v1042_v6, %v1036_v3  ;;  %913 = vrot.lane.b32.xlu1 %v911_v5, %s1836_s23 }
 0x23d   : > { %v1044_v8 = vmul.f32 0.0625, %v1043_v7 }
 0x23e   : > { %v1171_v9 = vpop.xlane.xlu1 %1170 }
 0x23f   : > { %v2143_v10 = vsub.f32 %v2050_v0, %v1044_v8  ;;  %919 = vrot.lane.b32.xlu1 %v911_v5, %s1837_s6 }
 0x241   : > { %v1046_v11 = vmul.f32 %v2143_v10, %v2143_v10 }
 0x242   : > { %v1177_v12 = vpop.xlane.xlu1 %1176 }
 0x243   : > { %v1178_v13 = vadd.f32 %v1177_v12, %v1171_v9  ;;  %1048 = vrot.lane.b32.xlu1 %v1046_v11, %s1838_s9 }
 0x245   : > { %v1179_v14 = vmul.f32 0.0625, %v1178_v13 }
 0x246   : > { %v239_v21 = vpop.permute.xlu1 %238 }
 0x247   : > { %v2150_v15 = vsub.f32 %v2050_v0, %v1179_v14  ;;  %1054 = vrot.lane.b32.xlu1 %v1046_v11, %s1839_s10  ;;  %v515_v0 = vpop.permute.xlu0 %514  ;;  %v241_v23 = vsel %vm219_vm0, %v239_v21, 0.0 }
 0x248   : > { %v517_v25 = vsel %vm219_vm0, %v515_v0, 0.0 }
 0x249   : > { %v1181_v16 = vmul.f32 %v2150_v15, %v2150_v15 }
 0x24b   : > { %1183 = vrot.lane.b32.xlu0 %v1181_v16, %s1841_s11  ;;  %v644_v24 = vpop.permute.xlu1 %643 }
 0x24c   : > { %v646_v27 = vsel %vm219_vm0, %v644_v24, 0.0 }
 0x24f   : > { %1189 = vrot.lane.b32.xlu0 %v1181_v16, %s1842_s22  ;;  %v650_v30 = vpop.permute.xlu1 %649 }
 0x250   : > { %v652_v31 = vsel %vm219_vm0, %v650_v30, 0.0 }
 0x26b   : > { %235 = vadd.xlane.f32.xlu1 %v234_v20 }
 0x26e   : > { %383 = vadd.xlane.f32.xlu0 %v382_v22 }
 0x26f   : > { %242 = vadd.xlane.f32.xlu1 %v241_v23 }
 0x272   : > { %518 = vadd.xlane.f32.xlu0 %v517_v25 }
 0x273   : > { %377 = vadd.xlane.f32.xlu1 %v376_v26 }
 0x276   : > { %647 = vadd.xlane.f32.xlu0 %v646_v27 }
 0x277   : > { %512 = vadd.xlane.f32.xlu1 %v511_v29 }
 0x27b   : > { %653 = vadd.xlane.f32.xlu1 %v652_v31 }
 0x2a5   : > { %v785_v38 = vpop.permute.xlu1 %784  ;;  %v779_v41 = vpop.permute.xlu0 %778 }
 0x2a6   : > { %v781_v19 = vsel %vm219_vm0, %v779_v41, 0.0  ;;  %v787_v20 = vsel %vm219_vm0, %v785_v38, 0.0 }
 0x2ad   : > { %v914_v39 = vpop.permute.xlu1 %913 }
 0x2b1   : > { %v920_v40 = vpop.permute.xlu1 %919 }
 0x2b2   : > { %v922_v21 = vsel %vm219_vm0, %v920_v40, 0.0 }
 0x2b5   : > { %v1049_v42 = vpop.permute.xlu1 %1048 }
 0x2b9   : > { %v1055_v44 = vpop.permute.xlu1 %1054 }
 0x2ba   : > { %v1057_v22 = vsel %vm219_vm0, %v1055_v44, 0.0 }
 0x2bd   : > { %v1184_v43 = vpop.permute.xlu0 %1183 }
 0x2be   : > { %v1186_v0 = vsel %vm219_vm0, %v1184_v43, 0.0 }
 0x2c1   : > { %v1190_v45 = vpop.permute.xlu0 %1189 }
 0x2c2   : > { %v1192_v23 = vsel %vm219_vm0, %v1190_v45, 0.0 }
 0x2f8   : > { %v236_v46 = vpop.xlane.xlu1 %235 }
 0x2fb   : > { %v384_v47 = vpop.xlane.xlu0 %383 }
 0x2fc   : > { %v243_v49 = vpop.xlane.xlu1 %242 }
 0x2fd   : > { %v244_v50 = vadd.f32 %v243_v49, %v236_v46 }
 0x2ff   : > { %v245_v51 = vmul.f32 0.0625, %v244_v50  ;;  %v519_v56 = vpop.xlane.xlu0 %518 }
 0x300   : > { %v378_v52 = vpop.xlane.xlu1 %377 }
 0x301   : > { %v246_v53 = vadd.f32 1e-05, %v245_v51  ;;  %v385_v55 = vadd.f32 %v384_v47, %v378_v52 }
 0x303   : > { %1649 = vrsqrt.f32 %v246_v53  ;;  %v386_v57 = vmul.f32 0.0625, %v385_v55  ;;  %v648_v63 = vpop.xlane.xlu0 %647 }
 0x304   : > { %v513_v58 = vpop.xlane.xlu1 %512 }
 0x305   : > { %v387_v59 = vadd.f32 1e-05, %v386_v57  ;;  %v520_v60 = vadd.f32 %v519_v56, %v513_v58 }
 0x307   : > { %1651 = vrsqrt.f32 %v387_v59  ;;  %v521_v62 = vmul.f32 0.0625, %v520_v60 }
 0x308   : > { %v654_v1 = vpop.xlane.xlu1 %653 }
 0x309   : > { %v522_v2 = vadd.f32 1e-05, %v521_v62  ;;  %v655_v3 = vadd.f32 %v654_v1, %v648_v63 }
 0x30b   : > { %1653 = vrsqrt.f32 %v522_v2  ;;  %v656_v5 = vmul.f32 0.0625, %v655_v3 }
 0x30d   : > { %v1650_v6 = vpop.eup %1649  ;;  %v657_v7 = vadd.f32 1e-05, %v656_v5 }
 0x30e   : > { %v248_v8 = vmul.f32 %v1650_v6, %v2117_v48 }
 0x30f   : > { %1655 = vrsqrt.f32 %v657_v7 }
 0x310   : > { %v249_v9 = vpack.c.bf16 %v248_v8, %v248_v8 }
 0x311   : > { %v1652_v11 = vpop.eup %1651 }
 0x312   : > { %251 = vrot.lane.b32.xlu0 %v249_v9, %s1831_s26  ;;  %1476 = vmatmul.mubr.msk.bf16.vlgmr.msra.gmra.mrb[0].mxu1 %vm219_vm0, %v249_v9  ;;  %v389_v12 = vmul.f32 %v1652_v11, %v2095_v28 }
 0x313   : > { %1486 = vmatpush3.bf16.msra.mxu1 %v2166_v34  ;;  %1487 = vmatprep.mubr.msk.bf16.mxu1 %vm1844_vm2, %v1843_v33 }
 0x314   : > { %v390_v13 = vpack.c.bf16 %v389_v12, %v389_v12  ;;  %1497 = vmatprep.subr.bf16.mxu1 %v1843_v33 }
 0x315   : > { %v1654_v14 = vpop.eup %1653 }
 0x316   : > { %437 = vrot.lane.b32.xlu0 %v390_v13, %s1832_s27  ;;  %392 = vrot.lane.b32.xlu1 %v390_v13, %s1828_s20  ;;  %v524_v48 = vmul.f32 %v1654_v14, %v2102_v35  ;;  %v916_v35 = vsel %vm219_vm0, %v914_v39, 0.0  ;;  %v2252_v14 = vld [vmem:[#allocation7] ss:$0 sm:$0xff]  ;;  %s2318_s27 = scalar_lea.hbm %s2366_s3, %s1432_s24 }
 0x318   : > { %v525_v16 = vpack.c.bf16 %v524_v48, %v524_v48 }
 0x319   : > { %v1656_v17 = vpop.eup %1655 }
 0x31a   : > { %527 = vrot.lane.b32.xlu1 %v525_v16, %s1833_s28  ;;  %v659_v28 = vmul.f32 %v1656_v17, %v2123_v54  ;;  %v1051_v54 = vsel %vm219_vm0, %v1049_v42, 0.0 }
 0x31c   : > { %v660_v18 = vpack.c.bf16 %v659_v28, %v659_v28 }
 0x31e   : > { %572 = vrot.lane.b32.xlu1 %v525_v16, %s1829_s21  ;;  %662 = vrot.lane.b32.xlu0 %v660_v18, %s1835_s4  ;;  %s1313_s21 = sshll.u32 %s2267_s29, 4  ;;  %s2320_s21 = int_to_ptr.vmem [resolvable:$true] %s1313_s21 }
 0x322   : > { %707 = vrot.lane.b32.xlu0 %v660_v18, %s1834_s30  ;;  %s1751_s30 = scalar_lea.vmem %s2320_s21, 128 }
 0x323   : > { %p1752_p11 = scmp.ne.s32.totalorder %s2320_s21, %s1751_s30 }
 0x325   : > { %p1753_p1 = pnand %p1752_p11, %p2380_p0 }
 0x327   : > { %p1754_p3 = pneg %p1753_p1 }
 0x341   : > { %782 = vadd.xlane.f32.xlu0 %v781_v19 }
 0x342   : > { %788 = vadd.xlane.f32.xlu1 %v787_v20 }
 0x346   : > { %917 = vadd.xlane.f32.xlu1 %v916_v35 }
 0x34a   : > { %923 = vadd.xlane.f32.xlu1 %v922_v21 }
 0x34e   : > { %1052 = vadd.xlane.f32.xlu1 %v1051_v54 }
 0x352   : > { %1058 = vadd.xlane.f32.xlu1 %v1057_v22 }
 0x356   : > { %1187 = vadd.xlane.f32.xlu1 %v1186_v0 }
 0x35a   : > { %1193 = vadd.xlane.f32.xlu1 %v1192_v23 }
 0x384   : > { %v252_v24 = vpop.permute.xlu0 %251 }
 0x385   : > { %1470 = vmatmul.mubr.msk.bf16.vlgmr.msra.gmra.mrb[0].mxu0 %vm219_vm0, %v252_v24 }
 0x386   : > { %1480 = vmatpush3.bf16.msra.mxu0 %v2175_v37  ;;  %1481 = vmatprep.mubr.msk.bf16.mxu0 %vm1844_vm2, %v1843_v33 }
 0x387   : > { %1491 = vmatprep.subr.bf16.mxu0 %v1843_v33 }
 0x388   : > { %v393_v25 = vpop.permute.xlu1 %392  ;;  %v438_v26 = vpop.permute.xlu0 %437 }
 0x389   : > { %1488 = vmatmul.mubr.msk.bf16.vlgmr.msra.gmra.mrb[4].mxu1 %vm219_vm0, %v438_v26 }
 0x38a   : > { %1498 = vmatpush3.bf16.msra.mxu1 %v2166_v34  ;;  %1499 = vmatprep.mubr.msk.bf16.mxu1 %vm1844_vm2, %v1843_v33 }
 0x38b   : > { %1509 = vmatprep.subr.bf16.mxu1 %v1843_v33 }
 0x38c   : > { %v528_v27 = vpop.permute.xlu1 %527 }
 0x38d   : > { %1482 = vmatmul.mubr.msk.bf16.vlgmr.msra.gmra.mrb[4].mxu0 %vm219_vm0, %v393_v25 }
 0x38e   : > { %1492 = vmatpush3.bf16.msra.mxu0 %v2175_v37  ;;  %1493 = vmatprep.mubr.msk.bf16.mxu0 %vm1844_vm2, %v1843_v33 }
 0x38f   : > { %1503 = vmatprep.subr.bf16.mxu0 %v1843_v33 }
 0x390   : > { %v573_v29 = vpop.permute.xlu1 %572  ;;  %v663_v30 = vpop.permute.xlu0 %662 }
 0x391   : > { %1500 = vmatmul.mubr.msk.bf16.vlgmr.msra.gmra.mrb[8].mxu1 %vm219_vm0, %v573_v29 }
 0x392   : > { %1510 = vmatpush3.bf16.msra.mxu1 %v2166_v34  ;;  %1511 = vmatprep.mubr.msk.bf16.mxu1 %vm1844_vm2, %v1843_v33 }
 0x393   : > { %1521 = vmatprep.subr.bf16.mxu1 %v1843_v33 }
 0x394   : > { %v708_v31 = vpop.permute.xlu0 %707 }
 0x395   : > { %1494 = vmatmul.mubr.msk.bf16.vlgmr.msra.gmra.mrb[8].mxu0 %vm219_vm0, %v528_v27 }
 0x396   : > { %1504 = vmatpush3.bf16.msra.mxu0 %v2175_v37  ;;  %1505 = vmatprep.mubr.msk.bf16.mxu0 %vm1844_vm2, %v1843_v33 }
 0x397   : > { %1515 = vmatprep.subr.bf16.mxu0 %v1843_v33 }
 0x399   : > { %1512 = vmatmul.mubr.msk.bf16.vlgmr.msra.gmra.mrb[12].mxu1 %vm219_vm0, %v708_v31 }
 0x39a   : > { %1522 = vmatpush3.bf16.msra.mxu1 %v2166_v34  ;;  %1523 = vmatprep.mubr.msk.bf16.mxu1 %vm1844_vm2, %v1843_v33 }
 0x39b   : > { %1533 = vmatprep.subr.bf16.mxu1 %v1843_v33 }
 0x39d   : > { %1506 = vmatmul.mubr.msk.bf16.vlgmr.msra.gmra.mrb[12].mxu0 %vm219_vm0, %v663_v30 }
 0x39e   : > { %1516 = vmatpush3.bf16.msra.mxu0 %v2175_v37  ;;  %1517 = vmatprep.mubr.msk.bf16.mxu0 %vm1844_vm2, %v1843_v33 }
 0x39f   : > { %1527 = vmatprep.subr.bf16.mxu0 %v1843_v33 }
 0x3ce   : > { %v783_v32 = vpop.xlane.xlu0 %782 }
 0x3cf   : > { %v789_v36 = vpop.xlane.xlu1 %788 }
 0x3d0   : > { %v790_v38 = vadd.f32 %v789_v36, %v783_v32 }
 0x3d2   : > { %v791_v39 = vmul.f32 0.0625, %v790_v38 }
 0x3d3   : > { %v918_v40 = vpop.xlane.xlu1 %917 }
 0x3d4   : > { %v792_v41 = vadd.f32 1e-05, %v791_v39 }
 0x3d6   : > { %1657 = vrsqrt.f32 %v792_v41 }
 0x3d7   : > { %v924_v42 = vpop.xlane.xlu1 %923 }
 0x3d8   : > { %v925_v43 = vadd.f32 %v924_v42, %v918_v40 }
 0x3da   : > { %v926_v44 = vmul.f32 0.0625, %v925_v43 }
 0x3db   : > { %v1053_v45 = vpop.xlane.xlu1 %1052 }
 0x3dc   : > { %v927_v46 = vadd.f32 1e-05, %v926_v44 }
 0x3de   : > { %1659 = vrsqrt.f32 %v927_v46 }
 0x3df   : > { %v1059_v47 = vpop.xlane.xlu1 %1058 }
 0x3e0   : > { %v1658_v49 = vpop.eup %1657  ;;  %v1060_v50 = vadd.f32 %v1059_v47, %v1053_v45 }
 0x3e1   : > { %v794_v51 = vmul.f32 %v1658_v49, %v2130_v61 }
 0x3e2   : > { %v1061_v52 = vmul.f32 0.0625, %v1060_v50 }
 0x3e3   : > { %v1188_v53 = vpop.xlane.xlu1 %1187  ;;  %v795_v55 = vpack.c.bf16 %v794_v51, %v794_v51 }
 0x3e4   : > { %v1062_v56 = vadd.f32 1e-05, %v1061_v52 }
 0x3e5   : > { %842 = vrot.lane.b32.xlu1 %v795_v55, %s1830_s18  ;;  %797 = vrot.lane.b32.xlu0 %v795_v55, %s1840_s25  ;;  %v340_v57 = vpop.f32.mrb[0].mxu1 }
 0x3e6   : > { %1661 = vrsqrt.f32 %v1062_v56  ;;  %v1477_v58 = vpop.f32.mrb[1].mxu1 }
 0x3e7   : > { %v1194_v59 = vpop.xlane.xlu1 %1193  ;;  %v343_v60 = vpop.f32.mrb[2].mxu1 }
 0x3e8   : > { %v1660_v62 = vpop.eup %1659  ;;  %v1195_v63 = vadd.f32 %v1194_v59, %v1188_v53  ;;  %v1478_v1 = vpop.f32.mrb[3].mxu1 }
 0x3e9   : > { %v929_v2 = vmul.f32 %v1660_v62, %v2137_v4 }
 0x3ea   : > { %v1196_v3 = vmul.f32 0.0625, %v1195_v63 }
 0x3eb   : > { %v930_v61 = vpack.c.bf16 %v929_v2, %v929_v2 }
 0x3ec   : > { %v1197_v5 = vadd.f32 1e-05, %v1196_v3 }
 0x3ed   : > { %977 = vrot.lane.b32.xlu1 %v930_v61, %s1836_s23  ;;  %932 = vrot.lane.b32.xlu0 %v930_v61, %s1837_s6 }
 0x3ee   : > { %1663 = vrsqrt.f32 %v1197_v5 }
 0x3f0   : > { %v1662_v6 = vpop.eup %1661 }
 0x3f1   : > { %v1064_v7 = vmul.f32 %v1662_v6, %v2143_v10 }
 0x3f3   : > { %v1065_v8 = vpack.c.bf16 %v1064_v7, %v1064_v7 }
 0x3f5   : > { %1067 = vrot.lane.b32.xlu1 %v1065_v8, %s1839_s10  ;;  %1112 = vrot.lane.b32.xlu0 %v1065_v8, %s1838_s9 }
 0x3f8   : > { %v1664_v9 = vpop.eup %1663 }
 0x3f9   : > { %v1199_v11 = vmul.f32 %v1664_v9, %v2150_v15 }
 0x3fb   : > { %v2248_v4 = vpack.c.bf16 %v1199_v11, %v1199_v11 }
 0x3fd   : > { %1202 = vrot.lane.b32.xlu0 %v2248_v4, %s1842_s22 }
 0x457   : > { %v843_v12 = vpop.permute.xlu1 %842  ;;  %v798_v13 = vpop.permute.xlu0 %797 }
 0x458   : > { %v294_v48 = vpop.f32.mrb[0].mxu0  ;;  %1518 = vmatmul.mubr.msk.bf16.vlgmr.msra.gmra.mrb[16].mxu0 %vm219_vm0, %v798_v13  ;;  %1524 = vmatmul.mubr.msk.bf16.vlgmr.msra.gmra.mrb[16].mxu1 %vm219_vm0, %v843_v12 }
 0x459   : > { %v341_v10 = vadd.f32 %v340_v57, %v294_v48  ;;  %1528 = vmatpush3.bf16.msra.mxu0 %v2175_v37  ;;  %1534 = vmatpush3.bf16.msra.mxu1 %v2166_v34  ;;  %v1471_v15 = vpop.f32.mrb[1].mxu0 }
 0x45a   : > { %v297_v16 = vpop.f32.mrb[2].mxu0  ;;  %1529 = vmatprep.mubr.msk.bf16.mxu0 %vm1844_vm2, %v1843_v33  ;;  %1535 = vmatprep.mubr.msk.bf16.mxu1 %vm1844_vm2, %v1843_v33 }
 0x45b   : > { %v352_v17 = vadd.f32 %v2252_v14, %v341_v10  ;;  %v1472_v28 = vpop.f32.mrb[3].mxu0  ;;  %1539 = vmatprep.subr.bf16.mxu0 %v1843_v33  ;;  %1545 = vmatprep.subr.bf16.mxu1 %v1843_v33 }
 0x45c   : > { %v476_v18 = vpop.f32.mrb[4].mxu1 }
 0x45d   : > { %353 = vst.msk [vmem:[%s2267_s29] sm:$0xff] %vm219_vm0, %v352_v17  ;;  %v1489_v19 = vpop.f32.mrb[5].mxu1 }
 0x45e   : > { %v479_v20 = vpop.f32.mrb[6].mxu1 }
 0x45f   : > { %v978_v35 = vpop.permute.xlu1 %977  ;;  %v933_v21 = vpop.permute.xlu0 %932 }
 0x460   : > { %v1490_v54 = vpop.f32.mrb[7].mxu1  ;;  %v431_v22 = vpop.f32.mrb[4].mxu0  ;;  %1530 = vmatmul.mubr.msk.bf16.vlgmr.msra.gmra.mrb[20].mxu0 %vm219_vm0, %v933_v21  ;;  %1536 = vmatmul.mubr.msk.bf16.vlgmr.msra.gmra.mrb[20].mxu1 %vm219_vm0, %v978_v35 }
 0x461   : > { %v477_v0 = vadd.f32 %v476_v18, %v431_v22  ;;  %1540 = vmatpush3.bf16.msra.mxu0 %v2175_v37  ;;  %1546 = vmatpush3.bf16.msra.mxu1 %v2166_v34  ;;  %v1483_v23 = vpop.f32.mrb[5].mxu0 }
 0x462   : > { %v434_v24 = vpop.f32.mrb[6].mxu0  ;;  %1541 = vmatprep.mubr.msk.bf16.mxu0 %vm1844_vm2, %v1843_v33  ;;  %1547 = vmatprep.mubr.msk.bf16.mxu1 %vm1844_vm2, %v1843_v33 }
 0x463   : > { %v482_v25 = vadd.f32 %v2252_v14, %v477_v0  ;;  %v1484_v26 = vpop.f32.mrb[7].mxu0  ;;  %1551 = vmatprep.subr.bf16.mxu0 %v1843_v33  ;;  %1557 = vmatprep.subr.bf16.mxu1 %v1843_v33 }
 0x464   : > { %v611_v27 = vpop.f32.mrb[8].mxu1 }
 0x465   : > { %484 = vrot.lane.b32.xlu1 %v482_v25, %s1842_s22  ;;  %v1501_v29 = vpop.f32.mrb[9].mxu1 }
 0x466   : > { %v614_v30 = vpop.f32.mrb[10].mxu1 }
 0x467   : > { %v1068_v31 = vpop.permute.xlu1 %1067  ;;  %v1113_v32 = vpop.permute.xlu0 %1112 }
 0x468   : > { %v1502_v36 = vpop.f32.mrb[11].mxu1  ;;  %v566_v38 = vpop.f32.mrb[8].mxu0  ;;  %1542 = vmatmul.mubr.msk.bf16.vlgmr.msra.gmra.mrb[24].mxu0 %vm219_vm0, %v1068_v31  ;;  %1548 = vmatmul.mubr.msk.bf16.vlgmr.msra.gmra.mrb[24].mxu1 %vm219_vm0, %v1113_v32 }
 0x469   : > { %v612_v39 = vadd.f32 %v611_v27, %v566_v38  ;;  %v1495_v40 = vpop.f32.mrb[9].mxu0  ;;  %1552 = vmatpush3.bf16.msra.mxu0 %v2175_v37  ;;  %1553 = vmatprep.mubr.msk.bf16.mxu0 %vm1844_vm2, %v1843_v33 }
 0x46a   : > { %v569_v41 = vpop.f32.mrb[10].mxu0  ;;  %1558 = vmatpush3.bf16.msra.mxu1 %v2166_v34  ;;  %1559 = vmatprep.mubr.msk.bf16.mxu1 %vm1844_vm2, %v1843_v33 }
 0x46b   : > { %v617_v42 = vadd.f32 %v2252_v14, %v612_v39  ;;  %v1496_v43 = vpop.f32.mrb[11].mxu0 }
 0x46c   : > { %v746_v44 = vpop.f32.mrb[12].mxu1 }
 0x46d   : > { %619 = vrot.lane.b32.xlu1 %v617_v42, %s1839_s10  ;;  %v1513_v45 = vpop.f32.mrb[13].mxu1 }
 0x46e   : > { %v749_v46 = vpop.f32.mrb[14].mxu1 }
 0x46f   : > { %v1203_v37 = vpop.permute.xlu0 %1202  ;;  %v1514_v47 = vpop.f32.mrb[15].mxu1 }
 0x470   : > { %v701_v49 = vpop.f32.mrb[12].mxu0  ;;  %1554 = vmatmul.mubr.msk.bf16.vlgmr.msra.gmra.mrb[28].mxu0 %vm219_vm0, %v1203_v37 }
 0x471   : > { %v747_v34 = vadd.f32 %v746_v44, %v701_v49  ;;  %v1507_v50 = vpop.f32.mrb[13].mxu0 }
 0x472   : > { %v704_v51 = vpop.f32.mrb[14].mxu0 }
 0x473   : > { %v752_v33 = vadd.f32 %v2252_v14, %v747_v34  ;;  %v1508_v52 = vpop.f32.mrb[15].mxu0 }
 0x475   : > { %754 = vrot.lane.b32.xlu0 %v752_v33, %s1837_s6 }
 0x4d7   : > { %v485_v53 = vpop.permute.xlu1 %484 }
 0x4d8   : > { %488 = vst.msk [vmem:[%s2267_s29] sm:$0xff] %vm487_vm3, %v485_v53 }
 0x4df   : > { %v620_v55 = vpop.permute.xlu1 %619 }
 0x4e0   : > { %623 = vst.msk [vmem:[%s2267_s29] sm:$0xff] %vm622_vm4, %v620_v55 }
 0x4e7   : > { %v755_v56 = vpop.permute.xlu0 %754 }
 0x4e8   : > { %758 = vst.msk [vmem:[%s2267_s29] sm:$0xff] %vm757_vm5, %v755_v56 }
 0x52b   : > { %v836_v57 = vpop.f32.mrb[16].mxu0  ;;  %v881_v58 = vpop.f32.mrb[16].mxu1 }
 0x52c   : > { %v882_v59 = vadd.f32 %v881_v58, %v836_v57  ;;  %v1519_v60 = vpop.f32.mrb[17].mxu0  ;;  %v1525_v62 = vpop.f32.mrb[17].mxu1 }
 0x52d   : > { %v839_v63 = vpop.f32.mrb[18].mxu0  ;;  %v884_v1 = vpop.f32.mrb[18].mxu1 }
 0x52e   : > { %v887_v2 = vadd.f32 %v2252_v14, %v882_v59  ;;  %v1520_v3 = vpop.f32.mrb[19].mxu0  ;;  %v1526_v61 = vpop.f32.mrb[19].mxu1 }
 0x530   : > { %889 = vrot.lane.b32.xlu0 %v887_v2, %s1840_s25 }
 0x533   : > { %v971_v5 = vpop.f32.mrb[20].mxu0  ;;  %v1016_v6 = vpop.f32.mrb[20].mxu1 }
 0x534   : > { %v1017_v7 = vadd.f32 %v1016_v6, %v971_v5  ;;  %v1531_v8 = vpop.f32.mrb[21].mxu0  ;;  %v1537_v9 = vpop.f32.mrb[21].mxu1 }
 0x535   : > { %v974_v11 = vpop.f32.mrb[22].mxu0  ;;  %v1019_v12 = vpop.f32.mrb[22].mxu1 }
 0x536   : > { %v1022_v13 = vadd.f32 %v2252_v14, %v1017_v7  ;;  %v1532_v48 = vpop.f32.mrb[23].mxu0  ;;  %v1538_v10 = vpop.f32.mrb[23].mxu1 }
 0x538   : > { %1024 = vrot.lane.b32.xlu0 %v1022_v13, %s1835_s4 }
 0x53b   : > { %v1106_v15 = vpop.f32.mrb[24].mxu0  ;;  %v1151_v16 = vpop.f32.mrb[24].mxu1 }
 0x53c   : > { %v1152_v17 = vadd.f32 %v1151_v16, %v1106_v15  ;;  %v1543_v28 = vpop.f32.mrb[25].mxu0  ;;  %v1549_v18 = vpop.f32.mrb[25].mxu1 }
 0x53d   : > { %v1109_v19 = vpop.f32.mrb[26].mxu0  ;;  %v1154_v20 = vpop.f32.mrb[26].mxu1 }
 0x53e   : > { %v1157_v35 = vadd.f32 %v2252_v14, %v1152_v17  ;;  %v1544_v21 = vpop.f32.mrb[27].mxu0  ;;  %v1550_v54 = vpop.f32.mrb[27].mxu1 }
 0x540   : > { %1159 = vrot.lane.b32.xlu1 %v1157_v35, %s1833_s28  ;;  %s1300_s28 = scalar_lea.sflag [#allocation4], %s2036_s17 }
 0x543   : > { %v1241_v22 = vpop.f32.mrb[28].mxu0 }
 0x544   : > { %v1555_v0 = vpop.f32.mrb[29].mxu0  ;;  %1247 = vrot.lane.b32.xlu1 %v2248_v4, %s1841_s11 }
 0x545   : > { %v1244_v23 = vpop.f32.mrb[30].mxu0 }
 0x546   : > { %v1556_v24 = vpop.f32.mrb[31].mxu0 }
 0x5a2   : > { %v890_v25 = vpop.permute.xlu0 %889 }
 0x5a3   : > { %893 = vst.msk [vmem:[%s2267_s29] sm:$0xff] %vm892_vm6, %v890_v25 }
 0x5aa   : > { %v1025_v26 = vpop.permute.xlu0 %1024 }
 0x5ab   : > { %1028 = vst.msk [vmem:[%s2267_s29] sm:$0xff] %vm1027_vm7, %v1025_v26 }
 0x5b2   : > { %v1160_v27 = vpop.permute.xlu1 %1159 }
 0x5b3   : > { %1163 = vst.msk [vmem:[%s2267_s29] sm:$0xff] %vm1162_vm8, %v1160_v27 }
 0x5b6   : > { %v1248_v29 = vpop.permute.xlu1 %1247 }
 0x5b7   : > { %1560 = vmatmul.mubr.msk.bf16.vlgmr.msra.gmra.mrb[28].mxu1 %vm219_vm0, %v1248_v29 }
 0x68a   : > { %v1286_v30 = vpop.f32.mrb[28].mxu1 }
 0x68b   : > { %v1287_v4 = vadd.f32 %v1286_v30, %v1241_v22  ;;  %v1561_v31 = vpop.f32.mrb[29].mxu1 }
 0x68c   : > { %v1289_v32 = vpop.f32.mrb[30].mxu1 }
 0x68d   : > { %v1292_v36 = vadd.f32 %v2252_v14, %v1287_v4  ;;  %v1562_v38 = vpop.f32.mrb[31].mxu1 }
 0x68f   : > { %1294 = vrot.lane.b32.xlu0 %v1292_v36, %s1828_s20  ;;  %s1755_s20 = sshll.u32 %s1845_s16, 4  ;;  %s1756_s20 = int_to_ptr.vmem [resolvable:$false] %s1755_s20 }
 0x690   : > { %s1757_s4 = scalar_lea.vmem %s1756_s20, 256  ;;  %p1758_p7 = scmp.lt.s32.totalorder %s2320_s21, %s1756_s20 }
 0x691   : > { %p1759_p9 = scmp.lt.s32.totalorder %s1757_s4, %s1751_s30 }
 0x693   : > { %p1760_p12 = por %p1759_p9, %p1758_p7 }
 0x695   : > { %p1761_p2 = pnand %p1760_p12, %p1754_p3 }
 0x701   : > { %v1295_v39 = vpop.permute.xlu0 %1294 }
 0x702   : > { %1298 = vst.msk [vmem:[%s2267_s29] sm:$0xff] %vm1297_vm9, %v1295_v39 }
 0x703   : > { %1764 = shalt.err (!%p1761_p2)
}
 0x704   : > { %s1765_s17 = scalar_lea.hbm %s2318_s27, 128  ;;  %s1769_s9 = scalar_lea.hbm %s2366_s3, 256 }
 0x705   : > { %p1766_p13 = scmp.ne.s32.totalorder %s2318_s27, %s1765_s17  ;;  %p1770_p4 = scmp.lt.u32.totalorder %s2318_s27, %s2366_s3 }
 0x706   : > { %p1771_p5 = scmp.lt.u32.totalorder %s1769_s9, %s1765_s17  ;;  %p1773_p11 = scmp.lt.u32.totalorder %s1765_s17, %s2318_s27 }
 0x707   : > { %p1767_p6 = pnand %p1766_p13, %p2380_p0 }
 0x708   : > { %p1772_p8 = por %p1771_p5, %p1770_p4 }
 0x709   : > { %p1768_p10 = pneg %p1767_p6 }
 0x70a   : > { %p1774_p1 = por %p1773_p11, %p1772_p8 }
 0x70c   : > { %p1775_p3 = pnand %p1774_p1, %p1768_p10 }
 0x70e   : > { %1778 = shalt.err (!%p1775_p3)
}
 0x70f   : > { %1573 = dma.vmem_to_hbm [thread:$0]  (%p2380_p0), %s2320_s21, 128, %s2318_s27, %s1300_s28  }
 0x710 PF: > { %s1325_s11 = sand.u32 1, %s1809_s12   ;;  %p2381_p7 = scmp.ne.s32.totalorder %s2371_s19, 0 }
 0x711   : > { %p2382_p9 = scmp.ge.s32.totalorder %s1821_s15, 2  ;;  %s1326_s22 = scalar_lea.sflag [#allocation4], %s1325_s11 }
 0x713   : > { %p1587_p12 = pnand %p2382_p9, %p2381_p7 }
 0x715   : > { %1804 = dma.done.wait (!%p1587_p12), %s1326_s22, 128  }
 0x716   : > { %1806 = vsyncadd (!%p1587_p12), %s1326_s22, 4294967168  ;;  %p17_p2 = scmp.ge.s32.totalorder %s1977_s5, 4   ;;  %s2383_s12 = smov %s1813_s13 }
 0x717   : > { %s2384_s13 = smov %s1817_s14  ;;  %s2385_s14 = smov %s1993_s8 }
 0x718   : > { %s2386_s15 = smov %s1977_s5  ;;  %19 = sbr.rel (!%p17_p2) target bundleno = 6 (0x6), region = 86 }
 0x71f   :  { %1331 = vsyncpa [#allocation3], 1 }
 0x720   :  { %1333 = vsyncpa [#allocation3 + $0x1], 1 }
 0x721   :  { %1334 = vsyncpa [#allocation6], 1 }
 0x722   :  { %1335 = vsyncpa [#allocation4], 1 }
 0x723   :  { %1337 = vsyncpa [#allocation4 + $0x1], 1 }

</bundles_post_ra>
